<compile_context>
chip_gen: v6e
topology: v6e:2x2x1
jax: 0.10.0
libtpu: 0.0.40
codegen_flags: <defaults>
</compile_context>

<pallas_src>
import jax
import jax.numpy as jnp
from jax.experimental import pallas as pl
from jax.experimental.pallas import tpu as pltpu

H1 = 512
H2 = 256
_NEG_SLOPE = 0.2


def _round_up(x, m):
    return ((x + m - 1) // m) * m


# --------------------------------------------------------------------------
# Kernel
# --------------------------------------------------------------------------
def _make_kernel(n_disc):
    def kernel(x_ref, w1_ref, b1_ref, w2_ref, b2_ref, w3_ref, b3_ref,
               out_ref, acc_ref):
        # x_ref:   (bt, tk)        f32   (batch-tile x K-tile of flattened images)
        # w1_ref:  (tk, n*H1)      bf16  (K-tile of concatenated layer-1 weights)
        # b1_ref:  (1, n*H1)       f32
        # w2_ref:  (n, H1, H2)     bf16
        # b2_ref:  (n, 1, H2)      f32
        # w3_ref:  (n, 1, H2)      f32   (Linear(H2,1) weight as row vector)
        # b3_ref:  (1, n)          f32
        # out_ref: (bt, n)         f32
        # acc_ref: (bt, n*H1)      f32 scratch (layer-1 accumulator)
        k = pl.program_id(1)

        @pl.when(k == 0)
        def _init():
            acc_ref[...] = jnp.zeros_like(acc_ref)

        # Layer-1 partial product for this K tile.  x is cast to bf16 in-kernel
        # (free on the VPU under the MXU) so the wrapper never rewrites x.
        acc_ref[...] += jnp.dot(x_ref[...].astype(jnp.bfloat16), w1_ref[...],
                                preferred_element_type=jnp.float32)

        @pl.when(k == pl.num_programs(1) - 1)
        def _finalize():
            h1 = acc_ref[...] + b1_ref[...]                       # (bt, n*H1) f32
            h1 = jnp.where(h1 > 0, h1, _NEG_SLOPE * h1)           # LeakyReLU(0.2)

            for i in range(n_disc):                               # small, unrolled
                h1_i = h1[:, i * H1:(i + 1) * H1].astype(jnp.bfloat16)
                h2 = jnp.dot(h1_i, w2_ref[i],
                             preferred_element_type=jnp.float32)  # (bt, H2)
                h2 = h2 + b2_ref[i]
                h2 = jnp.where(h2 > 0, h2, _NEG_SLOPE * h2)
                # Final Linear(H2, 1) as a lane reduction (avoids 1-wide matmul).
                z = (jnp.sum(h2 * w3_ref[i], axis=-1, keepdims=True)
                     + b3_ref[:, i:i + 1])
                # Sigmoid: exp + approx reciprocal -> both on the EUP slot.
                out_ref[:, i:i + 1] = pl.reciprocal(1.0 + jnp.exp(-z),
                                                    approx=True)

    return kernel


# --------------------------------------------------------------------------
# Parameter preparation (ONE-TIME: layout, casts, padding, tile sizing)
# --------------------------------------------------------------------------
def prepare_params(params, *, bt_cap=256, tk_cap=4096, tk_override=None):
    """Hoists all per-call weight plumbing out of the forward path."""
    w1, b1, w2, b2, w3, b3 = [jnp.asarray(p) for p in params]
    n_disc, D, h1 = w1.shape
    assert h1 == H1 and w2.shape[1:] == (H1, H2)
    NH1 = n_disc * H1

    # Generation-aware VMEM budget (v5e/v6e: 128 MiB, v7x: 64 MiB per core).
    try:
        vmem_cap = int(pltpu.get_tpu_info().vmem_capacity_bytes)
    except Exception:
        vmem_cap = 64 * 1024 * 1024          # conservative (v7x) fallback
    vmem_limit = (vmem_cap * 3) // 4

    bt_cap = max(8, _round_up(bt_cap, 8))

    # VMEM bookkeeping (bytes), worst-case: residents double buffered.
    resident = (2 * n_disc * H1 * H2 * 2        # W2 (bf16)
                + 2 * NH1 * 4                    # b1
                + 2 * 2 * n_disc * 8 * H2 * 4    # b2 + w3  ((1,H2) pads to (8,H2))
                + 2 * 8 * 128 * 4                # b3
                + 2 * bt_cap * 128 * 4)          # out block (lane padded)
    fixed = resident + bt_cap * NH1 * 4 + (2 << 20)      # + f32 acc + slack
    per_tk = 2 * NH1 * 2 + 2 * bt_cap * 4                # W1 dbl-buf + x dbl-buf
    tk_budget = (vmem_limit - fixed) // per_tk

    if tk_override is not None:
        tk = max(128, (int(tk_override) // 128) * 128)
    else:
        tk = min(int(tk_budget), tk_cap, _round_up(D, 256))
        tk = max((tk // 256) * 256, 128)        # 256-aligned (v6e/v7x MXU), 128 floor
    d_pad = _round_up(D, tk)                    # tk need NOT divide D: pad K instead

    # Concatenate layer-1 weights across discriminators and pad K once, here.
    w1cat = jnp.transpose(w1, (1, 0, 2)).reshape(D, NH1)
    if d_pad != D:
        w1cat = jnp.pad(w1cat, ((0, d_pad - D), (0, 0)))
    w1cat = w1cat.astype(jnp.bfloat16)

    return dict(
        n_disc=n_disc, D=D, d_pad=d_pad, tk=tk, bt_cap=bt_cap,
        vmem_limit=int(vmem_limit),
        w1cat=w1cat,
        b1=b1.reshape(1, NH1).astype(jnp.float32),
        w2=w2.astype(jnp.bfloat16),
        b2=b2.reshape(n_disc, 1, H2).astype(jnp.float32),
        w3=w3.reshape(n_disc, 1, H2).astype(jnp.float32),
        b3=b3.reshape(1, n_disc).astype(jnp.float32),
    )


# --------------------------------------------------------------------------
# Forward
# --------------------------------------------------------------------------
def discriminator_forward(x_nchw, prep, *, bt_override=None):
    """x_nchw: (B, C, H, W) float32.  Returns (n_disc, B, 1) float32."""
    n_disc, D, d_pad, tk = prep["n_disc"], prep["D"], prep["d_pad"], prep["tk"]
    NH1 = n_disc * H1
    B = x_nchw.shape[0]
    x_flat = x_nchw.reshape(B, -1)              # stays f32; cast to bf16 in-kernel
    assert x_flat.shape[1] == D

    # Batch tile: "parallel" grid axis (uses both TCs on v7x) and bounds the
    # accumulator scratch.  Pad B to >= 16 (bf16 sublane packing of the LHS).
    if bt_override is not None:
        bt = max(8, _round_up(int(bt_override), 8))
    else:
        bt = min(_round_up(max(B, 16), 16), prep["bt_cap"])
    B_pad = _round_up(max(B, bt), bt)
    num_b = B_pad // bt
    num_k = d_pad // tk

    if (B_pad, d_pad) != (B, D):
        x_flat = jnp.pad(x_flat, ((0, B_pad - B), (0, d_pad - D)))

    def _call(single_buffer_residents):
        res_kw = ({"pipeline_mode": pl.Buffered(1)}
                  if single_buffer_residents else {})
        in_specs = [
            pl.BlockSpec((bt, tk), lambda b, k: (b, k)),                       # x (f32)
            pl.BlockSpec((tk, NH1), lambda b, k: (k, 0)),                      # W1cat
            pl.BlockSpec((1, NH1), lambda b, k: (0, 0), **res_kw),             # b1
            pl.BlockSpec((n_disc, H1, H2), lambda b, k: (0, 0, 0), **res_kw),  # W2
            pl.BlockSpec((n_disc, 1, H2), lambda b, k: (0, 0, 0), **res_kw),   # b2
            pl.BlockSpec((n_disc, 1, H2), lambda b, k: (0, 0, 0), **res_kw),   # w3
            pl.BlockSpec((1, n_disc), lambda b, k: (0, 0), **res_kw),          # b3
        ]
        grid_spec = pltpu.PrefetchScalarGridSpec(
            num_scalar_prefetch=0,
            grid=(num_b, num_k),                 # reduction axis (K) last
            in_specs=in_specs,
            out_specs=pl.BlockSpec((bt, n_disc), lambda b, k: (b, 0)),
            scratch_shapes=[pltpu.VMEM((bt, NH1), jnp.float32)],
        )
        return pl.pallas_call(
            _make_kernel(n_disc),
            out_shape=jax.ShapeDtypeStruct((B_pad, n_disc), jnp.float32),
            grid_spec=grid_spec,
            compiler_params=pltpu.CompilerParams(
                dimension_semantics=("parallel", "arbitrary"),
                vmem_limit_bytes=prep["vmem_limit"],
            ),
        )(x_flat, prep["w1cat"], prep["b1"], prep["w2"], prep["b2"],
          prep["w3"], prep["b3"])

    try:
        out_bn = _call(True)        # single-buffer grid-invariant operands
    except Exception:
        out_bn = _call(False)       # fall back if Buffered(1) is unsupported

    return jnp.transpose(out_bn[:B])[..., None]      # (n_disc, B, 1)


# --------------------------------------------------------------------------
# Init + reference
# --------------------------------------------------------------------------
def init_params(key, n_disc, img_shape):
    """Deterministic init mimicking PyTorch Linear default U[-1/sqrt(fan_in), +]."""
    D = 1
    for s in img_shape:
        D *= s
    ks = jax.random.split(key, 6)

    def uni(k, shape, fan_in):
        bound = 1.0 / jnp.sqrt(jnp.float32(fan_in))
        return jax.random.uniform(k, shape, jnp.float32, -bound, bound)

    w1 = uni(ks[0], (n_disc, D, H1), D)
    b1 = uni(ks[1], (n_disc, 1, H1), D)
    w2 = uni(ks[2], (n_disc, H1, H2), H1)
    b2 = uni(ks[3], (n_disc, 1, H2), H1)
    w3 = uni(ks[4], (n_disc, 1, H2), H2)      # Linear(H2, 1) weight as (1, H2)
    b3 = uni(ks[5], (n_disc, 1, 1), H2)
    return (w1, b1, w2, b2, w3, b3)


def reference_forward(x_nchw, params):
    """Plain-JAX reference mirroring the kernel's bf16-weight / f32-accum pipeline."""
    w1, b1, w2, b2, w3, b3 = params
    B = x_nchw.shape[0]
    x = x_nchw.reshape(B, -1).astype(jnp.bfloat16)

    def one(wi1, bi1, wi2, bi2, wi3, bi3):
        h1 = jnp.dot(x, wi1.astype(jnp.bfloat16),
                     preferred_element_type=jnp.float32) + bi1
        h1 = jnp.where(h1 > 0, h1, _NEG_SLOPE * h1)
        h2 = jnp.dot(h1.astype(jnp.bfloat16), wi2.astype(jnp.bfloat16),
                     preferred_element_type=jnp.float32) + bi2
        h2 = jnp.where(h2 > 0, h2, _NEG_SLOPE * h2)
        z = jnp.sum(h2 * wi3, axis=-1, keepdims=True) + bi3
        return 1.0 / (1.0 + jnp.exp(-z))

    return jax.vmap(one)(w1, b1, w2, b2, w3, b3)


# --------------------------------------------------------------------------
# Test
# --------------------------------------------------------------------------
if __name__ == "__main__":
    key = jax.random.PRNGKey(0)
    k_x, k_p, k_x2 = jax.random.split(key, 3)

    n_discriminators = 3
    img_shape = (1, 16, 16)          # (C, H, W) -> D = 256
    batch = 8

    x = jax.random.normal(k_x, (batch,) + img_shape, jnp.float32)
    params = init_params(k_p, n_discriminators, img_shape)

    # 1) Default sizing: generation-aware tk / VMEM budget (single K tile here).
    prep = prepare_params(params)
    out = jax.block_until_ready(discriminator_forward(x, prep))
    assert out.shape == (n_discriminators, batch, 1), out.shape
    ref = reference_forward(x, params)
    assert jnp.allclose(out, ref, atol=3e-3, rtol=3e-3), "mismatch (default tiling)"

    # 2) Forced small tiles: exercises multi-K accumulation (pl.when init/finalize),
    #    batch tiling across the parallel axis, and B/K zero-padding.
    batch2 = 20
    x2 = jax.random.normal(k_x2, (batch2,) + img_shape, jnp.float32)
    prep_small = prepare_params(params, tk_override=128)
    out2 = jax.block_until_ready(
        discriminator_forward(x2, prep_small, bt_override=8))
    assert out2.shape == (n_discriminators, batch2, 1), out2.shape
    ref2 = reference_forward(x2, params)
    assert jnp.allclose(out2, ref2, atol=3e-3, rtol=3e-3), "mismatch (tiled path)"

    print("KERNEL_OK")
</pallas_src>

<mosaic_0001>
module attributes {stable_mosaic.version = 11 : i64} {
  func.func @kernel(%arg0: i32, %arg1: i32, %arg2: memref<16x256xf32, #tpu.memory_space<vmem>>, %arg3: memref<256x1536xbf16, #tpu.memory_space<vmem>>, %arg4: memref<1x1536xf32, #tpu.memory_space<vmem>>, %arg5: memref<3x512x256xbf16, #tpu.memory_space<vmem>>, %arg6: memref<3x1x256xf32, #tpu.memory_space<vmem>>, %arg7: memref<3x1x256xf32, #tpu.memory_space<vmem>>, %arg8: memref<1x3xf32, #tpu.memory_space<vmem>>, %arg9: memref<16x3xf32, #tpu.memory_space<vmem>>, %arg10: memref<16x1536xf32, #tpu.memory_space<vmem>>) attributes {dimension_semantics = [#tpu.dimension_semantics<parallel>, #tpu.dimension_semantics<arbitrary>], iteration_bounds = array<i64: 1, 1>, scalar_prefetch = 0 : i64, scratch_operands = 1 : i64, tpu.core_type = #tpu.core_type<tc>, window_params = [{transform_indices = @transform_0, window_bounds = array<i64: 16, 256>}, {transform_indices = @transform_1, window_bounds = array<i64: 256, 1536>}, {pipeline_mode = #tpu.pipeline_mode<synchronous>, transform_indices = @transform_2, window_bounds = array<i64: 1, 1536>}, {pipeline_mode = #tpu.pipeline_mode<synchronous>, transform_indices = @transform_3, window_bounds = array<i64: 3, 512, 256>}, {pipeline_mode = #tpu.pipeline_mode<synchronous>, transform_indices = @transform_4, window_bounds = array<i64: 3, 1, 256>}, {pipeline_mode = #tpu.pipeline_mode<synchronous>, transform_indices = @transform_5, window_bounds = array<i64: 3, 1, 256>}, {pipeline_mode = #tpu.pipeline_mode<synchronous>, transform_indices = @transform_6, window_bounds = array<i64: 1, 3>}, {transform_indices = @transform_7, window_bounds = array<i64: 16, 3>}]} {
    %c0_i32 = arith.constant 0 : i32
    %0 = arith.cmpi eq, %arg1, %c0_i32 : i32
    %1 = arith.extui %0 : i1 to i32
    %c0_i32_0 = arith.constant 0 : i32
    %2 = arith.cmpi ne, %1, %c0_i32_0 : i32
    scf.if %2 {
      %cst_10 = arith.constant 0.000000e+00 : f32
      %13 = vector.broadcast %cst_10 : f32 to vector<16x1536xf32>
      %c0_11 = arith.constant 0 : index
      %c0_12 = arith.constant 0 : index
      %14 = vector.load %arg10[%c0_11, %c0_12] : memref<16x1536xf32, #tpu.memory_space<vmem>>, vector<16x1536xf32>
      tpu.vector_store %arg10[%c0_11, %c0_12], %13 {strides = array<i32>} : memref<16x1536xf32, #tpu.memory_space<vmem>>, vector<16x1536xf32>,
    } else {
    }
    %c0 = arith.constant 0 : index
    %c0_1 = arith.constant 0 : index
    %3 = vector.load %arg10[%c0, %c0_1] : memref<16x1536xf32, #tpu.memory_space<vmem>>, vector<16x1536xf32>
    %c0_2 = arith.constant 0 : index
    %c0_3 = arith.constant 0 : index
    %4 = vector.load %arg2[%c0_2, %c0_3] : memref<16x256xf32, #tpu.memory_space<vmem>>, vector<16x256xf32>
    %5 = arith.truncf %4 : vector<16x256xf32> to vector<16x256xbf16>
    %c0_4 = arith.constant 0 : index
    %c0_5 = arith.constant 0 : index
    %6 = vector.load %arg3[%c0_4, %c0_5] : memref<256x1536xbf16, #tpu.memory_space<vmem>>, vector<256x1536xbf16>
    %cst = arith.constant dense<0.000000e+00> : vector<16x1536xf32>
    %7 = tpu.matmul %5, %6, %cst {dimension_numbers = #tpu.dot_dimension_numbers<[1], [0], [0], [1], [0, 0, 1, 1], [], []>} : vector<16x256xbf16>, vector<256x1536xbf16>, vector<16x1536xf32> -> vector<16x1536xf32>
    %8 = arith.addf %3, %7 : vector<16x1536xf32>
    %c0_6 = arith.constant 0 : index
    %c0_7 = arith.constant 0 : index
    %9 = vector.load %arg10[%c0_6, %c0_7] : memref<16x1536xf32, #tpu.memory_space<vmem>>, vector<16x1536xf32>
    tpu.vector_store %arg10[%c0_6, %c0_7], %8 {strides = array<i32>} : memref<16x1536xf32, #tpu.memory_space<vmem>>, vector<16x1536xf32>,
    %c0_i32_8 = arith.constant 0 : i32
    %10 = arith.cmpi eq, %arg1, %c0_i32_8 : i32
    %11 = arith.extui %10 : i1 to i32
    %c0_i32_9 = arith.constant 0 : i32
    %12 = arith.cmpi ne, %11, %c0_i32_9 : i32
    scf.if %12 {
      %c0_10 = arith.constant 0 : index
      %c0_11 = arith.constant 0 : index
      %13 = vector.load %arg10[%c0_10, %c0_11] : memref<16x1536xf32, #tpu.memory_space<vmem>>, vector<16x1536xf32>
      %c0_12 = arith.constant 0 : index
      %c0_13 = arith.constant 0 : index
      %14 = vector.load %arg4[%c0_12, %c0_13] : memref<1x1536xf32, #tpu.memory_space<vmem>>, vector<1x1536xf32>
      %15 = vector.broadcast %14 : vector<1x1536xf32> to vector<16x1536xf32>
      %16 = arith.addf %13, %15 : vector<16x1536xf32>
      %cst_14 = arith.constant 0.000000e+00 : f32
      %17 = vector.broadcast %cst_14 : f32 to vector<16x1536xf32>
      %18 = arith.cmpf ogt, %16, %17 : vector<16x1536xf32>
      %cst_15 = arith.constant 2.000000e-01 : f32
      %19 = vector.broadcast %cst_15 : f32 to vector<16x1536xf32>
      %20 = arith.mulf %19, %16 : vector<16x1536xf32>
      %21 = arith.select %18, %16, %20 : vector<16x1536xi1>, vector<16x1536xf32>
      %22 = vector.extract_strided_slice %21 {offsets = [0, 0], sizes = [16, 512], strides = [1, 1]} : vector<16x1536xf32> to vector<16x512xf32>
      %23 = arith.truncf %22 : vector<16x512xf32> to vector<16x512xbf16>
      %c0_16 = arith.constant 0 : index
      %c0_17 = arith.constant 0 : index
      %c0_18 = arith.constant 0 : index
      %24 = vector.load %arg5[%c0_16, %c0_17, %c0_18] : memref<3x512x256xbf16, #tpu.memory_space<vmem>>, vector<1x512x256xbf16>
      %25 = vector.shape_cast %24 : vector<1x512x256xbf16> to vector<512x256xbf16>
      %cst_19 = arith.constant dense<0.000000e+00> : vector<16x256xf32>
      %26 = tpu.matmul %23, %25, %cst_19 {dimension_numbers = #tpu.dot_dimension_numbers<[1], [0], [0], [1], [0, 0, 1, 1], [], []>} : vector<16x512xbf16>, vector<512x256xbf16>, vector<16x256xf32> -> vector<16x256xf32>
      %c0_20 = arith.constant 0 : index
      %c0_21 = arith.constant 0 : index
      %c0_22 = arith.constant 0 : index
      %27 = vector.load %arg6[%c0_20, %c0_21, %c0_22] : memref<3x1x256xf32, #tpu.memory_space<vmem>>, vector<1x1x256xf32>
      %28 = vector.shape_cast %27 : vector<1x1x256xf32> to vector<1x256xf32>
      %29 = vector.broadcast %28 : vector<1x256xf32> to vector<16x256xf32>
      %30 = arith.addf %26, %29 : vector<16x256xf32>
      %cst_23 = arith.constant 0.000000e+00 : f32
      %31 = vector.broadcast %cst_23 : f32 to vector<16x256xf32>
      %32 = arith.cmpf ogt, %30, %31 : vector<16x256xf32>
      %cst_24 = arith.constant 2.000000e-01 : f32
      %33 = vector.broadcast %cst_24 : f32 to vector<16x256xf32>
      %34 = arith.mulf %33, %30 : vector<16x256xf32>
      %35 = arith.select %32, %30, %34 : vector<16x256xi1>, vector<16x256xf32>
      %c0_25 = arith.constant 0 : index
      %c0_26 = arith.constant 0 : index
      %c0_27 = arith.constant 0 : index
      %36 = vector.load %arg7[%c0_25, %c0_26, %c0_27] : memref<3x1x256xf32, #tpu.memory_space<vmem>>, vector<1x1x256xf32>
      %37 = vector.shape_cast %36 : vector<1x1x256xf32> to vector<1x256xf32>
      %38 = vector.broadcast %37 : vector<1x256xf32> to vector<16x256xf32>
      %39 = arith.mulf %35, %38 : vector<16x256xf32>
      %cst_28 = arith.constant dense<0.000000e+00> : vector<16xf32>
      %40 = vector.multi_reduction <add>, %39, %cst_28 [1] : vector<16x256xf32> to vector<16xf32>
      %41 = vector.shape_cast %40 : vector<16xf32> to vector<16x1xf32>
      %c0_29 = arith.constant 0 : index
      %c0_30 = arith.constant 0 : index
      %42 = vector.load %arg8[%c0_29, %c0_30] : memref<1x3xf32, #tpu.memory_space<vmem>>, vector<1x1xf32>
      %43 = vector.broadcast %42 : vector<1x1xf32> to vector<16x1xf32>
      %44 = arith.addf %41, %43 : vector<16x1xf32>
      %cst_31 = arith.constant 0.000000e+00 : f32
      %45 = vector.broadcast %cst_31 : f32 to vector<16x1xf32>
      %46 = arith.subf %45, %44 : vector<16x1xf32>
      %47 = math.exp %46 : vector<16x1xf32>
      %cst_32 = arith.constant 1.000000e+00 : f32
      %48 = vector.broadcast %cst_32 : f32 to vector<16x1xf32>
      %49 = arith.addf %48, %47 : vector<16x1xf32>
      %50 = tpu.reciprocal %49 {approx = true} : vector<16x1xf32> -> vector<16x1xf32>
      %c0_33 = arith.constant 0 : index
      %c0_34 = arith.constant 0 : index
      %51 = vector.load %arg9[%c0_33, %c0_34] : memref<16x3xf32, #tpu.memory_space<vmem>>, vector<16x1xf32>
      tpu.vector_store %arg9[%c0_33, %c0_34], %50 {strides = array<i32>} : memref<16x3xf32, #tpu.memory_space<vmem>>, vector<16x1xf32>,
      %52 = vector.extract_strided_slice %21 {offsets = [0, 512], sizes = [16, 512], strides = [1, 1]} : vector<16x1536xf32> to vector<16x512xf32>
      %53 = arith.truncf %52 : vector<16x512xf32> to vector<16x512xbf16>
      %c1 = arith.constant 1 : index
      %c0_35 = arith.constant 0 : index
      %c0_36 = arith.constant 0 : index
      %54 = vector.load %arg5[%c1, %c0_35, %c0_36] : memref<3x512x256xbf16, #tpu.memory_space<vmem>>, vector<1x512x256xbf16>
      %55 = vector.shape_cast %54 : vector<1x512x256xbf16> to vector<512x256xbf16>
      %cst_37 = arith.constant dense<0.000000e+00> : vector<16x256xf32>
      %56 = tpu.matmul %53, %55, %cst_37 {dimension_numbers = #tpu.dot_dimension_numbers<[1], [0], [0], [1], [0, 0, 1, 1], [], []>} : vector<16x512xbf16>, vector<512x256xbf16>, vector<16x256xf32> -> vector<16x256xf32>
      %c1_38 = arith.constant 1 : index
      %c0_39 = arith.constant 0 : index
      %c0_40 = arith.constant 0 : index
      %57 = vector.load %arg6[%c1_38, %c0_39, %c0_40] : memref<3x1x256xf32, #tpu.memory_space<vmem>>, vector<1x1x256xf32>
      %58 = vector.shape_cast %57 : vector<1x1x256xf32> to vector<1x256xf32>
      %59 = vector.broadcast %58 : vector<1x256xf32> to vector<16x256xf32>
      %60 = arith.addf %56, %59 : vector<16x256xf32>
      %cst_41 = arith.constant 0.000000e+00 : f32
      %61 = vector.broadcast %cst_41 : f32 to vector<16x256xf32>
      %62 = arith.cmpf ogt, %60, %61 : vector<16x256xf32>
      %cst_42 = arith.constant 2.000000e-01 : f32
      %63 = vector.broadcast %cst_42 : f32 to vector<16x256xf32>
      %64 = arith.mulf %63, %60 : vector<16x256xf32>
      %65 = arith.select %62, %60, %64 : vector<16x256xi1>, vector<16x256xf32>
      %c1_43 = arith.constant 1 : index
      %c0_44 = arith.constant 0 : index
      %c0_45 = arith.constant 0 : index
      %66 = vector.load %arg7[%c1_43, %c0_44, %c0_45] : memref<3x1x256xf32, #tpu.memory_space<vmem>>, vector<1x1x256xf32>
      %67 = vector.shape_cast %66 : vector<1x1x256xf32> to vector<1x256xf32>
      %68 = vector.broadcast %67 : vector<1x256xf32> to vector<16x256xf32>
      %69 = arith.mulf %65, %68 : vector<16x256xf32>
      %cst_46 = arith.constant dense<0.000000e+00> : vector<16xf32>
      %70 = vector.multi_reduction <add>, %69, %cst_46 [1] : vector<16x256xf32> to vector<16xf32>
      %71 = vector.shape_cast %70 : vector<16xf32> to vector<16x1xf32>
      %c0_47 = arith.constant 0 : index
      %c1_48 = arith.constant 1 : index
      %72 = vector.load %arg8[%c0_47, %c1_48] : memref<1x3xf32, #tpu.memory_space<vmem>>, vector<1x1xf32>
      %73 = vector.broadcast %72 : vector<1x1xf32> to vector<16x1xf32>
      %74 = arith.addf %71, %73 : vector<16x1xf32>
      %cst_49 = arith.constant 0.000000e+00 : f32
      %75 = vector.broadcast %cst_49 : f32 to vector<16x1xf32>
      %76 = arith.subf %75, %74 : vector<16x1xf32>
      %77 = math.exp %76 : vector<16x1xf32>
      %cst_50 = arith.constant 1.000000e+00 : f32
      %78 = vector.broadcast %cst_50 : f32 to vector<16x1xf32>
      %79 = arith.addf %78, %77 : vector<16x1xf32>
      %80 = tpu.reciprocal %79 {approx = true} : vector<16x1xf32> -> vector<16x1xf32>
      %c0_51 = arith.constant 0 : index
      %c1_52 = arith.constant 1 : index
      %81 = vector.load %arg9[%c0_51, %c1_52] : memref<16x3xf32, #tpu.memory_space<vmem>>, vector<16x1xf32>
      tpu.vector_store %arg9[%c0_51, %c1_52], %80 {strides = array<i32>} : memref<16x3xf32, #tpu.memory_space<vmem>>, vector<16x1xf32>,
      %82 = vector.extract_strided_slice %21 {offsets = [0, 1024], sizes = [16, 512], strides = [1, 1]} : vector<16x1536xf32> to vector<16x512xf32>
      %83 = arith.truncf %82 : vector<16x512xf32> to vector<16x512xbf16>
      %c2 = arith.constant 2 : index
      %c0_53 = arith.constant 0 : index
      %c0_54 = arith.constant 0 : index
      %84 = vector.load %arg5[%c2, %c0_53, %c0_54] : memref<3x512x256xbf16, #tpu.memory_space<vmem>>, vector<1x512x256xbf16>
      %85 = vector.shape_cast %84 : vector<1x512x256xbf16> to vector<512x256xbf16>
      %cst_55 = arith.constant dense<0.000000e+00> : vector<16x256xf32>
      %86 = tpu.matmul %83, %85, %cst_55 {dimension_numbers = #tpu.dot_dimension_numbers<[1], [0], [0], [1], [0, 0, 1, 1], [], []>} : vector<16x512xbf16>, vector<512x256xbf16>, vector<16x256xf32> -> vector<16x256xf32>
      %c2_56 = arith.constant 2 : index
      %c0_57 = arith.constant 0 : index
      %c0_58 = arith.constant 0 : index
      %87 = vector.load %arg6[%c2_56, %c0_57, %c0_58] : memref<3x1x256xf32, #tpu.memory_space<vmem>>, vector<1x1x256xf32>
      %88 = vector.shape_cast %87 : vector<1x1x256xf32> to vector<1x256xf32>
      %89 = vector.broadcast %88 : vector<1x256xf32> to vector<16x256xf32>
      %90 = arith.addf %86, %89 : vector<16x256xf32>
      %cst_59 = arith.constant 0.000000e+00 : f32
      %91 = vector.broadcast %cst_59 : f32 to vector<16x256xf32>
      %92 = arith.cmpf ogt, %90, %91 : vector<16x256xf32>
      %cst_60 = arith.constant 2.000000e-01 : f32
      %93 = vector.broadcast %cst_60 : f32 to vector<16x256xf32>
      %94 = arith.mulf %93, %90 : vector<16x256xf32>
      %95 = arith.select %92, %90, %94 : vector<16x256xi1>, vector<16x256xf32>
      %c2_61 = arith.constant 2 : index
      %c0_62 = arith.constant 0 : index
      %c0_63 = arith.constant 0 : index
      %96 = vector.load %arg7[%c2_61, %c0_62, %c0_63] : memref<3x1x256xf32, #tpu.memory_space<vmem>>, vector<1x1x256xf32>
      %97 = vector.shape_cast %96 : vector<1x1x256xf32> to vector<1x256xf32>
      %98 = vector.broadcast %97 : vector<1x256xf32> to vector<16x256xf32>
      %99 = arith.mulf %95, %98 : vector<16x256xf32>
      %cst_64 = arith.constant dense<0.000000e+00> : vector<16xf32>
      %100 = vector.multi_reduction <add>, %99, %cst_64 [1] : vector<16x256xf32> to vector<16xf32>
      %101 = vector.shape_cast %100 : vector<16xf32> to vector<16x1xf32>
      %c0_65 = arith.constant 0 : index
      %c2_66 = arith.constant 2 : index
      %102 = vector.load %arg8[%c0_65, %c2_66] : memref<1x3xf32, #tpu.memory_space<vmem>>, vector<1x1xf32>
      %103 = vector.broadcast %102 : vector<1x1xf32> to vector<16x1xf32>
      %104 = arith.addf %101, %103 : vector<16x1xf32>
      %cst_67 = arith.constant 0.000000e+00 : f32
      %105 = vector.broadcast %cst_67 : f32 to vector<16x1xf32>
      %106 = arith.subf %105, %104 : vector<16x1xf32>
      %107 = math.exp %106 : vector<16x1xf32>
      %cst_68 = arith.constant 1.000000e+00 : f32
      %108 = vector.broadcast %cst_68 : f32 to vector<16x1xf32>
      %109 = arith.addf %108, %107 : vector<16x1xf32>
      %110 = tpu.reciprocal %109 {approx = true} : vector<16x1xf32> -> vector<16x1xf32>
      %c0_69 = arith.constant 0 : index
      %c2_70 = arith.constant 2 : index
      %111 = vector.load %arg9[%c0_69, %c2_70] : memref<16x3xf32, #tpu.memory_space<vmem>>, vector<16x1xf32>
      tpu.vector_store %arg9[%c0_69, %c2_70], %110 {strides = array<i32>} : memref<16x3xf32, #tpu.memory_space<vmem>>, vector<16x1xf32>,
    } else {
    }
    return
  }
  func.func @transform_0(%arg0: i32, %arg1: i32) -> (i32, i32) {
    %c0_i32 = arith.constant 0 : i32
    return %arg0, %arg1 : i32, i32
  }
  func.func @transform_1(%arg0: i32, %arg1: i32) -> (i32, i32) {
    %c0_i32 = arith.constant 0 : i32
    %c0_i32_0 = arith.constant 0 : i32
    return %arg1, %c0_i32 : i32, i32
  }
  func.func @transform_2(%arg0: i32, %arg1: i32) -> (i32, i32) {
    %c0_i32 = arith.constant 0 : i32
    %c0_i32_0 = arith.constant 0 : i32
    %c0_i32_1 = arith.constant 0 : i32
    return %c0_i32, %c0_i32_0 : i32, i32
  }
  func.func @transform_3(%arg0: i32, %arg1: i32) -> (i32, i32, i32) {
    %c0_i32 = arith.constant 0 : i32
    %c0_i32_0 = arith.constant 0 : i32
    %c0_i32_1 = arith.constant 0 : i32
    %c0_i32_2 = arith.constant 0 : i32
    return %c0_i32, %c0_i32_0, %c0_i32_1 : i32, i32, i32
  }
  func.func @transform_4(%arg0: i32, %arg1: i32) -> (i32, i32, i32) {
    %c0_i32 = arith.constant 0 : i32
    %c0_i32_0 = arith.constant 0 : i32
    %c0_i32_1 = arith.constant 0 : i32
    %c0_i32_2 = arith.constant 0 : i32
    return %c0_i32, %c0_i32_0, %c0_i32_1 : i32, i32, i32
  }
  func.func @transform_5(%arg0: i32, %arg1: i32) -> (i32, i32, i32) {
    %c0_i32 = arith.constant 0 : i32
    %c0_i32_0 = arith.constant 0 : i32
    %c0_i32_1 = arith.constant 0 : i32
    %c0_i32_2 = arith.constant 0 : i32
    return %c0_i32, %c0_i32_0, %c0_i32_1 : i32, i32, i32
  }
  func.func @transform_6(%arg0: i32, %arg1: i32) -> (i32, i32) {
    %c0_i32 = arith.constant 0 : i32
    %c0_i32_0 = arith.constant 0 : i32
    %c0_i32_1 = arith.constant 0 : i32
    return %c0_i32, %c0_i32_0 : i32, i32
  }
  func.func @transform_7(%arg0: i32, %arg1: i32) -> (i32, i32) {
    %c0_i32 = arith.constant 0 : i32
    %c0_i32_0 = arith.constant 0 : i32
    return %arg0, %c0_i32 : i32, i32
  }
}

module attributes {stable_mosaic.version = 11 : i64} {
  func.func @kernel(%arg0: i32, %arg1: i32, %arg2: memref<16x256xf32, #tpu.memory_space<vmem>>, %arg3: memref<256x1536xbf16, #tpu.memory_space<vmem>>, %arg4: memref<1x1536xf32, #tpu.memory_space<vmem>>, %arg5: memref<3x512x256xbf16, #tpu.memory_space<vmem>>, %arg6: memref<3x1x256xf32, #tpu.memory_space<vmem>>, %arg7: memref<3x1x256xf32, #tpu.memory_space<vmem>>, %arg8: memref<1x3xf32, #tpu.memory_space<vmem>>, %arg9: memref<16x3xf32, #tpu.memory_space<vmem>>, %arg10: memref<16x1536xf32, #tpu.memory_space<vmem>>) attributes {dimension_semantics = [#tpu.dimension_semantics<parallel>, #tpu.dimension_semantics<arbitrary>], iteration_bounds = array<i64: 1, 1>, scalar_prefetch = 0 : i64, scratch_operands = 1 : i64, tpu.core_type = #tpu.core_type<tc>, window_params = [{transform_indices = @transform_0, window_bounds = array<i64: 16, 256>}, {transform_indices = @transform_1, window_bounds = array<i64: 256, 1536>}, {pipeline_mode = #tpu.pipeline_mode<synchronous>, transform_indices = @transform_2, window_bounds = array<i64: 1, 1536>}, {pipeline_mode = #tpu.pipeline_mode<synchronous>, transform_indices = @transform_3, window_bounds = array<i64: 3, 512, 256>}, {pipeline_mode = #tpu.pipeline_mode<synchronous>, transform_indices = @transform_4, window_bounds = array<i64: 3, 1, 256>}, {pipeline_mode = #tpu.pipeline_mode<synchronous>, transform_indices = @transform_5, window_bounds = array<i64: 3, 1, 256>}, {pipeline_mode = #tpu.pipeline_mode<synchronous>, transform_indices = @transform_6, window_bounds = array<i64: 1, 3>}, {transform_indices = @transform_7, window_bounds = array<i64: 16, 3>}]} {
    %c0_i32 = arith.constant 0 : i32
    %0 = arith.cmpi eq, %arg1, %c0_i32 : i32
    %1 = arith.extui %0 : i1 to i32
    %c0_i32_0 = arith.constant 0 : i32
    %2 = arith.cmpi ne, %1, %c0_i32_0 : i32
    scf.if %2 {
      %cst_10 = arith.constant 0.000000e+00 : f32
      %13 = vector.broadcast %cst_10 : f32 to vector<16x1536xf32>
      %c0_11 = arith.constant 0 : index
      %c0_12 = arith.constant 0 : index
      %14 = vector.load %arg10[%c0_11, %c0_12] : memref<16x1536xf32, #tpu.memory_space<vmem>>, vector<16x1536xf32>
      tpu.vector_store %arg10[%c0_11, %c0_12], %13 {strides = array<i32>} : memref<16x1536xf32, #tpu.memory_space<vmem>>, vector<16x1536xf32>,
    } else {
    }
    %c0 = arith.constant 0 : index
    %c0_1 = arith.constant 0 : index
    %3 = vector.load %arg10[%c0, %c0_1] : memref<16x1536xf32, #tpu.memory_space<vmem>>, vector<16x1536xf32>
    %c0_2 = arith.constant 0 : index
    %c0_3 = arith.constant 0 : index
    %4 = vector.load %arg2[%c0_2, %c0_3] : memref<16x256xf32, #tpu.memory_space<vmem>>, vector<16x256xf32>
    %5 = arith.truncf %4 : vector<16x256xf32> to vector<16x256xbf16>
    %c0_4 = arith.constant 0 : index
    %c0_5 = arith.constant 0 : index
    %6 = vector.load %arg3[%c0_4, %c0_5] : memref<256x1536xbf16, #tpu.memory_space<vmem>>, vector<256x1536xbf16>
    %cst = arith.constant dense<0.000000e+00> : vector<16x1536xf32>
    %7 = tpu.matmul %5, %6, %cst {dimension_numbers = #tpu.dot_dimension_numbers<[1], [0], [0], [1], [0, 0, 1, 1], [], []>} : vector<16x256xbf16>, vector<256x1536xbf16>, vector<16x1536xf32> -> vector<16x1536xf32>
    %8 = arith.addf %3, %7 : vector<16x1536xf32>
    %c0_6 = arith.constant 0 : index
    %c0_7 = arith.constant 0 : index
    %9 = vector.load %arg10[%c0_6, %c0_7] : memref<16x1536xf32, #tpu.memory_space<vmem>>, vector<16x1536xf32>
    tpu.vector_store %arg10[%c0_6, %c0_7], %8 {strides = array<i32>} : memref<16x1536xf32, #tpu.memory_space<vmem>>, vector<16x1536xf32>,
    %c0_i32_8 = arith.constant 0 : i32
    %10 = arith.cmpi eq, %arg1, %c0_i32_8 : i32
    %11 = arith.extui %10 : i1 to i32
    %c0_i32_9 = arith.constant 0 : i32
    %12 = arith.cmpi ne, %11, %c0_i32_9 : i32
    scf.if %12 {
      %c0_10 = arith.constant 0 : index
      %c0_11 = arith.constant 0 : index
      %13 = vector.load %arg10[%c0_10, %c0_11] : memref<16x1536xf32, #tpu.memory_space<vmem>>, vector<16x1536xf32>
      %c0_12 = arith.constant 0 : index
      %c0_13 = arith.constant 0 : index
      %14 = vector.load %arg4[%c0_12, %c0_13] : memref<1x1536xf32, #tpu.memory_space<vmem>>, vector<1x1536xf32>
      %15 = vector.broadcast %14 : vector<1x1536xf32> to vector<16x1536xf32>
      %16 = arith.addf %13, %15 : vector<16x1536xf32>
      %cst_14 = arith.constant 0.000000e+00 : f32
      %17 = vector.broadcast %cst_14 : f32 to vector<16x1536xf32>
      %18 = arith.cmpf ogt, %16, %17 : vector<16x1536xf32>
      %cst_15 = arith.constant 2.000000e-01 : f32
      %19 = vector.broadcast %cst_15 : f32 to vector<16x1536xf32>
      %20 = arith.mulf %19, %16 : vector<16x1536xf32>
      %21 = arith.select %18, %16, %20 : vector<16x1536xi1>, vector<16x1536xf32>
      %22 = vector.extract_strided_slice %21 {offsets = [0, 0], sizes = [16, 512], strides = [1, 1]} : vector<16x1536xf32> to vector<16x512xf32>
      %23 = arith.truncf %22 : vector<16x512xf32> to vector<16x512xbf16>
      %c0_16 = arith.constant 0 : index
      %c0_17 = arith.constant 0 : index
      %c0_18 = arith.constant 0 : index
      %24 = vector.load %arg5[%c0_16, %c0_17, %c0_18] : memref<3x512x256xbf16, #tpu.memory_space<vmem>>, vector<1x512x256xbf16>
      %25 = vector.shape_cast %24 : vector<1x512x256xbf16> to vector<512x256xbf16>
      %cst_19 = arith.constant dense<0.000000e+00> : vector<16x256xf32>
      %26 = tpu.matmul %23, %25, %cst_19 {dimension_numbers = #tpu.dot_dimension_numbers<[1], [0], [0], [1], [0, 0, 1, 1], [], []>} : vector<16x512xbf16>, vector<512x256xbf16>, vector<16x256xf32> -> vector<16x256xf32>
      %c0_20 = arith.constant 0 : index
      %c0_21 = arith.constant 0 : index
      %c0_22 = arith.constant 0 : index
      %27 = vector.load %arg6[%c0_20, %c0_21, %c0_22] : memref<3x1x256xf32, #tpu.memory_space<vmem>>, vector<1x1x256xf32>
      %28 = vector.shape_cast %27 : vector<1x1x256xf32> to vector<1x256xf32>
      %29 = vector.broadcast %28 : vector<1x256xf32> to vector<16x256xf32>
      %30 = arith.addf %26, %29 : vector<16x256xf32>
      %cst_23 = arith.constant 0.000000e+00 : f32
      %31 = vector.broadcast %cst_23 : f32 to vector<16x256xf32>
      %32 = arith.cmpf ogt, %30, %31 : vector<16x256xf32>
      %cst_24 = arith.constant 2.000000e-01 : f32
      %33 = vector.broadcast %cst_24 : f32 to vector<16x256xf32>
      %34 = arith.mulf %33, %30 : vector<16x256xf32>
      %35 = arith.select %32, %30, %34 : vector<16x256xi1>, vector<16x256xf32>
      %c0_25 = arith.constant 0 : index
      %c0_26 = arith.constant 0 : index
      %c0_27 = arith.constant 0 : index
      %36 = vector.load %arg7[%c0_25, %c0_26, %c0_27] : memref<3x1x256xf32, #tpu.memory_space<vmem>>, vector<1x1x256xf32>
      %37 = vector.shape_cast %36 : vector<1x1x256xf32> to vector<1x256xf32>
      %38 = vector.broadcast %37 : vector<1x256xf32> to vector<16x256xf32>
      %39 = arith.mulf %35, %38 : vector<16x256xf32>
      %cst_28 = arith.constant dense<0.000000e+00> : vector<16xf32>
      %40 = vector.multi_reduction <add>, %39, %cst_28 [1] : vector<16x256xf32> to vector<16xf32>
      %41 = vector.shape_cast %40 : vector<16xf32> to vector<16x1xf32>
      %c0_29 = arith.constant 0 : index
      %c0_30 = arith.constant 0 : index
      %42 = vector.load %arg8[%c0_29, %c0_30] : memref<1x3xf32, #tpu.memory_space<vmem>>, vector<1x1xf32>
      %43 = vector.broadcast %42 : vector<1x1xf32> to vector<16x1xf32>
      %44 = arith.addf %41, %43 : vector<16x1xf32>
      %cst_31 = arith.constant 0.000000e+00 : f32
      %45 = vector.broadcast %cst_31 : f32 to vector<16x1xf32>
      %46 = arith.subf %45, %44 : vector<16x1xf32>
      %47 = math.exp %46 : vector<16x1xf32>
      %cst_32 = arith.constant 1.000000e+00 : f32
      %48 = vector.broadcast %cst_32 : f32 to vector<16x1xf32>
      %49 = arith.addf %48, %47 : vector<16x1xf32>
      %50 = tpu.reciprocal %49 {approx = true} : vector<16x1xf32> -> vector<16x1xf32>
      %c0_33 = arith.constant 0 : index
      %c0_34 = arith.constant 0 : index
      %51 = vector.load %arg9[%c0_33, %c0_34] : memref<16x3xf32, #tpu.memory_space<vmem>>, vector<16x1xf32>
      tpu.vector_store %arg9[%c0_33, %c0_34], %50 {strides = array<i32>} : memref<16x3xf32, #tpu.memory_space<vmem>>, vector<16x1xf32>,
      %52 = vector.extract_strided_slice %21 {offsets = [0, 512], sizes = [16, 512], strides = [1, 1]} : vector<16x1536xf32> to vector<16x512xf32>
      %53 = arith.truncf %52 : vector<16x512xf32> to vector<16x512xbf16>
      %c1 = arith.constant 1 : index
      %c0_35 = arith.constant 0 : index
      %c0_36 = arith.constant 0 : index
      %54 = vector.load %arg5[%c1, %c0_35, %c0_36] : memref<3x512x256xbf16, #tpu.memory_space<vmem>>, vector<1x512x256xbf16>
      %55 = vector.shape_cast %54 : vector<1x512x256xbf16> to vector<512x256xbf16>
      %cst_37 = arith.constant dense<0.000000e+00> : vector<16x256xf32>
      %56 = tpu.matmul %53, %55, %cst_37 {dimension_numbers = #tpu.dot_dimension_numbers<[1], [0], [0], [1], [0, 0, 1, 1], [], []>} : vector<16x512xbf16>, vector<512x256xbf16>, vector<16x256xf32> -> vector<16x256xf32>
      %c1_38 = arith.constant 1 : index
      %c0_39 = arith.constant 0 : index
      %c0_40 = arith.constant 0 : index
      %57 = vector.load %arg6[%c1_38, %c0_39, %c0_40] : memref<3x1x256xf32, #tpu.memory_space<vmem>>, vector<1x1x256xf32>
      %58 = vector.shape_cast %57 : vector<1x1x256xf32> to vector<1x256xf32>
      %59 = vector.broadcast %58 : vector<1x256xf32> to vector<16x256xf32>
      %60 = arith.addf %56, %59 : vector<16x256xf32>
      %cst_41 = arith.constant 0.000000e+00 : f32
      %61 = vector.broadcast %cst_41 : f32 to vector<16x256xf32>
      %62 = arith.cmpf ogt, %60, %61 : vector<16x256xf32>
      %cst_42 = arith.constant 2.000000e-01 : f32
      %63 = vector.broadcast %cst_42 : f32 to vector<16x256xf32>
      %64 = arith.mulf %63, %60 : vector<16x256xf32>
      %65 = arith.select %62, %60, %64 : vector<16x256xi1>, vector<16x256xf32>
      %c1_43 = arith.constant 1 : index
      %c0_44 = arith.constant 0 : index
      %c0_45 = arith.constant 0 : index
      %66 = vector.load %arg7[%c1_43, %c0_44, %c0_45] : memref<3x1x256xf32, #tpu.memory_space<vmem>>, vector<1x1x256xf32>
      %67 = vector.shape_cast %66 : vector<1x1x256xf32> to vector<1x256xf32>
      %68 = vector.broadcast %67 : vector<1x256xf32> to vector<16x256xf32>
      %69 = arith.mulf %65, %68 : vector<16x256xf32>
      %cst_46 = arith.constant dense<0.000000e+00> : vector<16xf32>
      %70 = vector.multi_reduction <add>, %69, %cst_46 [1] : vector<16x256xf32> to vector<16xf32>
      %71 = vector.shape_cast %70 : vector<16xf32> to vector<16x1xf32>
      %c0_47 = arith.constant 0 : index
      %c1_48 = arith.constant 1 : index
      %72 = vector.load %arg8[%c0_47, %c1_48] : memref<1x3xf32, #tpu.memory_space<vmem>>, vector<1x1xf32>
      %73 = vector.broadcast %72 : vector<1x1xf32> to vector<16x1xf32>
      %74 = arith.addf %71, %73 : vector<16x1xf32>
      %cst_49 = arith.constant 0.000000e+00 : f32
      %75 = vector.broadcast %cst_49 : f32 to vector<16x1xf32>
      %76 = arith.subf %75, %74 : vector<16x1xf32>
      %77 = math.exp %76 : vector<16x1xf32>
      %cst_50 = arith.constant 1.000000e+00 : f32
      %78 = vector.broadcast %cst_50 : f32 to vector<16x1xf32>
      %79 = arith.addf %78, %77 : vector<16x1xf32>
      %80 = tpu.reciprocal %79 {approx = true} : vector<16x1xf32> -> vector<16x1xf32>
      %c0_51 = arith.constant 0 : index
      %c1_52 = arith.constant 1 : index
      %81 = vector.load %arg9[%c0_51, %c1_52] : memref<16x3xf32, #tpu.memory_space<vmem>>, vector<16x1xf32>
      tpu.vector_store %arg9[%c0_51, %c1_52], %80 {strides = array<i32>} : memref<16x3xf32, #tpu.memory_space<vmem>>, vector<16x1xf32>,
      %82 = vector.extract_strided_slice %21 {offsets = [0, 1024], sizes = [16, 512], strides = [1, 1]} : vector<16x1536xf32> to vector<16x512xf32>
      %83 = arith.truncf %82 : vector<16x512xf32> to vector<16x512xbf16>
      %c2 = arith.constant 2 : index
      %c0_53 = arith.constant 0 : index
      %c0_54 = arith.constant 0 : index
      %84 = vector.load %arg5[%c2, %c0_53, %c0_54] : memref<3x512x256xbf16, #tpu.memory_space<vmem>>, vector<1x512x256xbf16>
      %85 = vector.shape_cast %84 : vector<1x512x256xbf16> to vector<512x256xbf16>
      %cst_55 = arith.constant dense<0.000000e+00> : vector<16x256xf32>
      %86 = tpu.matmul %83, %85, %cst_55 {dimension_numbers = #tpu.dot_dimension_numbers<[1], [0], [0], [1], [0, 0, 1, 1], [], []>} : vector<16x512xbf16>, vector<512x256xbf16>, vector<16x256xf32> -> vector<16x256xf32>
      %c2_56 = arith.constant 2 : index
      %c0_57 = arith.constant 0 : index
      %c0_58 = arith.constant 0 : index
      %87 = vector.load %arg6[%c2_56, %c0_57, %c0_58] : memref<3x1x256xf32, #tpu.memory_space<vmem>>, vector<1x1x256xf32>
      %88 = vector.shape_cast %87 : vector<1x1x256xf32> to vector<1x256xf32>
      %89 = vector.broadcast %88 : vector<1x256xf32> to vector<16x256xf32>
      %90 = arith.addf %86, %89 : vector<16x256xf32>
      %cst_59 = arith.constant 0.000000e+00 : f32
      %91 = vector.broadcast %cst_59 : f32 to vector<16x256xf32>
      %92 = arith.cmpf ogt, %90, %91 : vector<16x256xf32>
      %cst_60 = arith.constant 2.000000e-01 : f32
      %93 = vector.broadcast %cst_60 : f32 to vector<16x256xf32>
      %94 = arith.mulf %93, %90 : vector<16x256xf32>
      %95 = arith.select %92, %90, %94 : vector<16x256xi1>, vector<16x256xf32>
      %c2_61 = arith.constant 2 : index
      %c0_62 = arith.constant 0 : index
      %c0_63 = arith.constant 0 : index
      %96 = vector.load %arg7[%c2_61, %c0_62, %c0_63] : memref<3x1x256xf32, #tpu.memory_space<vmem>>, vector<1x1x256xf32>
      %97 = vector.shape_cast %96 : vector<1x1x256xf32> to vector<1x256xf32>
      %98 = vector.broadcast %97 : vector<1x256xf32> to vector<16x256xf32>
      %99 = arith.mulf %95, %98 : vector<16x256xf32>
      %cst_64 = arith.constant dense<0.000000e+00> : vector<16xf32>
      %100 = vector.multi_reduction <add>, %99, %cst_64 [1] : vector<16x256xf32> to vector<16xf32>
      %101 = vector.shape_cast %100 : vector<16xf32> to vector<16x1xf32>
      %c0_65 = arith.constant 0 : index
      %c2_66 = arith.constant 2 : index
      %102 = vector.load %arg8[%c0_65, %c2_66] : memref<1x3xf32, #tpu.memory_space<vmem>>, vector<1x1xf32>
      %103 = vector.broadcast %102 : vector<1x1xf32> to vector<16x1xf32>
      %104 = arith.addf %101, %103 : vector<16x1xf32>
      %cst_67 = arith.constant 0.000000e+00 : f32
      %105 = vector.broadcast %cst_67 : f32 to vector<16x1xf32>
      %106 = arith.subf %105, %104 : vector<16x1xf32>
      %107 = math.exp %106 : vector<16x1xf32>
      %cst_68 = arith.constant 1.000000e+00 : f32
      %108 = vector.broadcast %cst_68 : f32 to vector<16x1xf32>
      %109 = arith.addf %108, %107 : vector<16x1xf32>
      %110 = tpu.reciprocal %109 {approx = true} : vector<16x1xf32> -> vector<16x1xf32>
      %c0_69 = arith.constant 0 : index
      %c2_70 = arith.constant 2 : index
      %111 = vector.load %arg9[%c0_69, %c2_70] : memref<16x3xf32, #tpu.memory_space<vmem>>, vector<16x1xf32>
      tpu.vector_store %arg9[%c0_69, %c2_70], %110 {strides = array<i32>} : memref<16x3xf32, #tpu.memory_space<vmem>>, vector<16x1xf32>,
    } else {
    }
    return
  }
  func.func @transform_0(%arg0: i32, %arg1: i32) -> (i32, i32) {
    %c0_i32 = arith.constant 0 : i32
    return %arg0, %arg1 : i32, i32
  }
  func.func @transform_1(%arg0: i32, %arg1: i32) -> (i32, i32) {
    %c0_i32 = arith.constant 0 : i32
    %c0_i32_0 = arith.constant 0 : i32
    return %arg1, %c0_i32 : i32, i32
  }
  func.func @transform_2(%arg0: i32, %arg1: i32) -> (i32, i32) {
    %c0_i32 = arith.constant 0 : i32
    %c0_i32_0 = arith.constant 0 : i32
    %c0_i32_1 = arith.constant 0 : i32
    return %c0_i32, %c0_i32_0 : i32, i32
  }
  func.func @transform_3(%arg0: i32, %arg1: i32) -> (i32, i32, i32) {
    %c0_i32 = arith.constant 0 : i32
    %c0_i32_0 = arith.constant 0 : i32
    %c0_i32_1 = arith.constant 0 : i32
    %c0_i32_2 = arith.constant 0 : i32
    return %c0_i32, %c0_i32_0, %c0_i32_1 : i32, i32, i32
  }
  func.func @transform_4(%arg0: i32, %arg1: i32) -> (i32, i32, i32) {
    %c0_i32 = arith.constant 0 : i32
    %c0_i32_0 = arith.constant 0 : i32
    %c0_i32_1 = arith.constant 0 : i32
    %c0_i32_2 = arith.constant 0 : i32
    return %c0_i32, %c0_i32_0, %c0_i32_1 : i32, i32, i32
  }
  func.func @transform_5(%arg0: i32, %arg1: i32) -> (i32, i32, i32) {
    %c0_i32 = arith.constant 0 : i32
    %c0_i32_0 = arith.constant 0 : i32
    %c0_i32_1 = arith.constant 0 : i32
    %c0_i32_2 = arith.constant 0 : i32
    return %c0_i32, %c0_i32_0, %c0_i32_1 : i32, i32, i32
  }
  func.func @transform_6(%arg0: i32, %arg1: i32) -> (i32, i32) {
    %c0_i32 = arith.constant 0 : i32
    %c0_i32_0 = arith.constant 0 : i32
    %c0_i32_1 = arith.constant 0 : i32
    return %c0_i32, %c0_i32_0 : i32, i32
  }
  func.func @transform_7(%arg0: i32, %arg1: i32) -> (i32, i32) {
    %c0_i32 = arith.constant 0 : i32
    %c0_i32_0 = arith.constant 0 : i32
    return %arg0, %c0_i32 : i32, i32
  }
}

</mosaic_0001>

<bundles_post_ra>
// kernel: tpu_custom_call.1
= control target key start
LH: loop header
LB: loop body
LE: loop exit
PB: predicated region body
PF: predicated region fallthrough
CT: control target
= control target key end

     0   :  { %12 = vsyncpa [#allocation4], 0  ;;  %s4713_s0 = inlined_call_operand.hbm [shape: f32[16,256], index: 0, kind: input, shape index: {}]   ;;  %s4714_s1 = inlined_call_operand.hbm [shape: bf16[256,1536], index: 1, kind: input, shape index: {}]   ;;  %s4715_s2 = inlined_call_operand.hbm [shape: f32[1,1536], index: 2, kind: input, shape index: {}]   ;;  %s4716_s3 = inlined_call_operand.hbm [shape: bf16[3,512,256], index: 3, kind: input, shape index: {}]   ;;  %s4717_s4 = inlined_call_operand.vmem [shape: f32[3,1,256], index: 4, kind: input, shape index: {}]   ;;  %s4718_s5 = inlined_call_operand.hbm [shape: f32[3,1,256], index: 5, kind: input, shape index: {}]   ;;  %s4719_s6 = inlined_call_operand.vmem [shape: f32[1,3], index: 6, kind: input, shape index: {}]   ;;  %s4720_s7 = inlined_call_operand.vmem [shape: f32[16,3], index: 7, kind: output, shape index: {}]  }
   0x1   :  { %13 = vsyncpa [#allocation6], 0 }
   0x2   :  { %14 = vsyncpa [#allocation9], 0  ;;  %s4542_s24 = smov [#allocation5]  }
   0x3   :  { %s32_s25 = sshll.u32 %s4542_s24, 4  ;;  %s33_s25 = int_to_ptr.vmem [resolvable:$true] %s32_s25 }
   0x4   :  { %s4444_s26 = scalar_lea.vmem %s33_s25, 24576  ;;  %p4449_p1 = scmp.lt.s32.totalorder %s33_s25, %s33_s25 }
   0x5   :  { %p4445_p0 = scmp.ne.s32.totalorder %s33_s25, %s4444_s26  ;;  %p4450_p2 = scmp.lt.s32.totalorder %s4444_s26, %s4444_s26 }
   0x7   :  { %p4451_p3 = por %p4450_p2, %p4449_p1 }
   0x9   :  { %p4452_p4 = pnand %p4451_p3, %p4445_p0 }
   0xb   :  { %4455 = shalt.err (!%p4452_p4)
}
   0xc   :  { %s4543_s27 = smov 768   ;;  %s4544_s28 = smov 48  }
   0xd   :  { %38 = dma.hbm_to_vmem [thread:$0]  %s4714_s1, 24576, %s33_s25, [#allocation6], %s4543_s27, %s4543_s27, %s4544_s28  }
   0xe   :  { %s4545_s8 = smov [#allocation8]  }
   0xf   :  { %s54_s9 = sshll.u32 %s4545_s8, 4  ;;  %s55_s9 = int_to_ptr.vmem [resolvable:$true] %s54_s9 }
  0x10   :  { %s4464_s10 = scalar_lea.vmem %s55_s9, 24576  ;;  %p4469_p6 = scmp.lt.s32.totalorder %s55_s9, %s55_s9 }
  0x11   :  { %p4465_p5 = scmp.ne.s32.totalorder %s55_s9, %s4464_s10  ;;  %p4470_p7 = scmp.lt.s32.totalorder %s4464_s10, %s4464_s10 }
  0x13   :  { %p4471_p8 = por %p4470_p7, %p4469_p6 }
  0x15   :  { %p4472_p9 = pnand %p4471_p8, %p4465_p5 }
  0x17   :  { %4475 = shalt.err (!%p4472_p9)
}
  0x18   :  { %s4546_s11 = smov 128   ;;  %s4547_s12 = smov 8  }
  0x19   :  { %60 = dma.hbm_to_vmem [thread:$0]  %s4716_s3, 24576, %s55_s9, [#allocation9], %s4546_s11, %s4546_s11, %s4547_s12  }
  0x1a   :  { %s4548_s15 = smov [#allocation3]  }
  0x1b   :  { %s20_s16 = sshll.u32 %s4548_s15, 4  ;;  %s21_s16 = int_to_ptr.vmem [resolvable:$true] %s20_s16 }
  0x1c   :  { %s4484_s1 = scalar_lea.vmem %s21_s16, 512  ;;  %p4489_p11 = scmp.lt.s32.totalorder %s21_s16, %s21_s16 }
  0x1d   :  { %p4485_p10 = scmp.ne.s32.totalorder %s21_s16, %s4484_s1  ;;  %p4490_p12 = scmp.lt.s32.totalorder %s4484_s1, %s4484_s1 }
  0x1f   :  { %p4491_p13 = por %p4490_p12, %p4489_p11 }
  0x21   :  { %p4492_p0 = pnand %p4491_p13, %p4485_p10 }
  0x23   :  { %4495 = shalt.err (!%p4492_p0)
}
  0x24   :  { %s4549_s17 = smov 256   ;;  %s4550_s18 = smov 16  }
  0x25   :  { %26 = dma.hbm_to_vmem [thread:$0]  %s4713_s0, 512, %s21_s16, [#allocation4], %s4549_s17, %s4549_s17, %s4550_s18  }
  0x26   :  { %s4551_s21 = smov [#allocation7]   ;;  %s4552_s3 = smov [#allocation10]  }
  0x27   :  { %s45_s22 = sshll.u32 %s4551_s21, 4  ;;  %s68_s23 = sshll.u32 %s4552_s3, 4  ;;  %s46_s22 = int_to_ptr.vmem [resolvable:$true] %s45_s22  ;;  %s69_s23 = int_to_ptr.vmem [resolvable:$true] %s68_s23 }
  0x28   :  { %s4504_s24 = scalar_lea.vmem %s46_s22, 192  ;;  %p4509_p2 = scmp.lt.s32.totalorder %s46_s22, %s46_s22 }
  0x29   :  { %p4505_p1 = scmp.ne.s32.totalorder %s46_s22, %s4504_s24  ;;  %p4510_p3 = scmp.lt.s32.totalorder %s4504_s24, %s4504_s24 }
  0x2b   :  { %p4511_p4 = por %p4510_p3, %p4509_p2 }
  0x2d   :  { %p4512_p5 = pnand %p4511_p4, %p4505_p1 }
  0x2f   :  { %4515 = shalt.err (!%p4512_p5)
}
  0x30   :  { %48 = dma.hbm_to_vmem [thread:$0]  %s4715_s2, 192, %s46_s22, [#allocation6]  }
  0x31   :  { %s4524_s27 = scalar_lea.vmem %s69_s23, 96  ;;  %p4529_p7 = scmp.lt.s32.totalorder %s69_s23, %s69_s23 }
  0x32   :  { %p4525_p6 = scmp.ne.s32.totalorder %s69_s23, %s4524_s27  ;;  %p4530_p8 = scmp.lt.s32.totalorder %s4524_s27, %s4524_s27 }
  0x34   :  { %p4531_p9 = por %p4530_p8, %p4529_p7 }
  0x36   :  { %p4532_p10 = pnand %p4531_p9, %p4525_p6 }
  0x38   :  { %4535 = shalt.err (!%p4532_p10)
}
  0x39   :  { %s4553_s0 = smov 32   ;;  %s4554_s28 = smov 2  }
  0x3a   :  { %74 = dma.hbm_to_vmem [thread:$0]  %s4718_s5, 96, %s69_s23, [#allocation9], %s4553_s0, %s4553_s0, %s4554_s28  }
  0x3b   :  { %4536 = dma.done.wait [#allocation4], 512  }
  0x3c   :  { %4537 = vsyncadd [#allocation4], 4294966784 }
  0x3d   :  { %4538 = dma.done.wait [#allocation6], 24768  }
  0x3e   :  { %4539 = vsyncadd [#allocation6], 4294942528 }
  0x3f   :  { %4540 = dma.done.wait [#allocation9], 24672  }
  0x40   :  { %4541 = vsyncadd [#allocation9], 4294942624  ;;  %v3836_v0 = vld [vmem:[#allocation5 + $0x2a4] ss:$48 sps:$4 sm:$0xff]   ;;  %v3838_v1 = vld [vmem:[#allocation5 + $0x2ac] ss:$48 sps:$4 sm:$0xff]  }
  0x41   :  { %1302 = vmatprep.subr.bf16.mxu0 %v3836_v0  ;;  %v3840_v2 = vld [vmem:[#allocation5 + $0x2a0] ss:$48 sps:$4 sm:$0xff]   ;;  %v3841_v3 = vld [vmem:[#allocation5 + $0x2a8] ss:$48 sps:$4 sm:$0xff]   ;;  %1345 = vmatprep.subr.bf16.mxu1 %v3838_v1  ;;  %v3842_v4 = vld [vmem:[#allocation5 + $0x244] ss:$48 sps:$4 sm:$0xff]  }
  0x42   :  { %1303 = vmatpush1.bf16.msra.mxu0 %v3840_v2  ;;  %1346 = vmatpush1.bf16.msra.mxu1 %v3841_v3  ;;  %v3844_v5 = vld [vmem:[#allocation5 + $0x24c] ss:$48 sps:$4 sm:$0xff]   ;;  %v3846_v6 = vld [vmem:[#allocation5 + $0x240] ss:$48 sps:$4 sm:$0xff]   ;;  %v3847_v7 = vld [vmem:[#allocation5 + $0x248] ss:$48 sps:$4 sm:$0xff]  }
  0x43   :  { %1304 = vmatprep.subr.bf16.mxu0 %v3842_v4  ;;  %1347 = vmatprep.subr.bf16.mxu1 %v3844_v5  ;;  %v3848_v8 = vld [vmem:[#allocation5 + $0x1e4] ss:$48 sps:$4 sm:$0xff]   ;;  %v3850_v9 = vld [vmem:[#allocation5 + $0x1ec] ss:$48 sps:$4 sm:$0xff]   ;;  %v3852_v10 = vld [vmem:[#allocation5 + $0x1e0] ss:$48 sps:$4 sm:$0xff]  }
  0x44   :  { %v3853_v11 = vld [vmem:[#allocation5 + $0x1e8] ss:$48 sps:$4 sm:$0xff]   ;;  %v3854_v12 = vld [vmem:[#allocation5 + $0x184] ss:$48 sps:$4 sm:$0xff]   ;;  %v3856_v13 = vld [vmem:[#allocation5 + $0x18c] ss:$48 sps:$4 sm:$0xff]  }
  0x45   :  { %v3858_v14 = vld [vmem:[#allocation5 + $0x180] ss:$48 sps:$4 sm:$0xff]   ;;  %v3859_v15 = vld [vmem:[#allocation5 + $0x188] ss:$48 sps:$4 sm:$0xff]   ;;  %v3860_v16 = vld [vmem:[#allocation5 + $0x124] ss:$48 sps:$4 sm:$0xff]  }
  0x46   :  { %1305 = vmatpush1.bf16.msra.mxu0 %v3846_v6  ;;  %1348 = vmatpush1.bf16.msra.mxu1 %v3847_v7  ;;  %v3862_v17 = vld [vmem:[#allocation5 + $0x12c] ss:$48 sps:$4 sm:$0xff]   ;;  %v3864_v18 = vld [vmem:[#allocation5 + $0x120] ss:$48 sps:$4 sm:$0xff]   ;;  %v3865_v19 = vld [vmem:[#allocation5 + $0x128] ss:$48 sps:$4 sm:$0xff]  }
  0x47   :  { %1306 = vmatprep.subr.bf16.mxu0 %v3848_v8  ;;  %1349 = vmatprep.subr.bf16.mxu1 %v3850_v9  ;;  %v3866_v20 = vld [vmem:[#allocation5 + $0xc4] ss:$48 sps:$4 sm:$0xff]   ;;  %v3868_v21 = vld [vmem:[#allocation5 + $0xcc] ss:$48 sps:$4 sm:$0xff]   ;;  %v3870_v22 = vld [vmem:[#allocation5 + $0xc0] ss:$48 sps:$4 sm:$0xff]  }
  0x48   :  { %v3871_v23 = vld [vmem:[#allocation5 + $0xc8] ss:$48 sps:$4 sm:$0xff]   ;;  %v3872_v24 = vld [vmem:[#allocation5 + $0x64] ss:$48 sps:$4 sm:$0xff]   ;;  %v3874_v25 = vld [vmem:[#allocation5 + $0x6c] ss:$48 sps:$4 sm:$0xff]  }
  0x49   :  { %v3876_v26 = vld [vmem:[#allocation5 + $0x60] ss:$48 sps:$4 sm:$0xff]   ;;  %v3877_v27 = vld [vmem:[#allocation5 + $0x68] ss:$48 sps:$4 sm:$0xff]   ;;  %v3878_v28 = vld [vmem:[#allocation5 + $0x4] ss:$48 sps:$4 sm:$0xff]  }
  0x4a   :  { %1307 = vmatpush1.bf16.msra.mxu0 %v3852_v10  ;;  %1350 = vmatpush1.bf16.msra.mxu1 %v3853_v11  ;;  %v3880_v29 = vld [vmem:[#allocation5 + $0xc] ss:$48 sps:$4 sm:$0xff]   ;;  %v3882_v30 = vld [vmem:[#allocation5] ss:$48 sps:$4 sm:$0xff]   ;;  %v3883_v31 = vld [vmem:[#allocation5 + $0x8] ss:$48 sps:$4 sm:$0xff]  }
  0x4b   :  { %1308 = vmatprep.subr.bf16.mxu0 %v3854_v12  ;;  %1351 = vmatprep.subr.bf16.mxu1 %v3856_v13  ;;  %v3884_v32 = vld [vmem:[#allocation5 + $0x5a4] ss:$48 sps:$4 sm:$0xff]   ;;  %v3886_v33 = vld [vmem:[#allocation5 + $0x5ac] ss:$48 sps:$4 sm:$0xff]   ;;  %v3888_v34 = vld [vmem:[#allocation5 + $0x5a0] ss:$48 sps:$4 sm:$0xff]  }
  0x4c   :  { %v3889_v35 = vld [vmem:[#allocation5 + $0x5a8] ss:$48 sps:$4 sm:$0xff]   ;;  %v3890_v36 = vld [vmem:[#allocation5 + $0x544] ss:$48 sps:$4 sm:$0xff]   ;;  %v3892_v37 = vld [vmem:[#allocation5 + $0x54c] ss:$48 sps:$4 sm:$0xff]  }
  0x4d   :  { %v3894_v38 = vld [vmem:[#allocation5 + $0x540] ss:$48 sps:$4 sm:$0xff]   ;;  %v3895_v39 = vld [vmem:[#allocation5 + $0x548] ss:$48 sps:$4 sm:$0xff]   ;;  %v3896_v40 = vld [vmem:[#allocation5 + $0x4e4] ss:$48 sps:$4 sm:$0xff]  }
  0x4e   :  { %1309 = vmatpush1.bf16.msra.mxu0 %v3858_v14  ;;  %1352 = vmatpush1.bf16.msra.mxu1 %v3859_v15  ;;  %v3898_v41 = vld [vmem:[#allocation5 + $0x4ec] ss:$48 sps:$4 sm:$0xff]   ;;  %v3900_v42 = vld [vmem:[#allocation5 + $0x4e0] ss:$48 sps:$4 sm:$0xff]   ;;  %v3901_v43 = vld [vmem:[#allocation5 + $0x4e8] ss:$48 sps:$4 sm:$0xff]  }
  0x4f   :  { %1310 = vmatprep.subr.bf16.mxu0 %v3860_v16  ;;  %1353 = vmatprep.subr.bf16.mxu1 %v3862_v17  ;;  %v3902_v44 = vld [vmem:[#allocation5 + $0x484] ss:$48 sps:$4 sm:$0xff]   ;;  %v3904_v45 = vld [vmem:[#allocation5 + $0x48c] ss:$48 sps:$4 sm:$0xff]   ;;  %v3906_v47 = vld [vmem:[#allocation5 + $0x480] ss:$48 sps:$4 sm:$0xff]  }
  0x50   :  { %v145_v46 = vld [vmem:[#allocation3 + $0x8] sm:$0xff]  ;;  %v147_v49 = vld [vmem:[#allocation3 + $0x18] sm:$0xff]  ;;  %v3908_v50 = vld [vmem:[#allocation5 + $0x424] ss:$48 sps:$4 sm:$0xff]  }
  0x51   :  { %v3907_v48 = vld [vmem:[#allocation5 + $0x488] ss:$48 sps:$4 sm:$0xff]   ;;  %v4610_v51 = vpack.c.bf16 %v147_v49, %v145_v46  ;;  %v3910_v52 = vld [vmem:[#allocation5 + $0x42c] ss:$48 sps:$4 sm:$0xff]   ;;  %v3912_v53 = vld [vmem:[#allocation5 + $0x420] ss:$48 sps:$4 sm:$0xff]  }
  0x52   :  { %1311 = vmatpush1.bf16.msra.mxu0 %v3864_v18  ;;  %1354 = vmatpush1.bf16.msra.mxu1 %v3865_v19  ;;  %v3913_v54 = vld [vmem:[#allocation5 + $0x428] ss:$48 sps:$4 sm:$0xff]   ;;  %v3914_v55 = vld [vmem:[#allocation5 + $0x3c4] ss:$48 sps:$4 sm:$0xff]   ;;  %v3916_v56 = vld [vmem:[#allocation5 + $0x3cc] ss:$48 sps:$4 sm:$0xff]  }
  0x53   :  { %1312 = vmatprep.subr.bf16.mxu0 %v3866_v20  ;;  %1355 = vmatprep.subr.bf16.mxu1 %v3868_v21  ;;  %v3918_v57 = vld [vmem:[#allocation5 + $0x3c0] ss:$48 sps:$4 sm:$0xff]   ;;  %v3919_v58 = vld [vmem:[#allocation5 + $0x3c8] ss:$48 sps:$4 sm:$0xff]   ;;  %v3920_v59 = vld [vmem:[#allocation5 + $0x364] ss:$48 sps:$4 sm:$0xff]  }
  0x54   :  { %1334 = vmatprep.mubr.bf16.mxu0 %v4610_v51  ;;  %1377 = vmatprep.mubr.bf16.mxu1 %v4610_v51  ;;  %v3922_v60 = vld [vmem:[#allocation5 + $0x36c] ss:$48 sps:$4 sm:$0xff]   ;;  %v3924_v61 = vld [vmem:[#allocation5 + $0x360] ss:$48 sps:$4 sm:$0xff]   ;;  %v3925_v62 = vld [vmem:[#allocation5 + $0x368] ss:$48 sps:$4 sm:$0xff]  }
  0x55   :  { %v3926_v63 = vld [vmem:[#allocation5 + $0x304] ss:$48 sps:$4 sm:$0xff]   ;;  %v3928_v0 = vld [vmem:[#allocation5 + $0x30c] ss:$48 sps:$4 sm:$0xff]   ;;  %v3930_v1 = vld [vmem:[#allocation5 + $0x300] ss:$48 sps:$4 sm:$0xff]  }
  0x56   :  { %1313 = vmatpush1.bf16.msra.mxu0 %v3870_v22  ;;  %1356 = vmatpush1.bf16.msra.mxu1 %v3871_v23  ;;  %v3931_v2 = vld [vmem:[#allocation5 + $0x308] ss:$48 sps:$4 sm:$0xff]   ;;  %v144_v3 = vld [vmem:[#allocation3] sm:$0xff]  ;;  %v146_v4 = vld [vmem:[#allocation3 + $0x10] sm:$0xff] }
  0x57   :  { %1314 = vmatprep.subr.bf16.mxu0 %v3872_v24  ;;  %1357 = vmatprep.subr.bf16.mxu1 %v3874_v25  ;;  %v3934_v5 = vld [vmem:[#allocation5 + $0x2b4] ss:$48 sps:$4 sm:$0xff]   ;;  %v3937_v6 = vld [vmem:[#allocation5 + $0x2bc] ss:$48 sps:$4 sm:$0xff]   ;;  %v4614_v7 = vpack.c.bf16 %v146_v4, %v144_v3  ;;  %v3932_v8 = vld [vmem:[#allocation5 + $0x2b0] ss:$48 sps:$4 sm:$0xff]  }
  0x58   :  { %v3935_v9 = vld [vmem:[#allocation5 + $0x2b8] ss:$48 sps:$4 sm:$0xff]   ;;  %v3940_v10 = vld [vmem:[#allocation5 + $0x254] ss:$48 sps:$4 sm:$0xff]   ;;  %v3943_v11 = vld [vmem:[#allocation5 + $0x25c] ss:$48 sps:$4 sm:$0xff]  }
  0x59   :  { %v3938_v12 = vld [vmem:[#allocation5 + $0x250] ss:$48 sps:$4 sm:$0xff]   ;;  %v3941_v13 = vld [vmem:[#allocation5 + $0x258] ss:$48 sps:$4 sm:$0xff]   ;;  %v3946_v14 = vld [vmem:[#allocation5 + $0x1f4] ss:$48 sps:$4 sm:$0xff]  }
  0x5a   :  { %1315 = vmatpush1.bf16.msra.mxu0 %v3876_v26  ;;  %1358 = vmatpush1.bf16.msra.mxu1 %v3877_v27  ;;  %v3949_v15 = vld [vmem:[#allocation5 + $0x1fc] ss:$48 sps:$4 sm:$0xff]   ;;  %v3944_v16 = vld [vmem:[#allocation5 + $0x1f0] ss:$48 sps:$4 sm:$0xff]   ;;  %v3947_v17 = vld [vmem:[#allocation5 + $0x1f8] ss:$48 sps:$4 sm:$0xff]  }
  0x5b   :  { %1316 = vmatprep.subr.bf16.mxu0 %v3878_v28  ;;  %1359 = vmatprep.subr.bf16.mxu1 %v3880_v29  ;;  %v3952_v18 = vld [vmem:[#allocation5 + $0x194] ss:$48 sps:$4 sm:$0xff]   ;;  %v3955_v19 = vld [vmem:[#allocation5 + $0x19c] ss:$48 sps:$4 sm:$0xff]   ;;  %v3950_v20 = vld [vmem:[#allocation5 + $0x190] ss:$48 sps:$4 sm:$0xff]  }
  0x5c   :  { %v3953_v21 = vld [vmem:[#allocation5 + $0x198] ss:$48 sps:$4 sm:$0xff]   ;;  %v3958_v22 = vld [vmem:[#allocation5 + $0x134] ss:$48 sps:$4 sm:$0xff]   ;;  %v3961_v23 = vld [vmem:[#allocation5 + $0x13c] ss:$48 sps:$4 sm:$0xff]  }
  0x5d   :  { %v3956_v24 = vld [vmem:[#allocation5 + $0x130] ss:$48 sps:$4 sm:$0xff]   ;;  %v3959_v25 = vld [vmem:[#allocation5 + $0x138] ss:$48 sps:$4 sm:$0xff]   ;;  %v3964_v26 = vld [vmem:[#allocation5 + $0xd4] ss:$48 sps:$4 sm:$0xff]  }
  0x5e   :  { %1317 = vmatpush1.bf16.msra.mxu0 %v3882_v30  ;;  %1360 = vmatpush1.bf16.msra.mxu1 %v3883_v31  ;;  %v3967_v27 = vld [vmem:[#allocation5 + $0xdc] ss:$48 sps:$4 sm:$0xff]   ;;  %v3962_v28 = vld [vmem:[#allocation5 + $0xd0] ss:$48 sps:$4 sm:$0xff]   ;;  %v3965_v29 = vld [vmem:[#allocation5 + $0xd8] ss:$48 sps:$4 sm:$0xff]  }
  0x5f   :  { %1318 = vmatprep.subr.bf16.mxu0 %v3884_v32  ;;  %1361 = vmatprep.subr.bf16.mxu1 %v3886_v33  ;;  %v3970_v30 = vld [vmem:[#allocation5 + $0x74] ss:$48 sps:$4 sm:$0xff]   ;;  %v3973_v31 = vld [vmem:[#allocation5 + $0x7c] ss:$48 sps:$4 sm:$0xff]   ;;  %v3968_v32 = vld [vmem:[#allocation5 + $0x70] ss:$48 sps:$4 sm:$0xff]  }
  0x60   :  { %v3971_v33 = vld [vmem:[#allocation5 + $0x78] ss:$48 sps:$4 sm:$0xff]   ;;  %v3994_v46 = vld [vmem:[#allocation5 + $0x4f4] ss:$48 sps:$4 sm:$0xff]   ;;  %v4027_v4 = vld [vmem:[#allocation5 + $0x31c] ss:$48 sps:$4 sm:$0xff]  }
  0x61   :  { %v3995_v49 = vld [vmem:[#allocation5 + $0x4f8] ss:$48 sps:$4 sm:$0xff]   ;;  %v4024_v3 = vld [vmem:[#allocation5 + $0x314] ss:$48 sps:$4 sm:$0xff]  }
  0x62   :  { %1319 = vmatpush2.bf16.msra.mxu0 %v3888_v34  ;;  %1362 = vmatpush2.bf16.msra.mxu1 %v3889_v35  ;;  %v3976_v34 = vld [vmem:[#allocation5 + $0x14] ss:$48 sps:$4 sm:$0xff]   ;;  %v3979_v35 = vld [vmem:[#allocation5 + $0x1c] ss:$48 sps:$4 sm:$0xff]  }
  0x63   :  { %1320 = vmatprep.subr.bf16.mxu0 %v3890_v36  ;;  %1363 = vmatprep.subr.bf16.mxu1 %v3892_v37  ;;  %v3974_v36 = vld [vmem:[#allocation5 + $0x10] ss:$48 sps:$4 sm:$0xff]   ;;  %v3977_v37 = vld [vmem:[#allocation5 + $0x18] ss:$48 sps:$4 sm:$0xff]  }
  0x66   :  { %1321 = vmatpush2.bf16.msra.mxu0 %v3894_v38  ;;  %1364 = vmatpush2.bf16.msra.mxu1 %v3895_v39  ;;  %v3982_v38 = vld [vmem:[#allocation5 + $0x5b4] ss:$48 sps:$4 sm:$0xff]   ;;  %v3985_v39 = vld [vmem:[#allocation5 + $0x5bc] ss:$48 sps:$4 sm:$0xff]  }
  0x67   :  { %1322 = vmatprep.subr.bf16.mxu0 %v3896_v40  ;;  %1365 = vmatprep.subr.bf16.mxu1 %v3898_v41  ;;  %v3980_v40 = vld [vmem:[#allocation5 + $0x5b0] ss:$48 sps:$4 sm:$0xff]   ;;  %v3983_v41 = vld [vmem:[#allocation5 + $0x5b8] ss:$48 sps:$4 sm:$0xff]  }
  0x6a   :  { %1323 = vmatpush2.bf16.msra.mxu0 %v3900_v42  ;;  %1366 = vmatpush2.bf16.msra.mxu1 %v3901_v43  ;;  %v3988_v42 = vld [vmem:[#allocation5 + $0x554] ss:$48 sps:$4 sm:$0xff]   ;;  %v3991_v43 = vld [vmem:[#allocation5 + $0x55c] ss:$48 sps:$4 sm:$0xff]  }
  0x6b   :  { %1324 = vmatprep.subr.bf16.mxu0 %v3902_v44  ;;  %1367 = vmatprep.subr.bf16.mxu1 %v3904_v45  ;;  %v3986_v44 = vld [vmem:[#allocation5 + $0x550] ss:$48 sps:$4 sm:$0xff]   ;;  %v3989_v45 = vld [vmem:[#allocation5 + $0x558] ss:$48 sps:$4 sm:$0xff]  }
  0x6e   :  { %1325 = vmatpush2.bf16.msra.mxu0 %v3906_v47  ;;  %1368 = vmatpush2.bf16.msra.mxu1 %v3907_v48  ;;  %v3997_v47 = vld [vmem:[#allocation5 + $0x4fc] ss:$48 sps:$4 sm:$0xff]   ;;  %v3992_v48 = vld [vmem:[#allocation5 + $0x4f0] ss:$48 sps:$4 sm:$0xff]  }
  0x6f   :  { %1326 = vmatprep.subr.bf16.mxu0 %v3908_v50  ;;  %1369 = vmatprep.subr.bf16.mxu1 %v3910_v52  ;;  %v4000_v50 = vld [vmem:[#allocation5 + $0x494] ss:$48 sps:$4 sm:$0xff]   ;;  %v4003_v52 = vld [vmem:[#allocation5 + $0x49c] ss:$48 sps:$4 sm:$0xff]  }
  0x72   :  { %1327 = vmatpush2.bf16.msra.mxu0 %v3912_v53  ;;  %1370 = vmatpush2.bf16.msra.mxu1 %v3913_v54  ;;  %v3998_v53 = vld [vmem:[#allocation5 + $0x490] ss:$48 sps:$4 sm:$0xff]   ;;  %v4001_v54 = vld [vmem:[#allocation5 + $0x498] ss:$48 sps:$4 sm:$0xff]  }
  0x73   :  { %1328 = vmatprep.subr.bf16.mxu0 %v3914_v55  ;;  %1371 = vmatprep.subr.bf16.mxu1 %v3916_v56  ;;  %v4006_v55 = vld [vmem:[#allocation5 + $0x434] ss:$48 sps:$4 sm:$0xff]   ;;  %v4009_v56 = vld [vmem:[#allocation5 + $0x43c] ss:$48 sps:$4 sm:$0xff]  }
  0x76   :  { %1329 = vmatpush2.bf16.msra.mxu0 %v3918_v57  ;;  %1372 = vmatpush2.bf16.msra.mxu1 %v3919_v58  ;;  %v4004_v57 = vld [vmem:[#allocation5 + $0x430] ss:$48 sps:$4 sm:$0xff]   ;;  %v4007_v58 = vld [vmem:[#allocation5 + $0x438] ss:$48 sps:$4 sm:$0xff]  }
  0x77   :  { %1330 = vmatprep.subr.bf16.mxu0 %v3920_v59  ;;  %1373 = vmatprep.subr.bf16.mxu1 %v3922_v60  ;;  %v4012_v59 = vld [vmem:[#allocation5 + $0x3d4] ss:$48 sps:$4 sm:$0xff]   ;;  %v4015_v60 = vld [vmem:[#allocation5 + $0x3dc] ss:$48 sps:$4 sm:$0xff]  }
  0x7a   :  { %1331 = vmatpush2.bf16.msra.mxu0 %v3924_v61  ;;  %1374 = vmatpush2.bf16.msra.mxu1 %v3925_v62  ;;  %v4010_v61 = vld [vmem:[#allocation5 + $0x3d0] ss:$48 sps:$4 sm:$0xff]   ;;  %v4013_v62 = vld [vmem:[#allocation5 + $0x3d8] ss:$48 sps:$4 sm:$0xff]  }
  0x7b   :  { %1332 = vmatprep.subr.bf16.mxu0 %v3926_v63  ;;  %1375 = vmatprep.subr.bf16.mxu1 %v3928_v0  ;;  %v4018_v63 = vld [vmem:[#allocation5 + $0x374] ss:$48 sps:$4 sm:$0xff]   ;;  %v4021_v0 = vld [vmem:[#allocation5 + $0x37c] ss:$48 sps:$4 sm:$0xff]  }
  0x7e   :  { %1333 = vmatpush2.bf16.msra.mxu0 %v3930_v1  ;;  %1376 = vmatpush2.bf16.msra.mxu1 %v3931_v2  ;;  %v4016_v1 = vld [vmem:[#allocation5 + $0x370] ss:$48 sps:$4 sm:$0xff]   ;;  %v4019_v2 = vld [vmem:[#allocation5 + $0x378] ss:$48 sps:$4 sm:$0xff]  }
  0x7f   :  { %1388 = vmatprep.subr.bf16.mxu0 %v3934_v5  ;;  %1431 = vmatprep.subr.bf16.mxu1 %v3937_v6  ;;  %v4022_v5 = vld [vmem:[#allocation5 + $0x310] ss:$48 sps:$4 sm:$0xff]   ;;  %v4025_v6 = vld [vmem:[#allocation5 + $0x318] ss:$48 sps:$4 sm:$0xff]  }
  0x81   :  { %1335 = vmatmul.mubr.bf16.vlgmr.msra.gmra.mxu0 %v4614_v7  ;;  %1378 = vmatmul.mubr.bf16.vlgmr.msra.gmra.mxu1 %v4614_v7 }
  0x82   :  { %1389 = vmatpush1.bf16.msra.mxu0 %v3932_v8  ;;  %1432 = vmatpush1.bf16.msra.mxu1 %v3935_v9  ;;  %v4030_v8 = vld [vmem:[#allocation5 + $0x2c4] ss:$48 sps:$4 sm:$0xff]   ;;  %v4033_v9 = vld [vmem:[#allocation5 + $0x2cc] ss:$48 sps:$4 sm:$0xff]  }
  0x83   :  { %1390 = vmatprep.subr.bf16.mxu0 %v3940_v10  ;;  %1433 = vmatprep.subr.bf16.mxu1 %v3943_v11  ;;  %v4028_v10 = vld [vmem:[#allocation5 + $0x2c0] ss:$48 sps:$4 sm:$0xff]   ;;  %v4031_v11 = vld [vmem:[#allocation5 + $0x2c8] ss:$48 sps:$4 sm:$0xff]  }
  0x84   :  { %1420 = vmatprep.mubr.bf16.mxu0 %v4610_v51  ;;  %1463 = vmatprep.mubr.bf16.mxu1 %v4610_v51 }
  0x86   :  { %1391 = vmatpush1.bf16.msra.mxu0 %v3938_v12  ;;  %1434 = vmatpush1.bf16.msra.mxu1 %v3941_v13  ;;  %v4036_v12 = vld [vmem:[#allocation5 + $0x264] ss:$48 sps:$4 sm:$0xff]   ;;  %v4039_v13 = vld [vmem:[#allocation5 + $0x26c] ss:$48 sps:$4 sm:$0xff]  }
  0x87   :  { %1392 = vmatprep.subr.bf16.mxu0 %v3946_v14  ;;  %1435 = vmatprep.subr.bf16.mxu1 %v3949_v15  ;;  %v4034_v14 = vld [vmem:[#allocation5 + $0x260] ss:$48 sps:$4 sm:$0xff]   ;;  %v4037_v15 = vld [vmem:[#allocation5 + $0x268] ss:$48 sps:$4 sm:$0xff]  }
  0x8a   :  { %1393 = vmatpush1.bf16.msra.mxu0 %v3944_v16  ;;  %1436 = vmatpush1.bf16.msra.mxu1 %v3947_v17  ;;  %v4042_v16 = vld [vmem:[#allocation5 + $0x204] ss:$48 sps:$4 sm:$0xff]   ;;  %v4045_v17 = vld [vmem:[#allocation5 + $0x20c] ss:$48 sps:$4 sm:$0xff]  }
  0x8b   :  { %1394 = vmatprep.subr.bf16.mxu0 %v3952_v18  ;;  %1437 = vmatprep.subr.bf16.mxu1 %v3955_v19  ;;  %v4040_v18 = vld [vmem:[#allocation5 + $0x200] ss:$48 sps:$4 sm:$0xff]   ;;  %v4043_v19 = vld [vmem:[#allocation5 + $0x208] ss:$48 sps:$4 sm:$0xff]  }
  0x8e   :  { %1395 = vmatpush1.bf16.msra.mxu0 %v3950_v20  ;;  %1438 = vmatpush1.bf16.msra.mxu1 %v3953_v21  ;;  %v4048_v20 = vld [vmem:[#allocation5 + $0x1a4] ss:$48 sps:$4 sm:$0xff]   ;;  %v4051_v21 = vld [vmem:[#allocation5 + $0x1ac] ss:$48 sps:$4 sm:$0xff]  }
  0x8f   :  { %1396 = vmatprep.subr.bf16.mxu0 %v3958_v22  ;;  %1439 = vmatprep.subr.bf16.mxu1 %v3961_v23  ;;  %v4046_v22 = vld [vmem:[#allocation5 + $0x1a0] ss:$48 sps:$4 sm:$0xff]   ;;  %v4049_v23 = vld [vmem:[#allocation5 + $0x1a8] ss:$48 sps:$4 sm:$0xff]  }
  0x92   :  { %1397 = vmatpush1.bf16.msra.mxu0 %v3956_v24  ;;  %1440 = vmatpush1.bf16.msra.mxu1 %v3959_v25  ;;  %v4054_v24 = vld [vmem:[#allocation5 + $0x144] ss:$48 sps:$4 sm:$0xff]   ;;  %v4057_v25 = vld [vmem:[#allocation5 + $0x14c] ss:$48 sps:$4 sm:$0xff]  }
  0x93   :  { %1398 = vmatprep.subr.bf16.mxu0 %v3964_v26  ;;  %1441 = vmatprep.subr.bf16.mxu1 %v3967_v27  ;;  %v4052_v26 = vld [vmem:[#allocation5 + $0x140] ss:$48 sps:$4 sm:$0xff]   ;;  %v4055_v27 = vld [vmem:[#allocation5 + $0x148] ss:$48 sps:$4 sm:$0xff]  }
  0x96   :  { %1399 = vmatpush1.bf16.msra.mxu0 %v3962_v28  ;;  %1442 = vmatpush1.bf16.msra.mxu1 %v3965_v29  ;;  %v4063_v28 = vld [vmem:[#allocation5 + $0xec] ss:$48 sps:$4 sm:$0xff]   ;;  %v4058_v29 = vld [vmem:[#allocation5 + $0xe0] ss:$48 sps:$4 sm:$0xff]  }
  0x97   :  { %1400 = vmatprep.subr.bf16.mxu0 %v3970_v30  ;;  %1443 = vmatprep.subr.bf16.mxu1 %v3973_v31  ;;  %v4061_v30 = vld [vmem:[#allocation5 + $0xe8] ss:$48 sps:$4 sm:$0xff]   ;;  %v4066_v31 = vld [vmem:[#allocation5 + $0x84] ss:$48 sps:$4 sm:$0xff]  }
  0x9a   :  { %1401 = vmatpush1.bf16.msra.mxu0 %v3968_v32  ;;  %1444 = vmatpush1.bf16.msra.mxu1 %v3971_v33  ;;  %v4069_v32 = vld [vmem:[#allocation5 + $0x8c] ss:$48 sps:$4 sm:$0xff]   ;;  %v4064_v33 = vld [vmem:[#allocation5 + $0x80] ss:$48 sps:$4 sm:$0xff]  }
  0x9b   :  { %1402 = vmatprep.subr.bf16.mxu0 %v3976_v34  ;;  %1445 = vmatprep.subr.bf16.mxu1 %v3979_v35  ;;  %v4067_v34 = vld [vmem:[#allocation5 + $0x88] ss:$48 sps:$4 sm:$0xff]   ;;  %v4072_v35 = vld [vmem:[#allocation5 + $0x24] ss:$48 sps:$4 sm:$0xff]  }
  0x9e   :  { %1403 = vmatpush1.bf16.msra.mxu0 %v3974_v36  ;;  %1446 = vmatpush1.bf16.msra.mxu1 %v3977_v37  ;;  %v4075_v36 = vld [vmem:[#allocation5 + $0x2c] ss:$48 sps:$4 sm:$0xff]   ;;  %v4070_v37 = vld [vmem:[#allocation5 + $0x20] ss:$48 sps:$4 sm:$0xff]  }
  0x9f   :  { %1404 = vmatprep.subr.bf16.mxu0 %v3982_v38  ;;  %1447 = vmatprep.subr.bf16.mxu1 %v3985_v39  ;;  %v4073_v38 = vld [vmem:[#allocation5 + $0x28] ss:$48 sps:$4 sm:$0xff]   ;;  %v4078_v39 = vld [vmem:[#allocation5 + $0x5c4] ss:$48 sps:$4 sm:$0xff]  }
  0xa2   :  { %1405 = vmatpush2.bf16.msra.mxu0 %v3980_v40  ;;  %1448 = vmatpush2.bf16.msra.mxu1 %v3983_v41  ;;  %v4081_v40 = vld [vmem:[#allocation5 + $0x5cc] ss:$48 sps:$4 sm:$0xff]   ;;  %v4076_v41 = vld [vmem:[#allocation5 + $0x5c0] ss:$48 sps:$4 sm:$0xff]  }
  0xa3   :  { %1406 = vmatprep.subr.bf16.mxu0 %v3988_v42  ;;  %1449 = vmatprep.subr.bf16.mxu1 %v3991_v43  ;;  %v4079_v42 = vld [vmem:[#allocation5 + $0x5c8] ss:$48 sps:$4 sm:$0xff]   ;;  %v4084_v43 = vld [vmem:[#allocation5 + $0x564] ss:$48 sps:$4 sm:$0xff]  }
  0xa6   :  { %1407 = vmatpush2.bf16.msra.mxu0 %v3986_v44  ;;  %1450 = vmatpush2.bf16.msra.mxu1 %v3989_v45  ;;  %v4087_v44 = vld [vmem:[#allocation5 + $0x56c] ss:$48 sps:$4 sm:$0xff]   ;;  %v4082_v45 = vld [vmem:[#allocation5 + $0x560] ss:$48 sps:$4 sm:$0xff]  }
  0xa7   :  { %1408 = vmatprep.subr.bf16.mxu0 %v3994_v46  ;;  %1451 = vmatprep.subr.bf16.mxu1 %v3997_v47  ;;  %v4085_v46 = vld [vmem:[#allocation5 + $0x568] ss:$48 sps:$4 sm:$0xff]   ;;  %v4090_v47 = vld [vmem:[#allocation5 + $0x504] ss:$48 sps:$4 sm:$0xff]  }
  0xaa   :  { %1409 = vmatpush2.bf16.msra.mxu0 %v3992_v48  ;;  %1452 = vmatpush2.bf16.msra.mxu1 %v3995_v49  ;;  %v4093_v48 = vld [vmem:[#allocation5 + $0x50c] ss:$48 sps:$4 sm:$0xff]   ;;  %v4088_v49 = vld [vmem:[#allocation5 + $0x500] ss:$48 sps:$4 sm:$0xff]  }
  0xab   :  { %1410 = vmatprep.subr.bf16.mxu0 %v4000_v50  ;;  %1453 = vmatprep.subr.bf16.mxu1 %v4003_v52  ;;  %v4091_v50 = vld [vmem:[#allocation5 + $0x508] ss:$48 sps:$4 sm:$0xff]   ;;  %v4096_v52 = vld [vmem:[#allocation5 + $0x4a4] ss:$48 sps:$4 sm:$0xff]  }
  0xae   :  { %1411 = vmatpush2.bf16.msra.mxu0 %v3998_v53  ;;  %1454 = vmatpush2.bf16.msra.mxu1 %v4001_v54  ;;  %v4099_v53 = vld [vmem:[#allocation5 + $0x4ac] ss:$48 sps:$4 sm:$0xff]   ;;  %v4094_v54 = vld [vmem:[#allocation5 + $0x4a0] ss:$48 sps:$4 sm:$0xff]  }
  0xaf   :  { %1412 = vmatprep.subr.bf16.mxu0 %v4006_v55  ;;  %1455 = vmatprep.subr.bf16.mxu1 %v4009_v56  ;;  %v4097_v55 = vld [vmem:[#allocation5 + $0x4a8] ss:$48 sps:$4 sm:$0xff]   ;;  %v4102_v56 = vld [vmem:[#allocation5 + $0x444] ss:$48 sps:$4 sm:$0xff]  }
  0xb2   :  { %1413 = vmatpush2.bf16.msra.mxu0 %v4004_v57  ;;  %1456 = vmatpush2.bf16.msra.mxu1 %v4007_v58  ;;  %v4105_v57 = vld [vmem:[#allocation5 + $0x44c] ss:$48 sps:$4 sm:$0xff]   ;;  %v4100_v58 = vld [vmem:[#allocation5 + $0x440] ss:$48 sps:$4 sm:$0xff]  }
  0xb3   :  { %1414 = vmatprep.subr.bf16.mxu0 %v4012_v59  ;;  %1457 = vmatprep.subr.bf16.mxu1 %v4015_v60  ;;  %v4103_v59 = vld [vmem:[#allocation5 + $0x448] ss:$48 sps:$4 sm:$0xff]   ;;  %v4108_v60 = vld [vmem:[#allocation5 + $0x3e4] ss:$48 sps:$4 sm:$0xff]  }
  0xb6   :  { %1415 = vmatpush2.bf16.msra.mxu0 %v4010_v61  ;;  %1458 = vmatpush2.bf16.msra.mxu1 %v4013_v62  ;;  %v4111_v61 = vld [vmem:[#allocation5 + $0x3ec] ss:$48 sps:$4 sm:$0xff]   ;;  %v4106_v62 = vld [vmem:[#allocation5 + $0x3e0] ss:$48 sps:$4 sm:$0xff]  }
  0xb7   :  { %1416 = vmatprep.subr.bf16.mxu0 %v4018_v63  ;;  %1459 = vmatprep.subr.bf16.mxu1 %v4021_v0  ;;  %v4109_v63 = vld [vmem:[#allocation5 + $0x3e8] ss:$48 sps:$4 sm:$0xff]   ;;  %v4114_v0 = vld [vmem:[#allocation5 + $0x384] ss:$48 sps:$4 sm:$0xff]  }
  0xba   :  { %1417 = vmatpush2.bf16.msra.mxu0 %v4016_v1  ;;  %1460 = vmatpush2.bf16.msra.mxu1 %v4019_v2  ;;  %v4117_v1 = vld [vmem:[#allocation5 + $0x38c] ss:$48 sps:$4 sm:$0xff]   ;;  %v4112_v2 = vld [vmem:[#allocation5 + $0x380] ss:$48 sps:$4 sm:$0xff]  }
  0xbb   :  { %1418 = vmatprep.subr.bf16.mxu0 %v4024_v3  ;;  %1461 = vmatprep.subr.bf16.mxu1 %v4027_v4  ;;  %v4115_v3 = vld [vmem:[#allocation5 + $0x388] ss:$48 sps:$4 sm:$0xff]   ;;  %v4120_v4 = vld [vmem:[#allocation5 + $0x324] ss:$48 sps:$4 sm:$0xff]  }
  0xbe   :  { %1419 = vmatpush2.bf16.msra.mxu0 %v4022_v5  ;;  %1462 = vmatpush2.bf16.msra.mxu1 %v4025_v6  ;;  %v4123_v5 = vld [vmem:[#allocation5 + $0x32c] ss:$48 sps:$4 sm:$0xff]   ;;  %v4118_v6 = vld [vmem:[#allocation5 + $0x320] ss:$48 sps:$4 sm:$0xff]  }
  0xbf   :  { %1474 = vmatprep.subr.bf16.mxu0 %v4030_v8  ;;  %1517 = vmatprep.subr.bf16.mxu1 %v4033_v9  ;;  %v4121_v8 = vld [vmem:[#allocation5 + $0x328] ss:$48 sps:$4 sm:$0xff]  }
  0xc0   :  { %v4126_v9 = vld [vmem:[#allocation8 + $0x74] ss:$8 sps:$4 sm:$0xff]  }
  0xc1   :  { %1421 = vmatmul.mubr.bf16.vlgmr.msra.gmra.mxu0 %v4614_v7  ;;  %1464 = vmatmul.mubr.bf16.vlgmr.msra.gmra.mxu1 %v4614_v7 }
  0xc2   :  { %1475 = vmatpush1.bf16.msra.mxu0 %v4028_v10  ;;  %1518 = vmatpush1.bf16.msra.mxu1 %v4031_v11  ;;  %v4129_v10 = vld [vmem:[#allocation8 + $0x174] ss:$8 sps:$4 sm:$0xff]   ;;  %v4124_v11 = vld [vmem:[#allocation8 + $0x70] ss:$8 sps:$4 sm:$0xff]  }
  0xc3   :  { %1476 = vmatprep.subr.bf16.mxu0 %v4036_v12  ;;  %1519 = vmatprep.subr.bf16.mxu1 %v4039_v13  ;;  %v4127_v12 = vld [vmem:[#allocation8 + $0x170] ss:$8 sps:$4 sm:$0xff]   ;;  %v4132_v13 = vld [vmem:[#allocation8 + $0x64] ss:$8 sps:$4 sm:$0xff]  }
  0xc4   :  { %1506 = vmatprep.mubr.bf16.mxu0 %v4610_v51  ;;  %1549 = vmatprep.mubr.bf16.mxu1 %v4610_v51  ;;  %v4060_v51 = vld [vmem:[#allocation5 + $0xe4] ss:$48 sps:$4 sm:$0xff]  }
  0xc6   :  { %1477 = vmatpush1.bf16.msra.mxu0 %v4034_v14  ;;  %1520 = vmatpush1.bf16.msra.mxu1 %v4037_v15  ;;  %v4135_v14 = vld [vmem:[#allocation8 + $0x164] ss:$8 sps:$4 sm:$0xff]   ;;  %v4130_v15 = vld [vmem:[#allocation8 + $0x60] ss:$8 sps:$4 sm:$0xff]  }
  0xc7   :  { %1478 = vmatprep.subr.bf16.mxu0 %v4042_v16  ;;  %1521 = vmatprep.subr.bf16.mxu1 %v4045_v17  ;;  %v4133_v16 = vld [vmem:[#allocation8 + $0x160] ss:$8 sps:$4 sm:$0xff]   ;;  %v4138_v17 = vld [vmem:[#allocation8 + $0x54] ss:$8 sps:$4 sm:$0xff]  }
  0xca   :  { %1479 = vmatpush1.bf16.msra.mxu0 %v4040_v18  ;;  %1522 = vmatpush1.bf16.msra.mxu1 %v4043_v19  ;;  %v4141_v18 = vld [vmem:[#allocation8 + $0x154] ss:$8 sps:$4 sm:$0xff]   ;;  %v4136_v19 = vld [vmem:[#allocation8 + $0x50] ss:$8 sps:$4 sm:$0xff]  }
  0xcb   :  { %1480 = vmatprep.subr.bf16.mxu0 %v4048_v20  ;;  %1523 = vmatprep.subr.bf16.mxu1 %v4051_v21  ;;  %v4139_v20 = vld [vmem:[#allocation8 + $0x150] ss:$8 sps:$4 sm:$0xff]   ;;  %v4144_v21 = vld [vmem:[#allocation8 + $0x44] ss:$8 sps:$4 sm:$0xff]  }
  0xce   :  { %1481 = vmatpush1.bf16.msra.mxu0 %v4046_v22  ;;  %1524 = vmatpush1.bf16.msra.mxu1 %v4049_v23  ;;  %v4147_v22 = vld [vmem:[#allocation8 + $0x144] ss:$8 sps:$4 sm:$0xff]   ;;  %v4142_v23 = vld [vmem:[#allocation8 + $0x40] ss:$8 sps:$4 sm:$0xff]  }
  0xcf   :  { %1482 = vmatprep.subr.bf16.mxu0 %v4054_v24  ;;  %1525 = vmatprep.subr.bf16.mxu1 %v4057_v25  ;;  %v4150_v24 = vld [vmem:[#allocation8 + $0x34] ss:$8 sps:$4 sm:$0xff]  }
  0xd0   :  { %v4153_v25 = vld [vmem:[#allocation8 + $0x134] ss:$8 sps:$4 sm:$0xff]  }
  0xd2   :  { %1483 = vmatpush1.bf16.msra.mxu0 %v4052_v26  ;;  %1526 = vmatpush1.bf16.msra.mxu1 %v4055_v27  ;;  %v4148_v26 = vld [vmem:[#allocation8 + $0x30] ss:$8 sps:$4 sm:$0xff]  }
  0xd3   :  { %1484 = vmatprep.subr.bf16.mxu0 %v4060_v51  ;;  %1527 = vmatprep.subr.bf16.mxu1 %v4063_v28  ;;  %v4151_v27 = vld [vmem:[#allocation8 + $0x130] ss:$8 sps:$4 sm:$0xff]   ;;  %v4156_v51 = vld [vmem:[#allocation8 + $0x24] ss:$8 sps:$4 sm:$0xff]  }
  0xd4   :  { %v4159_v28 = vld [vmem:[#allocation8 + $0x124] ss:$8 sps:$4 sm:$0xff]  }
  0xd6   :  { %1485 = vmatpush1.bf16.msra.mxu0 %v4058_v29  ;;  %1528 = vmatpush1.bf16.msra.mxu1 %v4061_v30  ;;  %v4154_v29 = vld [vmem:[#allocation8 + $0x20] ss:$8 sps:$4 sm:$0xff]  }
  0xd7   :  { %1486 = vmatprep.subr.bf16.mxu0 %v4066_v31  ;;  %1529 = vmatprep.subr.bf16.mxu1 %v4069_v32  ;;  %v4157_v30 = vld [vmem:[#allocation8 + $0x120] ss:$8 sps:$4 sm:$0xff]   ;;  %v4162_v31 = vld [vmem:[#allocation8 + $0x14] ss:$8 sps:$4 sm:$0xff]  }
  0xd8   :  { %v4165_v32 = vld [vmem:[#allocation8 + $0x114] ss:$8 sps:$4 sm:$0xff]  }
  0xda   :  { %1487 = vmatpush1.bf16.msra.mxu0 %v4064_v33  ;;  %1530 = vmatpush1.bf16.msra.mxu1 %v4067_v34  ;;  %v4160_v33 = vld [vmem:[#allocation8 + $0x10] ss:$8 sps:$4 sm:$0xff]  }
  0xdb   :  { %1488 = vmatprep.subr.bf16.mxu0 %v4072_v35  ;;  %1531 = vmatprep.subr.bf16.mxu1 %v4075_v36  ;;  %v4163_v34 = vld [vmem:[#allocation8 + $0x110] ss:$8 sps:$4 sm:$0xff]   ;;  %v4168_v35 = vld [vmem:[#allocation8 + $0x4] ss:$8 sps:$4 sm:$0xff]  }
  0xdc   :  { %v4171_v36 = vld [vmem:[#allocation8 + $0x104] ss:$8 sps:$4 sm:$0xff]  }
  0xde   :  { %1489 = vmatpush1.bf16.msra.mxu0 %v4070_v37  ;;  %1532 = vmatpush1.bf16.msra.mxu1 %v4073_v38  ;;  %v4166_v37 = vld [vmem:[#allocation8] ss:$8 sps:$4 sm:$0xff]  }
  0xdf   :  { %1490 = vmatprep.subr.bf16.mxu0 %v4078_v39  ;;  %1533 = vmatprep.subr.bf16.mxu1 %v4081_v40  ;;  %v4169_v38 = vld [vmem:[#allocation8 + $0x100] ss:$8 sps:$4 sm:$0xff]   ;;  %v4174_v39 = vld [vmem:[#allocation8 + $0xf4] ss:$8 sps:$4 sm:$0xff]  }
  0xe0   :  { %v4177_v40 = vld [vmem:[#allocation8 + $0x1f4] ss:$8 sps:$4 sm:$0xff]  }
  0xe2   :  { %1491 = vmatpush2.bf16.msra.mxu0 %v4076_v41  ;;  %1534 = vmatpush2.bf16.msra.mxu1 %v4079_v42  ;;  %v4172_v41 = vld [vmem:[#allocation8 + $0xf0] ss:$8 sps:$4 sm:$0xff]  }
  0xe3   :  { %1492 = vmatprep.subr.bf16.mxu0 %v4084_v43  ;;  %1535 = vmatprep.subr.bf16.mxu1 %v4087_v44  ;;  %v4175_v42 = vld [vmem:[#allocation8 + $0x1f0] ss:$8 sps:$4 sm:$0xff]   ;;  %v4180_v43 = vld [vmem:[#allocation8 + $0xe4] ss:$8 sps:$4 sm:$0xff]  }
  0xe4   :  { %v4183_v44 = vld [vmem:[#allocation8 + $0x1e4] ss:$8 sps:$4 sm:$0xff]  }
  0xe6   :  { %1493 = vmatpush2.bf16.msra.mxu0 %v4082_v45  ;;  %1536 = vmatpush2.bf16.msra.mxu1 %v4085_v46  ;;  %v4178_v45 = vld [vmem:[#allocation8 + $0xe0] ss:$8 sps:$4 sm:$0xff]  }
  0xe7   :  { %1494 = vmatprep.subr.bf16.mxu0 %v4090_v47  ;;  %1537 = vmatprep.subr.bf16.mxu1 %v4093_v48  ;;  %v4181_v46 = vld [vmem:[#allocation8 + $0x1e0] ss:$8 sps:$4 sm:$0xff]   ;;  %v4186_v47 = vld [vmem:[#allocation8 + $0xd4] ss:$8 sps:$4 sm:$0xff]  }
  0xe8   :  { %v4189_v48 = vld [vmem:[#allocation8 + $0x1d4] ss:$8 sps:$4 sm:$0xff]  }
  0xea   :  { %1495 = vmatpush2.bf16.msra.mxu0 %v4088_v49  ;;  %1538 = vmatpush2.bf16.msra.mxu1 %v4091_v50  ;;  %v4184_v49 = vld [vmem:[#allocation8 + $0xd0] ss:$8 sps:$4 sm:$0xff]  }
  0xeb   :  { %1496 = vmatprep.subr.bf16.mxu0 %v4096_v52  ;;  %1539 = vmatprep.subr.bf16.mxu1 %v4099_v53  ;;  %v4187_v50 = vld [vmem:[#allocation8 + $0x1d0] ss:$8 sps:$4 sm:$0xff]   ;;  %v4192_v52 = vld [vmem:[#allocation8 + $0xc4] ss:$8 sps:$4 sm:$0xff]  }
  0xec   :  { %v4195_v53 = vld [vmem:[#allocation8 + $0x1c4] ss:$8 sps:$4 sm:$0xff]  }
  0xee   :  { %1497 = vmatpush2.bf16.msra.mxu0 %v4094_v54  ;;  %1540 = vmatpush2.bf16.msra.mxu1 %v4097_v55  ;;  %v4190_v54 = vld [vmem:[#allocation8 + $0xc0] ss:$8 sps:$4 sm:$0xff]  }
  0xef   :  { %1498 = vmatprep.subr.bf16.mxu0 %v4102_v56  ;;  %1541 = vmatprep.subr.bf16.mxu1 %v4105_v57  ;;  %v4193_v55 = vld [vmem:[#allocation8 + $0x1c0] ss:$8 sps:$4 sm:$0xff]   ;;  %v4198_v56 = vld [vmem:[#allocation8 + $0xb4] ss:$8 sps:$4 sm:$0xff]  }
  0xf0   :  { %v4201_v57 = vld [vmem:[#allocation8 + $0x1b4] ss:$8 sps:$4 sm:$0xff]  }
  0xf2   :  { %1499 = vmatpush2.bf16.msra.mxu0 %v4100_v58  ;;  %1542 = vmatpush2.bf16.msra.mxu1 %v4103_v59  ;;  %v4196_v58 = vld [vmem:[#allocation8 + $0xb0] ss:$8 sps:$4 sm:$0xff]  }
  0xf3   :  { %1500 = vmatprep.subr.bf16.mxu0 %v4108_v60  ;;  %1543 = vmatprep.subr.bf16.mxu1 %v4111_v61  ;;  %v4199_v59 = vld [vmem:[#allocation8 + $0x1b0] ss:$8 sps:$4 sm:$0xff]   ;;  %v4204_v60 = vld [vmem:[#allocation8 + $0xa4] ss:$8 sps:$4 sm:$0xff]  }
  0xf4   :  { %v4207_v61 = vld [vmem:[#allocation8 + $0x1a4] ss:$8 sps:$4 sm:$0xff]  }
  0xf6   :  { %1501 = vmatpush2.bf16.msra.mxu0 %v4106_v62  ;;  %1544 = vmatpush2.bf16.msra.mxu1 %v4109_v63  ;;  %v4202_v62 = vld [vmem:[#allocation8 + $0xa0] ss:$8 sps:$4 sm:$0xff]  }
  0xf7   :  { %1502 = vmatprep.subr.bf16.mxu0 %v4114_v0  ;;  %1545 = vmatprep.subr.bf16.mxu1 %v4117_v1  ;;  %v4205_v63 = vld [vmem:[#allocation8 + $0x1a0] ss:$8 sps:$4 sm:$0xff]   ;;  %v4210_v0 = vld [vmem:[#allocation8 + $0x94] ss:$8 sps:$4 sm:$0xff]  }
  0xf8   :  { %v4213_v1 = vld [vmem:[#allocation8 + $0x194] ss:$8 sps:$4 sm:$0xff]  }
  0xfa   :  { %1503 = vmatpush2.bf16.msra.mxu0 %v4112_v2  ;;  %1546 = vmatpush2.bf16.msra.mxu1 %v4115_v3  ;;  %v1639_v2 = vlaneseq  ;;  %v4208_v3 = vld [vmem:[#allocation8 + $0x90] ss:$8 sps:$4 sm:$0xff]  }
  0xfb   :  { %1504 = vmatprep.subr.bf16.mxu0 %v4120_v4  ;;  %1547 = vmatprep.subr.bf16.mxu1 %v4123_v5  ;;  %v4211_v4 = vld [vmem:[#allocation8 + $0x190] ss:$8 sps:$4 sm:$0xff]   ;;  %v4216_v5 = vld [vmem:[#allocation8 + $0x84] ss:$8 sps:$4 sm:$0xff]  }
  0xfe   :  { %1505 = vmatpush2.bf16.msra.mxu0 %v4118_v6  ;;  %1548 = vmatpush2.bf16.msra.mxu1 %v4121_v8  ;;  %v4219_v6 = vld [vmem:[#allocation8 + $0x184] ss:$8 sps:$4 sm:$0xff]   ;;  %v4626_v8 = vshrl.u32 %v1639_v2, 7  ;;  %v4235_v2 = vld [vmem:[#allocation8 + $0x350] ss:$8 sps:$4 sm:$0xff]  }
  0xff   :  { %2195 = vmatprep.subr.bf16.mxu0 %v4126_v9  ;;  %2238 = vmatprep.subr.bf16.mxu1 %v4129_v10  ;;  %v4214_v9 = vld [vmem:[#allocation8 + $0x80] ss:$8 sps:$4 sm:$0xff]  }
 0x100   :  { %v4217_v10 = vld [vmem:[#allocation8 + $0x180] ss:$8 sps:$4 sm:$0xff]  }
 0x101   :  { %1507 = vmatmul.mubr.bf16.vlgmr.msra.gmra.mxu0 %v4614_v7  ;;  %1550 = vmatmul.mubr.bf16.vlgmr.msra.gmra.mxu1 %v4614_v7  ;;  %v4145_v7 = vld [vmem:[#allocation8 + $0x140] ss:$8 sps:$4 sm:$0xff]  }
 0x102   :  { %2196 = vmatpush1.bf16.msra.mxu0 %v4124_v11  ;;  %2239 = vmatpush1.bf16.msra.mxu1 %v4127_v12  ;;  %v4222_v11 = vld [vmem:[#allocation8 + $0x274] ss:$8 sps:$4 sm:$0xff]  }
 0x103   :  { %2197 = vmatprep.subr.bf16.mxu0 %v4132_v13  ;;  %2240 = vmatprep.subr.bf16.mxu1 %v4135_v14  ;;  %v4225_v12 = vld [vmem:[#allocation8 + $0x374] ss:$8 sps:$4 sm:$0xff]   ;;  %v4629_v13 = vsub.s32 0, %v4626_v8 }
 0x104   :  { %v4631_v14 = vld [vmem:[#allocation7] sm:$0xff] }
 0x106   :  { %2198 = vmatpush1.bf16.msra.mxu0 %v4130_v15  ;;  %2241 = vmatpush1.bf16.msra.mxu1 %v4133_v16  ;;  %v4634_v15 = vsub.s32 1, %v4626_v8  ;;  %v1653_v16 = vsub.s32 3, %v4626_v8 }
 0x107   :  { %2199 = vmatprep.subr.bf16.mxu0 %v4138_v17  ;;  %2242 = vmatprep.subr.bf16.mxu1 %v4141_v18  ;;  %v1649_v17 = vsub.s32 2, %v4626_v8  ;;  %v1642_v18 = vrot.slane %v4631_v14, %v4629_v13 }
 0x10a   :  { %2200 = vmatpush1.bf16.msra.mxu0 %v4136_v19  ;;  %2243 = vmatpush1.bf16.msra.mxu1 %v4139_v20 }
 0x10b   :  { %2201 = vmatprep.subr.bf16.mxu0 %v4144_v21  ;;  %2244 = vmatprep.subr.bf16.mxu1 %v4147_v22  ;;  %v1646_v21 = vrot.slane %v4631_v14, %v4634_v15  ;;  %v1654_v22 = vrot.slane %v4631_v14, %v1653_v16 }
 0x10e   :  { %2202 = vmatpush1.bf16.msra.mxu0 %v4142_v23  ;;  %2245 = vmatpush1.bf16.msra.mxu1 %v4145_v7  ;;  %v1650_v23 = vrot.slane %v4631_v14, %v1649_v17 }
 0x10f   :  { %2203 = vmatprep.subr.bf16.mxu0 %v4150_v24  ;;  %2246 = vmatprep.subr.bf16.mxu1 %v4153_v25 }
 0x112   :  { %2204 = vmatpush1.bf16.msra.mxu0 %v4148_v26  ;;  %2247 = vmatpush1.bf16.msra.mxu1 %v4151_v27 }
 0x113   :  { %2205 = vmatprep.subr.bf16.mxu0 %v4156_v51  ;;  %2248 = vmatprep.subr.bf16.mxu1 %v4159_v28 }
 0x116   :  { %2206 = vmatpush1.bf16.msra.mxu0 %v4154_v29  ;;  %2249 = vmatpush1.bf16.msra.mxu1 %v4157_v30 }
 0x117   :  { %2207 = vmatprep.subr.bf16.mxu0 %v4162_v31  ;;  %2250 = vmatprep.subr.bf16.mxu1 %v4165_v32 }
 0x11a   :  { %2208 = vmatpush1.bf16.msra.mxu0 %v4160_v33  ;;  %2251 = vmatpush1.bf16.msra.mxu1 %v4163_v34 }
 0x11b   :  { %2209 = vmatprep.subr.bf16.mxu0 %v4168_v35  ;;  %2252 = vmatprep.subr.bf16.mxu1 %v4171_v36 }
 0x11e   :  { %2210 = vmatpush1.bf16.msra.mxu0 %v4166_v37  ;;  %2253 = vmatpush1.bf16.msra.mxu1 %v4169_v38 }
 0x11f   :  { %2211 = vmatprep.subr.bf16.mxu0 %v4174_v39  ;;  %2254 = vmatprep.subr.bf16.mxu1 %v4177_v40 }
 0x122   :  { %2212 = vmatpush2.bf16.msra.mxu0 %v4172_v41  ;;  %2255 = vmatpush2.bf16.msra.mxu1 %v4175_v42 }
 0x123   :  { %2213 = vmatprep.subr.bf16.mxu0 %v4180_v43  ;;  %2256 = vmatprep.subr.bf16.mxu1 %v4183_v44 }
 0x126   :  { %2214 = vmatpush2.bf16.msra.mxu0 %v4178_v45  ;;  %2257 = vmatpush2.bf16.msra.mxu1 %v4181_v46 }
 0x127   :  { %2215 = vmatprep.subr.bf16.mxu0 %v4186_v47  ;;  %2258 = vmatprep.subr.bf16.mxu1 %v4189_v48 }
 0x12a   :  { %2216 = vmatpush2.bf16.msra.mxu0 %v4184_v49  ;;  %2259 = vmatpush2.bf16.msra.mxu1 %v4187_v50 }
 0x12b   :  { %2217 = vmatprep.subr.bf16.mxu0 %v4192_v52  ;;  %2260 = vmatprep.subr.bf16.mxu1 %v4195_v53  ;;  %v4220_v53 = vld [vmem:[#allocation8 + $0x270] ss:$8 sps:$4 sm:$0xff]  }
 0x12e   :  { %2218 = vmatpush2.bf16.msra.mxu0 %v4190_v54  ;;  %2261 = vmatpush2.bf16.msra.mxu1 %v4193_v55 }
 0x12f   :  { %2219 = vmatprep.subr.bf16.mxu0 %v4198_v56  ;;  %2262 = vmatprep.subr.bf16.mxu1 %v4201_v57  ;;  %v4223_v57 = vld [vmem:[#allocation8 + $0x370] ss:$8 sps:$4 sm:$0xff]  }
 0x132   :  { %2220 = vmatpush2.bf16.msra.mxu0 %v4196_v58  ;;  %2263 = vmatpush2.bf16.msra.mxu1 %v4199_v59  ;;  %v4228_v58 = vld [vmem:[#allocation8 + $0x264] ss:$8 sps:$4 sm:$0xff]  }
 0x133   :  { %2221 = vmatprep.subr.bf16.mxu0 %v4204_v60  ;;  %2264 = vmatprep.subr.bf16.mxu1 %v4207_v61  ;;  %v4231_v60 = vld [vmem:[#allocation8 + $0x364] ss:$8 sps:$4 sm:$0xff]   ;;  %v4226_v61 = vld [vmem:[#allocation8 + $0x260] ss:$8 sps:$4 sm:$0xff]  }
 0x136   :  { %2222 = vmatpush2.bf16.msra.mxu0 %v4202_v62  ;;  %2265 = vmatpush2.bf16.msra.mxu1 %v4205_v63  ;;  %v4229_v62 = vld [vmem:[#allocation8 + $0x360] ss:$8 sps:$4 sm:$0xff]   ;;  %v4234_v63 = vld [vmem:[#allocation8 + $0x254] ss:$8 sps:$4 sm:$0xff]  }
 0x137   :  { %2223 = vmatprep.subr.bf16.mxu0 %v4210_v0  ;;  %2266 = vmatprep.subr.bf16.mxu1 %v4213_v1  ;;  %v4237_v0 = vld [vmem:[#allocation8 + $0x354] ss:$8 sps:$4 sm:$0xff]   ;;  %v4232_v1 = vld [vmem:[#allocation8 + $0x250] ss:$8 sps:$4 sm:$0xff]  }
 0x13a   :  { %2224 = vmatpush2.bf16.msra.mxu0 %v4208_v3  ;;  %2267 = vmatpush2.bf16.msra.mxu1 %v4211_v4  ;;  %v4240_v3 = vld [vmem:[#allocation8 + $0x244] ss:$8 sps:$4 sm:$0xff]  }
 0x13b   :  { %2225 = vmatprep.subr.bf16.mxu0 %v4216_v5  ;;  %2268 = vmatprep.subr.bf16.mxu1 %v4219_v6  ;;  %v4243_v4 = vld [vmem:[#allocation8 + $0x344] ss:$8 sps:$4 sm:$0xff]   ;;  %v4238_v5 = vld [vmem:[#allocation8 + $0x240] ss:$8 sps:$4 sm:$0xff]  }
 0x13c   :  { %v4241_v6 = vld [vmem:[#allocation8 + $0x340] ss:$8 sps:$4 sm:$0xff]  }
 0x13e   :  { %2226 = vmatpush2.bf16.msra.mxu0 %v4214_v9  ;;  %2269 = vmatpush2.bf16.msra.mxu1 %v4217_v10  ;;  %v4246_v9 = vld [vmem:[#allocation8 + $0x234] ss:$8 sps:$4 sm:$0xff]  }
 0x13f   :  { %2739 = vmatprep.subr.bf16.mxu0 %v4222_v11  ;;  %2782 = vmatprep.subr.bf16.mxu1 %v4225_v12  ;;  %v4249_v10 = vld [vmem:[#allocation8 + $0x334] ss:$8 sps:$4 sm:$0xff]   ;;  %v4244_v11 = vld [vmem:[#allocation8 + $0x230] ss:$8 sps:$4 sm:$0xff]  }
 0x140   :  { %v4247_v12 = vld [vmem:[#allocation8 + $0x330] ss:$8 sps:$4 sm:$0xff]  }
 0x141   :  { %v1336_v19 = vpop.f32.mrf.mxu0  ;;  %v1379_v20 = vpop.f32.mrf.mxu1 }
 0x142   :  { %v1699_v25 = vadd.f32 %v1642_v18, %v1336_v19  ;;  %v1701_v31 = vadd.f32 %v1650_v23, %v1379_v20  ;;  %v4255_v19 = vld [vmem:[#allocation8 + $0x324] ss:$8 sps:$4 sm:$0xff]   ;;  %v4250_v20 = vld [vmem:[#allocation8 + $0x220] ss:$8 sps:$4 sm:$0xff]  }
 0x143   :  { %v1338_v7 = vpop.f32.mrf.mxu0  ;;  %v1381_v24 = vpop.f32.mrf.mxu1 }
 0x144   :  { %v1700_v26 = vadd.f32 %v1646_v21, %v1338_v7  ;;  %v1702_v28 = vadd.f32 %v1654_v22, %v1381_v24  ;;  %vm1723_vm0 = vcmp.gt.f32.partialorder %v1699_v25, 0.0  ;;  %v1747_v39 = vmul.f32 0.2, %v1699_v25  ;;  %v4256_v7 = vld [vmem:[#allocation8 + $0x210] ss:$8 sps:$4 sm:$0xff]  }
 0x145   :  { %v1340_v27 = vpop.f32.mrf.mxu0  ;;  %v1383_v51 = vpop.f32.mrf.mxu1  ;;  %v1749_v41 = vmul.f32 0.2, %v1701_v31  ;;  %vm1725_vm6 = vcmp.gt.f32.partialorder %v1701_v31, 0.0  ;;  %v4259_v24 = vld [vmem:[#allocation8 + $0x310] ss:$8 sps:$4 sm:$0xff]  }
 0x146   :  { %v1711_v29 = vadd.f32 %v1642_v18, %v1340_v27  ;;  %v1713_v30 = vadd.f32 %v1650_v23, %v1383_v51  ;;  %v1748_v34 = vmul.f32 0.2, %v1700_v26  ;;  %vm1724_vm2 = vcmp.gt.f32.partialorder %v1700_v26, 0.0  ;;  %v4252_v18 = vld [vmem:[#allocation8 + $0x224] ss:$8 sps:$4 sm:$0xff]  }
 0x147   :  { %v1342_v32 = vpop.f32.mrf.mxu0  ;;  %v1385_v33 = vpop.f32.mrf.mxu1  ;;  %v1750_v40 = vmul.f32 0.2, %v1702_v28  ;;  %vm1726_vm4 = vcmp.gt.f32.partialorder %v1702_v28, 0.0  ;;  %v1771_v48 = vsel %vm1723_vm0, %v1699_v25, %v1747_v39  ;;  %v1773_v54 = vsel %vm1725_vm6, %v1701_v31, %v1749_v41  ;;  %v4261_v23 = vld [vmem:[#allocation8 + $0x314] ss:$8 sps:$4 sm:$0xff]  }
 0x148   :  { %v1759_v35 = vmul.f32 0.2, %v1711_v29  ;;  %vm1735_vm1 = vcmp.gt.f32.partialorder %v1711_v29, 0.0  ;;  %v1761_v36 = vmul.f32 0.2, %v1713_v30  ;;  %v1712_v37 = vadd.f32 %v1646_v21, %v1342_v32 }
 0x149   :  { %v1714_v38 = vadd.f32 %v1654_v22, %v1385_v33  ;;  %vm1737_vm3 = vcmp.gt.f32.partialorder %v1713_v30, 0.0  ;;  %v1772_v46 = vsel %vm1724_vm2, %v1700_v26, %v1748_v34  ;;  %v1774_v50 = vsel %vm1726_vm4, %v1702_v28, %v1750_v40  ;;  %v4253_v21 = vld [vmem:[#allocation8 + $0x320] ss:$8 sps:$4 sm:$0xff]   ;;  %v4258_v22 = vld [vmem:[#allocation8 + $0x214] ss:$8 sps:$4 sm:$0xff]  }
 0x14a   :  { %vm1736_vm5 = vcmp.gt.f32.partialorder %v1712_v37, 0.0  ;;  %v1760_v42 = vmul.f32 0.2, %v1712_v37  ;;  %v1783_v43 = vsel %vm1735_vm1, %v1711_v29, %v1759_v35  ;;  %v1785_v45 = vsel %vm1737_vm3, %v1713_v30, %v1761_v36  ;;  %v4264_v25 = vld [vmem:[#allocation8 + $0x204] ss:$8 sps:$4 sm:$0xff]  }
 0x14b   :  { %vm1738_vm7 = vcmp.gt.f32.partialorder %v1714_v38, 0.0  ;;  %v1762_v44 = vmul.f32 0.2, %v1714_v38  ;;  %v1795_v55 = vpack.c.bf16 %v1783_v43, %v1771_v48  ;;  %v1797_v59 = vpack.c.bf16 %v1785_v45, %v1773_v54  ;;  %v4267_v26 = vld [vmem:[#allocation8 + $0x304] ss:$8 sps:$4 sm:$0xff]  }
 0x14c   :  { %v1784_v47 = vsel %vm1736_vm5, %v1712_v37, %v1760_v42  ;;  %v4262_v27 = vld [vmem:[#allocation8 + $0x200] ss:$8 sps:$4 sm:$0xff]   ;;  %v4270_v28 = vld [vmem:[#allocation8 + $0x2f4] ss:$8 sps:$4 sm:$0xff]   ;;  %v4268_v30 = vld [vmem:[#allocation8 + $0x2f0] ss:$8 sps:$4 sm:$0xff]  }
 0x14d   :  { %v1796_v49 = vpack.c.bf16 %v1784_v47, %v1772_v46  ;;  %v1786_v52 = vsel %vm1738_vm7, %v1714_v38, %v1762_v44  ;;  %v4265_v51 = vld [vmem:[#allocation8 + $0x300] ss:$8 sps:$4 sm:$0xff]   ;;  %v4273_v29 = vld [vmem:[#allocation8 + $0x3f4] ss:$8 sps:$4 sm:$0xff]   ;;  %v4271_v31 = vld [vmem:[#allocation8 + $0x3f0] ss:$8 sps:$4 sm:$0xff]  }
 0x14e   :  { %v1798_v56 = vpack.c.bf16 %v1786_v52, %v1774_v50  ;;  %v4276_v32 = vld [vmem:[#allocation8 + $0x2e4] ss:$8 sps:$4 sm:$0xff]   ;;  %v4274_v34 = vld [vmem:[#allocation8 + $0x2e0] ss:$8 sps:$4 sm:$0xff]   ;;  %v4282_v36 = vld [vmem:[#allocation8 + $0x2d4] ss:$8 sps:$4 sm:$0xff]  }
 0x14f   :  { %2227 = vmatprep.mubr.bf16.mxu0 %v1796_v49  ;;  %v4279_v33 = vld [vmem:[#allocation8 + $0x3e4] ss:$8 sps:$4 sm:$0xff]   ;;  %v4277_v35 = vld [vmem:[#allocation8 + $0x3e0] ss:$8 sps:$4 sm:$0xff]   ;;  %v4285_v37 = vld [vmem:[#allocation8 + $0x3d4] ss:$8 sps:$4 sm:$0xff]  }
 0x150   :  { %2270 = vmatprep.mubr.bf16.mxu1 %v1798_v56  ;;  %2228 = vmatmul.mubr.bf16.vlgmr.msra.gmra.mxu0 %v1795_v55  ;;  %v4280_v38 = vld [vmem:[#allocation8 + $0x2d0] ss:$8 sps:$4 sm:$0xff]   ;;  %v4288_v40 = vld [vmem:[#allocation8 + $0x2c4] ss:$8 sps:$4 sm:$0xff]   ;;  %v4286_v42 = vld [vmem:[#allocation8 + $0x2c0] ss:$8 sps:$4 sm:$0xff]  }
 0x151   :  { %2271 = vmatmul.mubr.bf16.vlgmr.msra.gmra.mxu1 %v1797_v59  ;;  %2740 = vmatpush1.bf16.msra.mxu0 %v4220_v53  ;;  %v4283_v39 = vld [vmem:[#allocation8 + $0x3d0] ss:$8 sps:$4 sm:$0xff]   ;;  %v4291_v41 = vld [vmem:[#allocation8 + $0x3c4] ss:$8 sps:$4 sm:$0xff]   ;;  %v4289_v43 = vld [vmem:[#allocation8 + $0x3c0] ss:$8 sps:$4 sm:$0xff]  }
 0x152   :  { %2783 = vmatpush1.bf16.msra.mxu1 %v4223_v57  ;;  %2741 = vmatprep.subr.bf16.mxu0 %v4228_v58  ;;  %v4294_v44 = vld [vmem:[#allocation8 + $0x2b4] ss:$8 sps:$4 sm:$0xff]   ;;  %v1657_v46 = vsub.s32 4, %v4626_v8  ;;  %v1661_v47 = vsub.s32 5, %v4626_v8  ;;  %v4292_v48 = vld [vmem:[#allocation8 + $0x2b0] ss:$8 sps:$4 sm:$0xff]  }
 0x153   :  { %2784 = vmatprep.subr.bf16.mxu1 %v4231_v60  ;;  %v4297_v45 = vld [vmem:[#allocation8 + $0x3b4] ss:$8 sps:$4 sm:$0xff]   ;;  %v1669_v49 = vsub.s32 7, %v4626_v8  ;;  %v4295_v50 = vld [vmem:[#allocation8 + $0x3b0] ss:$8 sps:$4 sm:$0xff]   ;;  %v1665_v52 = vsub.s32 6, %v4626_v8 }
 0x154   :  { %v4300_v53 = vld [vmem:[#allocation8 + $0x2a4] ss:$8 sps:$4 sm:$0xff]   ;;  %v1658_v54 = vrot.slane %v4631_v14, %v1657_v46  ;;  %v1662_v58 = vrot.slane %v4631_v14, %v1661_v47  ;;  %v4298_v60 = vld [vmem:[#allocation8 + $0x2a0] ss:$8 sps:$4 sm:$0xff]   ;;  %v4319_v47 = vld [vmem:[#allocation8 + $0x570] ss:$8 sps:$4 sm:$0xff]  }
 0x155   :  { %2742 = vmatpush1.bf16.msra.mxu0 %v4226_v61  ;;  %v4303_v55 = vld [vmem:[#allocation8 + $0x3a4] ss:$8 sps:$4 sm:$0xff]   ;;  %v1670_v59 = vrot.slane %v4631_v14, %v1669_v49  ;;  %v1666_v61 = vrot.slane %v4631_v14, %v1665_v52  ;;  %v4322_v52 = vld [vmem:[#allocation8 + $0x460] ss:$8 sps:$4 sm:$0xff]  }
 0x156   :  { %2785 = vmatpush1.bf16.msra.mxu1 %v4229_v62  ;;  %2743 = vmatprep.subr.bf16.mxu0 %v4234_v63 }
 0x157   :  { %2786 = vmatprep.subr.bf16.mxu1 %v4237_v0  ;;  %v4301_v0 = vld [vmem:[#allocation8 + $0x3a0] ss:$8 sps:$4 sm:$0xff]  }
 0x159   :  { %2744 = vmatpush1.bf16.msra.mxu0 %v4232_v1  ;;  %v4306_v1 = vld [vmem:[#allocation8 + $0x294] ss:$8 sps:$4 sm:$0xff]  }
 0x15a   :  { %2787 = vmatpush1.bf16.msra.mxu1 %v4235_v2  ;;  %2745 = vmatprep.subr.bf16.mxu0 %v4240_v3  ;;  %v4309_v3 = vld [vmem:[#allocation8 + $0x394] ss:$8 sps:$4 sm:$0xff]  }
 0x15b   :  { %2788 = vmatprep.subr.bf16.mxu1 %v4243_v4 }
 0x15d   :  { %2746 = vmatpush1.bf16.msra.mxu0 %v4238_v5 }
 0x15e   :  { %2789 = vmatpush1.bf16.msra.mxu1 %v4241_v6  ;;  %2747 = vmatprep.subr.bf16.mxu0 %v4246_v9 }
 0x15f   :  { %2790 = vmatprep.subr.bf16.mxu1 %v4249_v10 }
 0x161   :  { %2748 = vmatpush1.bf16.msra.mxu0 %v4244_v11 }
 0x162   :  { %2791 = vmatpush1.bf16.msra.mxu1 %v4247_v12  ;;  %2749 = vmatprep.subr.bf16.mxu0 %v4252_v18  ;;  %v4304_v12 = vld [vmem:[#allocation8 + $0x290] ss:$8 sps:$4 sm:$0xff]  }
 0x163   :  { %2792 = vmatprep.subr.bf16.mxu1 %v4255_v19 }
 0x165   :  { %2750 = vmatpush1.bf16.msra.mxu0 %v4250_v20  ;;  %v4307_v20 = vld [vmem:[#allocation8 + $0x390] ss:$8 sps:$4 sm:$0xff]  }
 0x166   :  { %2793 = vmatpush1.bf16.msra.mxu1 %v4253_v21  ;;  %2751 = vmatprep.subr.bf16.mxu0 %v4258_v22  ;;  %v4312_v21 = vld [vmem:[#allocation8 + $0x284] ss:$8 sps:$4 sm:$0xff]  }
 0x167   :  { %2794 = vmatprep.subr.bf16.mxu1 %v4261_v23  ;;  %v4315_v22 = vld [vmem:[#allocation8 + $0x384] ss:$8 sps:$4 sm:$0xff]  }
 0x169   :  { %2752 = vmatpush1.bf16.msra.mxu0 %v4256_v7 }
 0x16a   :  { %2795 = vmatpush1.bf16.msra.mxu1 %v4259_v24  ;;  %2753 = vmatprep.subr.bf16.mxu0 %v4264_v25  ;;  %v4310_v24 = vld [vmem:[#allocation8 + $0x280] ss:$8 sps:$4 sm:$0xff]  }
 0x16b   :  { %2796 = vmatprep.subr.bf16.mxu1 %v4267_v26 }
 0x16d   :  { %2754 = vmatpush1.bf16.msra.mxu0 %v4262_v27 }
 0x16e   :  { %2797 = vmatpush1.bf16.msra.mxu1 %v4265_v51  ;;  %2755 = vmatprep.subr.bf16.mxu0 %v4270_v28  ;;  %v4313_v51 = vld [vmem:[#allocation8 + $0x380] ss:$8 sps:$4 sm:$0xff]   ;;  %v4318_v28 = vld [vmem:[#allocation8 + $0x474] ss:$8 sps:$4 sm:$0xff]  }
 0x16f   :  { %2798 = vmatprep.subr.bf16.mxu1 %v4273_v29 }
 0x171   :  { %2756 = vmatpush2.bf16.msra.mxu0 %v4268_v30 }
 0x172   :  { %2799 = vmatpush2.bf16.msra.mxu1 %v4271_v31  ;;  %2757 = vmatprep.subr.bf16.mxu0 %v4276_v32 }
 0x173   :  { %2800 = vmatprep.subr.bf16.mxu1 %v4279_v33 }
 0x175   :  { %2758 = vmatpush2.bf16.msra.mxu0 %v4274_v34 }
 0x176   :  { %2801 = vmatpush2.bf16.msra.mxu1 %v4277_v35  ;;  %2759 = vmatprep.subr.bf16.mxu0 %v4282_v36  ;;  %v4321_v35 = vld [vmem:[#allocation8 + $0x574] ss:$8 sps:$4 sm:$0xff]  }
 0x177   :  { %2802 = vmatprep.subr.bf16.mxu1 %v4285_v37 }
 0x179   :  { %2760 = vmatpush2.bf16.msra.mxu0 %v4280_v38 }
 0x17a   :  { %2803 = vmatpush2.bf16.msra.mxu1 %v4283_v39  ;;  %2761 = vmatprep.subr.bf16.mxu0 %v4288_v40 }
 0x17b   :  { %2804 = vmatprep.subr.bf16.mxu1 %v4291_v41 }
 0x17d   :  { %2762 = vmatpush2.bf16.msra.mxu0 %v4286_v42 }
 0x17e   :  { %2805 = vmatpush2.bf16.msra.mxu1 %v4289_v43  ;;  %2763 = vmatprep.subr.bf16.mxu0 %v4294_v44  ;;  %v4316_v43 = vld [vmem:[#allocation8 + $0x470] ss:$8 sps:$4 sm:$0xff]  }
 0x17f   :  { %2806 = vmatprep.subr.bf16.mxu1 %v4297_v45 }
 0x181   :  { %v1422_v56 = vpop.f32.mrf.mxu0  ;;  %v1465_v57 = vpop.f32.mrf.mxu1  ;;  %2764 = vmatpush2.bf16.msra.mxu0 %v4292_v48  ;;  %v4324_v48 = vld [vmem:[#allocation8 + $0x464] ss:$8 sps:$4 sm:$0xff]  }
 0x182   :  { %2807 = vmatpush2.bf16.msra.mxu1 %v4295_v50  ;;  %2765 = vmatprep.subr.bf16.mxu0 %v4300_v53  ;;  %v1703_v2 = vadd.f32 %v1658_v54, %v1422_v56  ;;  %v1705_v18 = vadd.f32 %v1666_v61, %v1465_v57  ;;  %v4327_v50 = vld [vmem:[#allocation8 + $0x564] ss:$8 sps:$4 sm:$0xff]   ;;  %v4325_v53 = vld [vmem:[#allocation8 + $0x560] ss:$8 sps:$4 sm:$0xff]   ;;  %v4328_v56 = vld [vmem:[#allocation8 + $0x450] ss:$8 sps:$4 sm:$0xff]  }
 0x183   :  { %v1424_v62 = vpop.f32.mrf.mxu0  ;;  %v1467_v63 = vpop.f32.mrf.mxu1  ;;  %2808 = vmatprep.subr.bf16.mxu1 %v4303_v55  ;;  %v4333_v55 = vld [vmem:[#allocation8 + $0x554] ss:$8 sps:$4 sm:$0xff]   ;;  %v4331_v57 = vld [vmem:[#allocation8 + $0x550] ss:$8 sps:$4 sm:$0xff]  }
 0x184   :  { %v1704_v4 = vadd.f32 %v1662_v58, %v1424_v62  ;;  %v1706_v9 = vadd.f32 %v1670_v59, %v1467_v63  ;;  %vm1727_vm8 = vcmp.gt.f32.partialorder %v1703_v2, 0.0  ;;  %v1751_v29 = vmul.f32 0.2, %v1703_v2  ;;  %v4342_v62 = vld [vmem:[#allocation8 + $0x434] ss:$8 sps:$4 sm:$0xff]  }
 0x185   :  { %v1426_v5 = vpop.f32.mrf.mxu0  ;;  %v1469_v6 = vpop.f32.mrf.mxu1  ;;  %2766 = vmatpush2.bf16.msra.mxu0 %v4298_v60  ;;  %v1753_v31 = vmul.f32 0.2, %v1705_v18  ;;  %vm1729_vm14 = vcmp.gt.f32.partialorder %v1705_v18, 0.0  ;;  %v4334_v60 = vld [vmem:[#allocation8 + $0x440] ss:$8 sps:$4 sm:$0xff]  }
 0x186   :  { %v1715_v10 = vadd.f32 %v1658_v54, %v1426_v5  ;;  %v1717_v11 = vadd.f32 %v1666_v61, %v1469_v6  ;;  %2809 = vmatpush2.bf16.msra.mxu1 %v4301_v0  ;;  %2767 = vmatprep.subr.bf16.mxu0 %v4306_v1  ;;  %v1752_v23 = vmul.f32 0.2, %v1704_v4  ;;  %vm1728_vm10 = vcmp.gt.f32.partialorder %v1704_v4, 0.0  ;;  %v4330_v54 = vld [vmem:[#allocation8 + $0x454] ss:$8 sps:$4 sm:$0xff]  }
 0x187   :  { %v1428_v14 = vpop.f32.mrf.mxu0  ;;  %v1471_v19 = vpop.f32.mrf.mxu1  ;;  %2810 = vmatprep.subr.bf16.mxu1 %v4309_v3  ;;  %v1754_v30 = vmul.f32 0.2, %v1706_v9  ;;  %vm1730_vm12 = vcmp.gt.f32.partialorder %v1706_v9, 0.0  ;;  %v1775_v39 = vsel %vm1727_vm8, %v1703_v2, %v1751_v29  ;;  %v1777_v44 = vsel %vm1729_vm14, %v1705_v18, %v1753_v31  ;;  %v4337_v61 = vld [vmem:[#allocation8 + $0x540] ss:$8 sps:$4 sm:$0xff]  }
 0x188   :  { %v1763_v7 = vmul.f32 0.2, %v1715_v10  ;;  %vm1739_vm9 = vcmp.gt.f32.partialorder %v1715_v10, 0.0  ;;  %v1765_v25 = vmul.f32 0.2, %v1717_v11  ;;  %v1716_v26 = vadd.f32 %v1662_v58, %v1428_v14 }
 0x189   :  { %v1718_v27 = vadd.f32 %v1670_v59, %v1471_v19  ;;  %vm1741_vm11 = vcmp.gt.f32.partialorder %v1717_v11, 0.0  ;;  %2768 = vmatpush2.bf16.msra.mxu0 %v4304_v12  ;;  %v1776_v37 = vsel %vm1728_vm10, %v1704_v4, %v1752_v23  ;;  %v1778_v41 = vsel %vm1730_vm12, %v1706_v9, %v1754_v30  ;;  %v4336_v58 = vld [vmem:[#allocation8 + $0x444] ss:$8 sps:$4 sm:$0xff]   ;;  %v4345_v63 = vld [vmem:[#allocation8 + $0x534] ss:$8 sps:$4 sm:$0xff]  }
 0x18a   :  { %vm1740_vm13 = vcmp.gt.f32.partialorder %v1716_v26, 0.0  ;;  %v1764_v32 = vmul.f32 0.2, %v1716_v26  ;;  %2811 = vmatpush2.bf16.msra.mxu1 %v4307_v20  ;;  %2769 = vmatprep.subr.bf16.mxu0 %v4312_v21  ;;  %v1787_v33 = vsel %vm1739_vm9, %v1715_v10, %v1763_v7  ;;  %v1789_v36 = vsel %vm1741_vm11, %v1717_v11, %v1765_v25  ;;  %v4339_v59 = vld [vmem:[#allocation8 + $0x544] ss:$8 sps:$4 sm:$0xff]  }
 0x18b   :  { %vm1742_vm15 = vcmp.gt.f32.partialorder %v1718_v27, 0.0  ;;  %v1766_v34 = vmul.f32 0.2, %v1718_v27  ;;  %2812 = vmatprep.subr.bf16.mxu1 %v4315_v22  ;;  %v2337_v45 = vpack.c.bf16 %v1787_v33, %v1775_v39  ;;  %v2339_v49 = vpack.c.bf16 %v1789_v36, %v1777_v44  ;;  %v4340_v0 = vld [vmem:[#allocation8 + $0x430] ss:$8 sps:$4 sm:$0xff]  }
 0x18c   :  { %v1788_v38 = vsel %vm1740_vm13, %v1716_v26, %v1764_v32  ;;  %v4343_v1 = vld [vmem:[#allocation8 + $0x530] ss:$8 sps:$4 sm:$0xff]   ;;  %v4348_v2 = vld [vmem:[#allocation8 + $0x424] ss:$8 sps:$4 sm:$0xff]   ;;  %v4346_v4 = vld [vmem:[#allocation8 + $0x420] ss:$8 sps:$4 sm:$0xff]  }
 0x18d   :  { %2770 = vmatpush2.bf16.msra.mxu0 %v4310_v24  ;;  %v2338_v40 = vpack.c.bf16 %v1788_v38, %v1776_v37  ;;  %v1790_v42 = vsel %vm1742_vm15, %v1718_v27, %v1766_v34  ;;  %v4351_v3 = vld [vmem:[#allocation8 + $0x524] ss:$8 sps:$4 sm:$0xff]   ;;  %v4349_v5 = vld [vmem:[#allocation8 + $0x520] ss:$8 sps:$4 sm:$0xff]   ;;  %v4354_v6 = vld [vmem:[#allocation8 + $0x414] ss:$8 sps:$4 sm:$0xff]  }
 0x18e   :  { %2813 = vmatpush2.bf16.msra.mxu1 %v4313_v51  ;;  %v2340_v46 = vpack.c.bf16 %v1790_v42, %v1778_v41  ;;  %3284 = vmatprep.subr.bf16.mxu0 %v4318_v28  ;;  %v4357_v9 = vld [vmem:[#allocation8 + $0x514] ss:$8 sps:$4 sm:$0xff]   ;;  %v4352_v10 = vld [vmem:[#allocation8 + $0x410] ss:$8 sps:$4 sm:$0xff]   ;;  %v4360_v12 = vld [vmem:[#allocation8 + $0x404] ss:$8 sps:$4 sm:$0xff]  }
 0x18f   :  { %2771 = vmatprep.mubr.bf16.mxu0 %v2338_v40  ;;  %3327 = vmatprep.subr.bf16.mxu1 %v4321_v35  ;;  %v4355_v11 = vld [vmem:[#allocation8 + $0x510] ss:$8 sps:$4 sm:$0xff]   ;;  %v4363_v18 = vld [vmem:[#allocation8 + $0x504] ss:$8 sps:$4 sm:$0xff]   ;;  %v4358_v14 = vld [vmem:[#allocation8 + $0x400] ss:$8 sps:$4 sm:$0xff]  }
 0x190   :  { %2814 = vmatprep.mubr.bf16.mxu1 %v2340_v46  ;;  %2772 = vmatmul.mubr.bf16.vlgmr.msra.gmra.mxu0 %v2337_v45  ;;  %v4361_v19 = vld [vmem:[#allocation8 + $0x500] ss:$8 sps:$4 sm:$0xff]   ;;  %v4366_v20 = vld [vmem:[#allocation8 + $0x4f4] ss:$8 sps:$4 sm:$0xff]   ;;  %v4364_v22 = vld [vmem:[#allocation8 + $0x4f0] ss:$8 sps:$4 sm:$0xff]  }
 0x191   :  { %2815 = vmatmul.mubr.bf16.vlgmr.msra.gmra.mxu1 %v2339_v49  ;;  %3285 = vmatpush1.bf16.msra.mxu0 %v4316_v43  ;;  %v4369_v21 = vld [vmem:[#allocation8 + $0x5f4] ss:$8 sps:$4 sm:$0xff]   ;;  %v4367_v23 = vld [vmem:[#allocation8 + $0x5f0] ss:$8 sps:$4 sm:$0xff]   ;;  %v4372_v7 = vld [vmem:[#allocation8 + $0x4e4] ss:$8 sps:$4 sm:$0xff]  }
 0x192   :  { %3328 = vmatpush1.bf16.msra.mxu1 %v4319_v47  ;;  %3286 = vmatprep.subr.bf16.mxu0 %v4324_v48  ;;  %v4375_v24 = vld [vmem:[#allocation8 + $0x5e4] ss:$8 sps:$4 sm:$0xff]   ;;  %v4370_v25 = vld [vmem:[#allocation8 + $0x4e0] ss:$8 sps:$4 sm:$0xff]   ;;  %v4378_v27 = vld [vmem:[#allocation8 + $0x4d4] ss:$8 sps:$4 sm:$0xff]  }
 0x193   :  { %3329 = vmatprep.subr.bf16.mxu1 %v4327_v50  ;;  %v4373_v26 = vld [vmem:[#allocation8 + $0x5e0] ss:$8 sps:$4 sm:$0xff]   ;;  %v4381_v51 = vld [vmem:[#allocation8 + $0x5d4] ss:$8 sps:$4 sm:$0xff]   ;;  %v4376_v28 = vld [vmem:[#allocation8 + $0x4d0] ss:$8 sps:$4 sm:$0xff]  }
 0x194   :  { %v4379_v29 = vld [vmem:[#allocation8 + $0x5d0] ss:$8 sps:$4 sm:$0xff]   ;;  %v4384_v30 = vld [vmem:[#allocation8 + $0x4c4] ss:$8 sps:$4 sm:$0xff]   ;;  %v4382_v32 = vld [vmem:[#allocation8 + $0x4c0] ss:$8 sps:$4 sm:$0xff]  }
 0x195   :  { %3287 = vmatpush1.bf16.msra.mxu0 %v4322_v52  ;;  %v4387_v31 = vld [vmem:[#allocation8 + $0x5c4] ss:$8 sps:$4 sm:$0xff]   ;;  %v4385_v33 = vld [vmem:[#allocation8 + $0x5c0] ss:$8 sps:$4 sm:$0xff]   ;;  %v4390_v34 = vld [vmem:[#allocation8 + $0x4b4] ss:$8 sps:$4 sm:$0xff]  }
 0x196   :  { %3330 = vmatpush1.bf16.msra.mxu1 %v4325_v53  ;;  %3288 = vmatprep.subr.bf16.mxu0 %v4330_v54  ;;  %v4393_v35 = vld [vmem:[#allocation8 + $0x5b4] ss:$8 sps:$4 sm:$0xff]   ;;  %v4388_v37 = vld [vmem:[#allocation8 + $0x4b0] ss:$8 sps:$4 sm:$0xff]   ;;  %v4396_v39 = vld [vmem:[#allocation8 + $0x4a4] ss:$8 sps:$4 sm:$0xff]  }
 0x197   :  { %3331 = vmatprep.subr.bf16.mxu1 %v4333_v55  ;;  %v1636_v36 = vld [vmem:[#allocation7 + $0x8] sm:$0xf]  ;;  %v4391_v38 = vld [vmem:[#allocation8 + $0x5b0] ss:$8 sps:$4 sm:$0xff]   ;;  %v4399_v41 = vld [vmem:[#allocation8 + $0x5a4] ss:$8 sps:$4 sm:$0xff]  }
 0x198   :  { %v1674_v40 = vrot.slane %v1636_v36, %v4629_v13  ;;  %v1678_v44 = vrot.slane %v1636_v36, %v4634_v15  ;;  %v1686_v45 = vrot.slane %v1636_v36, %v1653_v16  ;;  %v4394_v46 = vld [vmem:[#allocation8 + $0x4a0] ss:$8 sps:$4 sm:$0xff]   ;;  %v1682_v47 = vrot.slane %v1636_v36, %v1649_v17  ;;  %v4402_v52 = vld [vmem:[#allocation8 + $0x494] ss:$8 sps:$4 sm:$0xff]   ;;  %v4400_v16 = vld [vmem:[#allocation8 + $0x490] ss:$8 sps:$4 sm:$0xff]  }
 0x199   :  { %3289 = vmatpush1.bf16.msra.mxu0 %v4328_v56  ;;  %v4397_v50 = vld [vmem:[#allocation8 + $0x5a0] ss:$8 sps:$4 sm:$0xff]   ;;  %v4405_v54 = vld [vmem:[#allocation8 + $0x594] ss:$8 sps:$4 sm:$0xff]  }
 0x19a   :  { %3332 = vmatpush1.bf16.msra.mxu1 %v4331_v57  ;;  %3290 = vmatprep.subr.bf16.mxu0 %v4336_v58 }
 0x19b   :  { %3333 = vmatprep.subr.bf16.mxu1 %v4339_v59 }
 0x19d   :  { %3291 = vmatpush1.bf16.msra.mxu0 %v4334_v60 }
 0x19e   :  { %3334 = vmatpush1.bf16.msra.mxu1 %v4337_v61  ;;  %3292 = vmatprep.subr.bf16.mxu0 %v4342_v62  ;;  %v4403_v62 = vld [vmem:[#allocation8 + $0x590] ss:$8 sps:$4 sm:$0xff]  }
 0x19f   :  { %3335 = vmatprep.subr.bf16.mxu1 %v4345_v63  ;;  %v4408_v63 = vld [vmem:[#allocation8 + $0x484] ss:$8 sps:$4 sm:$0xff]  }
 0x1a1   :  { %3293 = vmatpush1.bf16.msra.mxu0 %v4340_v0  ;;  %v4411_v0 = vld [vmem:[#allocation8 + $0x584] ss:$8 sps:$4 sm:$0xff]  }
 0x1a2   :  { %3336 = vmatpush1.bf16.msra.mxu1 %v4343_v1  ;;  %3294 = vmatprep.subr.bf16.mxu0 %v4348_v2 }
 0x1a3   :  { %3337 = vmatprep.subr.bf16.mxu1 %v4351_v3  ;;  %v4406_v3 = vld [vmem:[#allocation8 + $0x480] ss:$8 sps:$4 sm:$0xff]  }
 0x1a5   :  { %3295 = vmatpush1.bf16.msra.mxu0 %v4346_v4 }
 0x1a6   :  { %3338 = vmatpush1.bf16.msra.mxu1 %v4349_v5  ;;  %3296 = vmatprep.subr.bf16.mxu0 %v4354_v6 }
 0x1a7   :  { %3339 = vmatprep.subr.bf16.mxu1 %v4357_v9  ;;  %v4409_v9 = vld [vmem:[#allocation8 + $0x580] ss:$8 sps:$4 sm:$0xff]  }
 0x1a9   :  { %3297 = vmatpush1.bf16.msra.mxu0 %v4352_v10 }
 0x1aa   :  { %3340 = vmatpush1.bf16.msra.mxu1 %v4355_v11  ;;  %3298 = vmatprep.subr.bf16.mxu0 %v4360_v12 }
 0x1ab   :  { %3341 = vmatprep.subr.bf16.mxu1 %v4363_v18 }
 0x1ad   :  { %3299 = vmatpush1.bf16.msra.mxu0 %v4358_v14 }
 0x1ae   :  { %3342 = vmatpush1.bf16.msra.mxu1 %v4361_v19  ;;  %3300 = vmatprep.subr.bf16.mxu0 %v4366_v20 }
 0x1af   :  { %3343 = vmatprep.subr.bf16.mxu1 %v4369_v21 }
 0x1b1   :  { %3301 = vmatpush2.bf16.msra.mxu0 %v4364_v22 }
 0x1b2   :  { %3344 = vmatpush2.bf16.msra.mxu1 %v4367_v23  ;;  %3302 = vmatprep.subr.bf16.mxu0 %v4372_v7 }
 0x1b3   :  { %3345 = vmatprep.subr.bf16.mxu1 %v4375_v24 }
 0x1b5   :  { %3303 = vmatpush2.bf16.msra.mxu0 %v4370_v25 }
 0x1b6   :  { %3346 = vmatpush2.bf16.msra.mxu1 %v4373_v26  ;;  %3304 = vmatprep.subr.bf16.mxu0 %v4378_v27 }
 0x1b7   :  { %3347 = vmatprep.subr.bf16.mxu1 %v4381_v51 }
 0x1b9   :  { %3305 = vmatpush2.bf16.msra.mxu0 %v4376_v28 }
 0x1ba   :  { %3348 = vmatpush2.bf16.msra.mxu1 %v4379_v29  ;;  %3306 = vmatprep.subr.bf16.mxu0 %v4384_v30  ;;  %v1863_v29 = vld [vmem:[%s4717_s4] sm:$0x3] }
 0x1bb   :  { %3349 = vmatprep.subr.bf16.mxu1 %v4387_v31  ;;  %v1868_v30 = vrot.slane %v1863_v29, %v4629_v13  ;;  %v1872_v31 = vrot.slane %v1863_v29, %v4634_v15 }
 0x1bd   :  { %3307 = vmatpush2.bf16.msra.mxu0 %v4382_v32 }
 0x1be   :  { %3350 = vmatpush2.bf16.msra.mxu1 %v4385_v33  ;;  %3308 = vmatprep.subr.bf16.mxu0 %v4390_v34 }
 0x1bf   :  { %3351 = vmatprep.subr.bf16.mxu1 %v4393_v35 }
 0x1c1   :  { %v1508_v42 = vpop.f32.mrf.mxu0  ;;  %v1551_v43 = vpop.f32.mrf.mxu1  ;;  %3309 = vmatpush2.bf16.msra.mxu0 %v4388_v37 }
 0x1c2   :  { %3352 = vmatpush2.bf16.msra.mxu1 %v4391_v38  ;;  %3310 = vmatprep.subr.bf16.mxu0 %v4396_v39  ;;  %v1707_v53 = vadd.f32 %v1674_v40, %v1508_v42  ;;  %v1709_v61 = vadd.f32 %v1682_v47, %v1551_v43  ;;  %v2293_v39 = vld [vmem:[#allocation10] sm:$0x3] }
 0x1c3   :  { %v1510_v48 = vpop.f32.mrf.mxu0  ;;  %v1553_v49 = vpop.f32.mrf.mxu1  ;;  %3353 = vmatprep.subr.bf16.mxu1 %v4399_v41 }
 0x1c4   :  { %v1708_v55 = vadd.f32 %v1678_v44, %v1510_v48  ;;  %v1710_v58 = vadd.f32 %v1686_v45, %v1553_v49  ;;  %vm1731_vm0 = vcmp.gt.f32.partialorder %v1707_v53, 0.0  ;;  %v1755_v10 = vmul.f32 0.2, %v1707_v53 }
 0x1c5   :  { %v1512_v56 = vpop.f32.mrf.mxu0  ;;  %v1555_v57 = vpop.f32.mrf.mxu1  ;;  %3311 = vmatpush2.bf16.msra.mxu0 %v4394_v46  ;;  %v1757_v12 = vmul.f32 0.2, %v1709_v61  ;;  %vm1733_vm6 = vcmp.gt.f32.partialorder %v1709_v61, 0.0  ;;  %v2298_v46 = vrot.slane %v2293_v39, %v4629_v13 }
 0x1c6   :  { %v1719_v59 = vadd.f32 %v1674_v40, %v1512_v56  ;;  %v1721_v60 = vadd.f32 %v1682_v47, %v1555_v57  ;;  %3354 = vmatpush2.bf16.msra.mxu1 %v4397_v50  ;;  %3312 = vmatprep.subr.bf16.mxu0 %v4402_v52  ;;  %v1756_v1 = vmul.f32 0.2, %v1708_v55  ;;  %vm1732_vm2 = vcmp.gt.f32.partialorder %v1708_v55, 0.0 }
 0x1c7   :  { %v1514_v8 = vpop.f32.mrf.mxu0  ;;  %v1557_v17 = vpop.f32.mrf.mxu1  ;;  %3355 = vmatprep.subr.bf16.mxu1 %v4405_v54  ;;  %v1758_v11 = vmul.f32 0.2, %v1710_v58  ;;  %vm1734_vm4 = vcmp.gt.f32.partialorder %v1710_v58, 0.0  ;;  %v1779_v23 = vsel %vm1731_vm0, %v1707_v53, %v1755_v10  ;;  %v1781_v26 = vsel %vm1733_vm6, %v1709_v61, %v1757_v12 }
 0x1c8   :  { %v1767_v2 = vmul.f32 0.2, %v1719_v59  ;;  %vm1743_vm1 = vcmp.gt.f32.partialorder %v1719_v59, 0.0  ;;  %v1769_v4 = vmul.f32 0.2, %v1721_v60  ;;  %v1720_v5 = vadd.f32 %v1678_v44, %v1514_v8 }
 0x1c9   :  { %v1722_v6 = vadd.f32 %v1686_v45, %v1557_v17  ;;  %vm1745_vm3 = vcmp.gt.f32.partialorder %v1721_v60, 0.0  ;;  %3313 = vmatpush2.bf16.msra.mxu0 %v4400_v16  ;;  %v1780_v21 = vsel %vm1732_vm2, %v1708_v55, %v1756_v1  ;;  %v1782_v24 = vsel %vm1734_vm4, %v1710_v58, %v1758_v11  ;;  %v2838_v11 = vld [vmem:[#allocation10 + $0x2] sm:$0x3] }
 0x1ca   :  { %vm1744_vm5 = vcmp.gt.f32.partialorder %v1720_v5, 0.0  ;;  %v1768_v18 = vmul.f32 0.2, %v1720_v5  ;;  %3356 = vmatpush2.bf16.msra.mxu1 %v4403_v62  ;;  %3314 = vmatprep.subr.bf16.mxu0 %v4408_v63  ;;  %v1791_v14 = vsel %vm1743_vm1, %v1719_v59, %v1767_v2  ;;  %v1793_v20 = vsel %vm1745_vm3, %v1721_v60, %v1769_v4  ;;  %v3691_v63 = vld [vmem:[%s4717_s4 + $0x2] sm:$0x3] }
 0x1cb   :  { %vm1746_vm7 = vcmp.gt.f32.partialorder %v1722_v6, 0.0  ;;  %v1770_v19 = vmul.f32 0.2, %v1722_v6  ;;  %3357 = vmatprep.subr.bf16.mxu1 %v4411_v0  ;;  %v2882_v27 = vpack.c.bf16 %v1791_v14, %v1779_v23  ;;  %v2884_v28 = vpack.c.bf16 %v1793_v20, %v1781_v26 }
 0x1cc   :  { %v1792_v22 = vsel %vm1744_vm5, %v1720_v5, %v1768_v18  ;;  %v2302_v47 = vrot.slane %v2293_v39, %v4634_v15  ;;  %v2412_v0 = vrot.slane %v3691_v63, %v4629_v13  ;;  %v2416_v1 = vrot.slane %v3691_v63, %v4634_v15  ;;  %v3757_v39 = vld [vmem:[%s4717_s4 + $0x4] sm:$0x3] }
 0x1cd   :  { %3315 = vmatpush2.bf16.msra.mxu0 %v4406_v3  ;;  %v2883_v7 = vpack.c.bf16 %v1792_v22, %v1780_v21  ;;  %v1794_v25 = vsel %vm1746_vm7, %v1722_v6, %v1770_v19  ;;  %v2843_v22 = vrot.slane %v2838_v11, %v4629_v13  ;;  %v2847_v23 = vrot.slane %v2838_v11, %v4634_v15 }
 0x1ce   :  { %3358 = vmatpush2.bf16.msra.mxu1 %v4409_v9  ;;  %v2885_v51 = vpack.c.bf16 %v1794_v25, %v1782_v24  ;;  %vm2334_vm4 = vcmask 7168   ;;  %vm2879_vm5 = vcmask 15368   ;;  %vm3424_vm6 = vcmask 23568  }
 0x1cf   :  { %3316 = vmatprep.mubr.bf16.mxu0 %v2883_v7 }
 0x1d0   :  { %3359 = vmatprep.mubr.bf16.mxu1 %v2885_v51  ;;  %3317 = vmatmul.mubr.bf16.vlgmr.msra.gmra.mxu0 %v2882_v27 }
 0x1d1   :  { %3360 = vmatmul.mubr.bf16.vlgmr.msra.gmra.mxu1 %v2884_v28 }
 0x210   :  { %v2229_v32 = vpop.f32.mrf.mxu0 }
 0x211   :  { %v2230_v33 = vadd.f32 %v2229_v32, %v1868_v30  ;;  %v2272_v34 = vpop.f32.mrf.mxu1 }
 0x212   :  { %v2231_v35 = vpop.f32.mrf.mxu0 }
 0x213   :  { %v2273_v36 = vadd.f32 %v2272_v34, %v2230_v33  ;;  %v2232_v37 = vadd.f32 %v2231_v35, %v1872_v31  ;;  %v2274_v38 = vpop.f32.mrf.mxu1 }
 0x214   :  { %v2233_v40 = vpop.f32.mrf.mxu0 }
 0x215   :  { %vm2281_vm8 = vcmp.gt.f32.partialorder %v2273_v36, 0.0  ;;  %v2285_v41 = vmul.f32 0.2, %v2273_v36  ;;  %v2275_v42 = vadd.f32 %v2274_v38, %v2232_v37  ;;  %v2234_v43 = vadd.f32 %v2233_v40, %v1868_v30  ;;  %v2276_v44 = vpop.f32.mrf.mxu1 }
 0x216   :  { %v2235_v45 = vpop.f32.mrf.mxu0  ;;  %v2957_v40 = vrot.slane %v3757_v39, %v4629_v13 }
 0x217   :  { %vm2282_vm9 = vcmp.gt.f32.partialorder %v2275_v42, 0.0  ;;  %v2286_v48 = vmul.f32 0.2, %v2275_v42  ;;  %v2277_v49 = vadd.f32 %v2276_v44, %v2234_v43  ;;  %v2236_v50 = vadd.f32 %v2235_v45, %v1872_v31  ;;  %v2278_v52 = vpop.f32.mrf.mxu1 }
 0x218   :  { %v2289_v53 = vsel %vm2281_vm8, %v2273_v36, %v2285_v41  ;;  %v2961_v41 = vrot.slane %v3757_v39, %v4634_v15 }
 0x219   :  { %vm2283_vm10 = vcmp.gt.f32.partialorder %v2277_v49, 0.0  ;;  %v2287_v54 = vmul.f32 0.2, %v2277_v49  ;;  %v2279_v55 = vadd.f32 %v2278_v52, %v2236_v50  ;;  %v2290_v56 = vsel %vm2282_vm9, %v2275_v42, %v2286_v48 }
 0x21a   :  { %v2305_v57 = vmul.f32 %v2298_v46, %v2289_v53  ;;  %v2306_v58 = vmul.f32 %v2302_v47, %v2290_v56 }
 0x21b   :  { %vm2284_vm11 = vcmp.gt.f32.partialorder %v2279_v55, 0.0  ;;  %v2288_v59 = vmul.f32 0.2, %v2279_v55  ;;  %v2291_v60 = vsel %vm2283_vm10, %v2277_v49, %v2287_v54  ;;  %v3383_v49 = vld [vmem:[#allocation10 + $0x4] sm:$0x3] }
 0x21c   :  { %v2309_v16 = vadd.f32 %v2306_v58, %v2305_v57  ;;  %v2307_v8 = vmul.f32 %v2298_v46, %v2291_v60  ;;  %v3388_v57 = vrot.slane %v3383_v49, %v4629_v13  ;;  %v3392_v58 = vrot.slane %v3383_v49, %v4634_v15 }
 0x21d   :  { %v2292_v61 = vsel %vm2284_vm11, %v2279_v55, %v2288_v59 }
 0x21e   :  { %2310 = vadd.xlane.f32.xlu0 %v2309_v16  ;;  %v2308_v17 = vmul.f32 %v2302_v47, %v2292_v61 }
 0x220   :  { %v2312_v62 = vadd.f32 %v2308_v17, %v2307_v8 }
 0x222   :  { %2313 = vadd.xlane.f32.xlu0 %v2312_v62 }
 0x250   :  { %v2773_v2 = vpop.f32.mrf.mxu0 }
 0x251   :  { %v2774_v3 = vadd.f32 %v2773_v2, %v2412_v0  ;;  %v2816_v4 = vpop.f32.mrf.mxu1 }
 0x252   :  { %v2775_v5 = vpop.f32.mrf.mxu0 }
 0x253   :  { %v2817_v6 = vadd.f32 %v2816_v4, %v2774_v3  ;;  %v2776_v9 = vadd.f32 %v2775_v5, %v2416_v1  ;;  %v2818_v10 = vpop.f32.mrf.mxu1 }
 0x254   :  { %v2777_v12 = vpop.f32.mrf.mxu0 }
 0x255   :  { %vm2825_vm12 = vcmp.gt.f32.partialorder %v2817_v6, 0.0  ;;  %v2829_v18 = vmul.f32 0.2, %v2817_v6  ;;  %v2819_v14 = vadd.f32 %v2818_v10, %v2776_v9  ;;  %v2778_v19 = vadd.f32 %v2777_v12, %v2412_v0  ;;  %v2820_v20 = vpop.f32.mrf.mxu1  ;;  %v3690_v9 = vld [vmem:[%s4719_s6] ss:$0 sm:$0xff] }
 0x256   :  { %v2779_v21 = vpop.f32.mrf.mxu0 }
 0x257   :  { %vm2826_vm13 = vcmp.gt.f32.partialorder %v2819_v14, 0.0  ;;  %v2830_v7 = vmul.f32 0.2, %v2819_v14  ;;  %v2821_v24 = vadd.f32 %v2820_v20, %v2778_v19  ;;  %v2780_v25 = vadd.f32 %v2779_v21, %v2416_v1  ;;  %v2822_v26 = vpop.f32.mrf.mxu1 }
 0x258   :  { %v2833_v27 = vsel %vm2825_vm12, %v2817_v6, %v2829_v18 }
 0x259   :  { %vm2827_vm14 = vcmp.gt.f32.partialorder %v2821_v24, 0.0  ;;  %v2831_v51 = vmul.f32 0.2, %v2821_v24  ;;  %v2823_v28 = vadd.f32 %v2822_v26, %v2780_v25  ;;  %v2834_v29 = vsel %vm2826_vm13, %v2819_v14, %v2830_v7 }
 0x25a   :  { %v2850_v30 = vmul.f32 %v2843_v22, %v2833_v27  ;;  %v2851_v31 = vmul.f32 %v2847_v23, %v2834_v29 }
 0x25b   :  { %vm2828_vm15 = vcmp.gt.f32.partialorder %v2823_v28, 0.0  ;;  %v2832_v32 = vmul.f32 0.2, %v2823_v28  ;;  %v2835_v33 = vsel %vm2827_vm14, %v2821_v24, %v2831_v51 }
 0x25c   :  { %v2854_v34 = vadd.f32 %v2851_v31, %v2850_v30  ;;  %v2852_v36 = vmul.f32 %v2843_v22, %v2835_v33 }
 0x25d   :  { %v2836_v35 = vsel %vm2828_vm15, %v2823_v28, %v2832_v32 }
 0x25e   :  { %2855 = vadd.xlane.f32.xlu1 %v2854_v34  ;;  %v2853_v37 = vmul.f32 %v2847_v23, %v2836_v35 }
 0x260   :  { %v2857_v38 = vadd.f32 %v2853_v37, %v2852_v36 }
 0x262   :  { %2858 = vadd.xlane.f32.xlu1 %v2857_v38 }
 0x290   :  { %v3318_v42 = vpop.f32.mrf.mxu0 }
 0x291   :  { %v3319_v43 = vadd.f32 %v3318_v42, %v2957_v40  ;;  %v3361_v44 = vpop.f32.mrf.mxu1 }
 0x292   :  { %v3320_v45 = vpop.f32.mrf.mxu0 }
 0x293   :  { %v3362_v46 = vadd.f32 %v3361_v44, %v3319_v43  ;;  %v3321_v47 = vadd.f32 %v3320_v45, %v2961_v41  ;;  %v3363_v48 = vpop.f32.mrf.mxu1 }
 0x294   :  { %v3322_v50 = vpop.f32.mrf.mxu0 }
 0x295   :  { %vm3370_vm0 = vcmp.gt.f32.partialorder %v3362_v46, 0.0  ;;  %v3374_v52 = vmul.f32 0.2, %v3362_v46  ;;  %v3364_v53 = vadd.f32 %v3363_v48, %v3321_v47  ;;  %v3323_v54 = vadd.f32 %v3322_v50, %v2957_v40  ;;  %v3365_v55 = vpop.f32.mrf.mxu1 }
 0x296   :  { %v3324_v56 = vpop.f32.mrf.mxu0 }
 0x297   :  { %vm3371_vm1 = vcmp.gt.f32.partialorder %v3364_v53, 0.0  ;;  %v3375_v59 = vmul.f32 0.2, %v3364_v53  ;;  %v3366_v60 = vadd.f32 %v3365_v55, %v3323_v54  ;;  %v3325_v16 = vadd.f32 %v3324_v56, %v2961_v41  ;;  %v3367_v61 = vpop.f32.mrf.mxu1 }
 0x298   :  { %v3378_v8 = vsel %vm3370_vm0, %v3362_v46, %v3374_v52 }
 0x299   :  { %vm3372_vm2 = vcmp.gt.f32.partialorder %v3366_v60, 0.0  ;;  %v3376_v17 = vmul.f32 0.2, %v3366_v60  ;;  %v3368_v62 = vadd.f32 %v3367_v61, %v3325_v16  ;;  %v3379_v63 = vsel %vm3371_vm1, %v3364_v53, %v3375_v59 }
 0x29a   :  { %v3395_v0 = vmul.f32 %v3388_v57, %v3378_v8  ;;  %v3396_v1 = vmul.f32 %v3392_v58, %v3379_v63 }
 0x29b   :  { %vm3373_vm3 = vcmp.gt.f32.partialorder %v3368_v62, 0.0  ;;  %v3377_v2 = vmul.f32 0.2, %v3368_v62  ;;  %v3380_v3 = vsel %vm3372_vm2, %v3366_v60, %v3376_v17 }
 0x29c   :  { %v3399_v4 = vadd.f32 %v3396_v1, %v3395_v0  ;;  %v3397_v13 = vmul.f32 %v3388_v57, %v3380_v3 }
 0x29d   :  { %v3381_v5 = vsel %vm3373_vm3, %v3368_v62, %v3377_v2 }
 0x29e   :  { %3400 = vadd.xlane.f32.xlu0 %v3399_v4  ;;  %v3398_v15 = vmul.f32 %v3392_v58, %v3381_v5 }
 0x2a0   :  { %v3402_v6 = vadd.f32 %v3398_v15, %v3397_v13 }
 0x2a2   :  { %3403 = vadd.xlane.f32.xlu1 %v3402_v6 }
 0x2a7   :  { %v2311_v10 = vpop.xlane.xlu0 %2310 }
 0x2a8   :  { %v2322_v11 = vadd.f32 %v3690_v9, %v2311_v10 }
 0x2aa   :  { %v2324_v12 = vsub.f32 0.0, %v2322_v11 }
 0x2ab   :  { %v2314_v18 = vpop.xlane.xlu0 %2313 }
 0x2ac   :  { %v2326_v14 = vmul.f32 1.442695, %v2324_v12  ;;  %v2323_v19 = vadd.f32 %v3690_v9, %v2314_v18 }
 0x2ae   :  { %4412 = vpow2.f32 %v2326_v14  ;;  %v2325_v20 = vsub.f32 0.0, %v2323_v19 }
 0x2b0   :  { %v2328_v21 = vmul.f32 1.442695, %v2325_v20 }
 0x2b2   :  { %4414 = vpow2.f32 %v2328_v21 }
 0x2bb   :  { %v4413_v22 = vpop.eup %4412 }
 0x2bc   :  { %v2330_v23 = vadd.f32 1.0, %v4413_v22 }
 0x2be   :  { %4416 = vrcp.f32 %v2330_v23 }
 0x2bf   :  { %v4415_v7 = vpop.eup %4414 }
 0x2c0   :  { %v2331_v24 = vadd.f32 1.0, %v4415_v7 }
 0x2c2   :  { %4418 = vrcp.f32 %v2331_v24 }
 0x2cb   :  { %v4417_v25 = vpop.eup %4416 }
 0x2cc   :  { %2335 = vst.msk [vmem:[%s4720_s7] sm:$0xff] %vm2334_vm4, %v4417_v25 }
 0x2cf   :  { %v4419_v26 = vpop.eup %4418 }
 0x2d0   :  { %2336 = vst.msk [vmem:[%s4720_s7 + $0x8] sm:$0xff] %vm2334_vm4, %v4419_v26 }
 0x2e7   :  { %v2856_v27 = vpop.xlane.xlu1 %2855 }
 0x2e8   :  { %v2867_v51 = vadd.f32 %v3690_v9, %v2856_v27 }
 0x2ea   :  { %v2869_v28 = vsub.f32 0.0, %v2867_v51 }
 0x2eb   :  { %v2859_v29 = vpop.xlane.xlu1 %2858 }
 0x2ec   :  { %v2871_v30 = vmul.f32 1.442695, %v2869_v28  ;;  %v2868_v31 = vadd.f32 %v3690_v9, %v2859_v29 }
 0x2ee   :  { %4420 = vpow2.f32 %v2871_v30  ;;  %v2870_v32 = vsub.f32 0.0, %v2868_v31 }
 0x2f0   :  { %v2873_v33 = vmul.f32 1.442695, %v2870_v32 }
 0x2f2   :  { %4422 = vpow2.f32 %v2873_v33 }
 0x2fb   :  { %v4421_v34 = vpop.eup %4420 }
 0x2fc   :  { %v2875_v35 = vadd.f32 1.0, %v4421_v34 }
 0x2fe   :  { %4424 = vrcp.f32 %v2875_v35 }
 0x2ff   :  { %v4423_v36 = vpop.eup %4422 }
 0x300   :  { %v2876_v37 = vadd.f32 1.0, %v4423_v36 }
 0x302   :  { %4426 = vrcp.f32 %v2876_v37 }
 0x30b   :  { %v4425_v38 = vpop.eup %4424 }
 0x30c   :  { %2880 = vst.msk [vmem:[%s4720_s7] sm:$0xff] %vm2879_vm5, %v4425_v38 }
 0x30f   :  { %v4427_v39 = vpop.eup %4426 }
 0x310   :  { %2881 = vst.msk [vmem:[%s4720_s7 + $0x8] sm:$0xff] %vm2879_vm5, %v4427_v39 }
 0x327   :  { %v3401_v40 = vpop.xlane.xlu0 %3400 }
 0x328   :  { %v3412_v41 = vadd.f32 %v3690_v9, %v3401_v40 }
 0x32a   :  { %v3414_v42 = vsub.f32 0.0, %v3412_v41 }
 0x32b   :  { %v3404_v43 = vpop.xlane.xlu1 %3403 }
 0x32c   :  { %v3416_v44 = vmul.f32 1.442695, %v3414_v42  ;;  %v3413_v45 = vadd.f32 %v3690_v9, %v3404_v43 }
 0x32e   :  { %4428 = vpow2.f32 %v3416_v44  ;;  %v3415_v46 = vsub.f32 0.0, %v3413_v45 }
 0x330   :  { %v3418_v47 = vmul.f32 1.442695, %v3415_v46 }
 0x332   :  { %4430 = vpow2.f32 %v3418_v47 }
 0x33b   :  { %v4429_v48 = vpop.eup %4428 }
 0x33c   :  { %v3420_v49 = vadd.f32 1.0, %v4429_v48 }
 0x33e   :  { %4432 = vrcp.f32 %v3420_v49 }
 0x33f   :  { %v4431_v50 = vpop.eup %4430 }
 0x340   :  { %v3421_v52 = vadd.f32 1.0, %v4431_v50 }
 0x342   :  { %4434 = vrcp.f32 %v3421_v52 }
 0x34b   :  { %v4433_v53 = vpop.eup %4432 }
 0x34c   :  { %3425 = vst.msk [vmem:[%s4720_s7] sm:$0xff] %vm3424_vm6, %v4433_v53 }
 0x34f   :  { %v4435_v54 = vpop.eup %4434 }
 0x350   :  { %3426 = vst.msk [vmem:[%s4720_s7 + $0x8] sm:$0xff] %vm3424_vm6, %v4435_v54 }
 0x351   :  { %3431 = vsyncpa [#allocation4], 1 }
 0x352   :  { %3432 = vsyncpa [#allocation6], 1 }
 0x353   :  { %3433 = vsyncpa [#allocation9], 1 }

// kernel: tpu_custom_call.1
= control target key start
LH: loop header
LB: loop body
LE: loop exit
PB: predicated region body
PF: predicated region fallthrough
CT: control target
= control target key end

     0   :  { %12 = vsyncpa [#allocation4], 0  ;;  %s4713_s0 = inlined_call_operand.hbm [shape: f32[16,256], index: 0, kind: input, shape index: {}]   ;;  %s4714_s1 = inlined_call_operand.hbm [shape: bf16[256,1536], index: 1, kind: input, shape index: {}]   ;;  %s4715_s2 = inlined_call_operand.hbm [shape: f32[1,1536], index: 2, kind: input, shape index: {}]   ;;  %s4716_s3 = inlined_call_operand.hbm [shape: bf16[3,512,256], index: 3, kind: input, shape index: {}]   ;;  %s4717_s4 = inlined_call_operand.vmem [shape: f32[3,1,256], index: 4, kind: input, shape index: {}]   ;;  %s4718_s5 = inlined_call_operand.hbm [shape: f32[3,1,256], index: 5, kind: input, shape index: {}]   ;;  %s4719_s6 = inlined_call_operand.vmem [shape: f32[1,3], index: 6, kind: input, shape index: {}]   ;;  %s4720_s7 = inlined_call_operand.vmem [shape: f32[16,3], index: 7, kind: output, shape index: {}]  }
   0x1   :  { %13 = vsyncpa [#allocation6], 0 }
   0x2   :  { %14 = vsyncpa [#allocation9], 0  ;;  %s4542_s24 = smov [#allocation5]  }
   0x3   :  { %s32_s25 = sshll.u32 %s4542_s24, 4  ;;  %s33_s25 = int_to_ptr.vmem [resolvable:$true] %s32_s25 }
   0x4   :  { %s4444_s26 = scalar_lea.vmem %s33_s25, 24576  ;;  %p4449_p1 = scmp.lt.s32.totalorder %s33_s25, %s33_s25 }
   0x5   :  { %p4445_p0 = scmp.ne.s32.totalorder %s33_s25, %s4444_s26  ;;  %p4450_p2 = scmp.lt.s32.totalorder %s4444_s26, %s4444_s26 }
   0x7   :  { %p4451_p3 = por %p4450_p2, %p4449_p1 }
   0x9   :  { %p4452_p4 = pnand %p4451_p3, %p4445_p0 }
   0xb   :  { %4455 = shalt.err (!%p4452_p4)
}
   0xc   :  { %s4543_s27 = smov 768   ;;  %s4544_s28 = smov 48  }
   0xd   :  { %38 = dma.hbm_to_vmem [thread:$0]  %s4714_s1, 24576, %s33_s25, [#allocation6], %s4543_s27, %s4543_s27, %s4544_s28  }
   0xe   :  { %s4545_s8 = smov [#allocation8]  }
   0xf   :  { %s54_s9 = sshll.u32 %s4545_s8, 4  ;;  %s55_s9 = int_to_ptr.vmem [resolvable:$true] %s54_s9 }
  0x10   :  { %s4464_s10 = scalar_lea.vmem %s55_s9, 24576  ;;  %p4469_p6 = scmp.lt.s32.totalorder %s55_s9, %s55_s9 }
  0x11   :  { %p4465_p5 = scmp.ne.s32.totalorder %s55_s9, %s4464_s10  ;;  %p4470_p7 = scmp.lt.s32.totalorder %s4464_s10, %s4464_s10 }
  0x13   :  { %p4471_p8 = por %p4470_p7, %p4469_p6 }
  0x15   :  { %p4472_p9 = pnand %p4471_p8, %p4465_p5 }
  0x17   :  { %4475 = shalt.err (!%p4472_p9)
}
  0x18   :  { %s4546_s11 = smov 128   ;;  %s4547_s12 = smov 8  }
  0x19   :  { %60 = dma.hbm_to_vmem [thread:$0]  %s4716_s3, 24576, %s55_s9, [#allocation9], %s4546_s11, %s4546_s11, %s4547_s12  }
  0x1a   :  { %s4548_s15 = smov [#allocation3]  }
  0x1b   :  { %s20_s16 = sshll.u32 %s4548_s15, 4  ;;  %s21_s16 = int_to_ptr.vmem [resolvable:$true] %s20_s16 }
  0x1c   :  { %s4484_s1 = scalar_lea.vmem %s21_s16, 512  ;;  %p4489_p11 = scmp.lt.s32.totalorder %s21_s16, %s21_s16 }
  0x1d   :  { %p4485_p10 = scmp.ne.s32.totalorder %s21_s16, %s4484_s1  ;;  %p4490_p12 = scmp.lt.s32.totalorder %s4484_s1, %s4484_s1 }
  0x1f   :  { %p4491_p13 = por %p4490_p12, %p4489_p11 }
  0x21   :  { %p4492_p0 = pnand %p4491_p13, %p4485_p10 }
  0x23   :  { %4495 = shalt.err (!%p4492_p0)
}
  0x24   :  { %s4549_s17 = smov 256   ;;  %s4550_s18 = smov 16  }
  0x25   :  { %26 = dma.hbm_to_vmem [thread:$0]  %s4713_s0, 512, %s21_s16, [#allocation4], %s4549_s17, %s4549_s17, %s4550_s18  }
  0x26   :  { %s4551_s21 = smov [#allocation7]   ;;  %s4552_s3 = smov [#allocation10]  }
  0x27   :  { %s45_s22 = sshll.u32 %s4551_s21, 4  ;;  %s68_s23 = sshll.u32 %s4552_s3, 4  ;;  %s46_s22 = int_to_ptr.vmem [resolvable:$true] %s45_s22  ;;  %s69_s23 = int_to_ptr.vmem [resolvable:$true] %s68_s23 }
  0x28   :  { %s4504_s24 = scalar_lea.vmem %s46_s22, 192  ;;  %p4509_p2 = scmp.lt.s32.totalorder %s46_s22, %s46_s22 }
  0x29   :  { %p4505_p1 = scmp.ne.s32.totalorder %s46_s22, %s4504_s24  ;;  %p4510_p3 = scmp.lt.s32.totalorder %s4504_s24, %s4504_s24 }
  0x2b   :  { %p4511_p4 = por %p4510_p3, %p4509_p2 }
  0x2d   :  { %p4512_p5 = pnand %p4511_p4, %p4505_p1 }
  0x2f   :  { %4515 = shalt.err (!%p4512_p5)
}
  0x30   :  { %48 = dma.hbm_to_vmem [thread:$0]  %s4715_s2, 192, %s46_s22, [#allocation6]  }
  0x31   :  { %s4524_s27 = scalar_lea.vmem %s69_s23, 96  ;;  %p4529_p7 = scmp.lt.s32.totalorder %s69_s23, %s69_s23 }
  0x32   :  { %p4525_p6 = scmp.ne.s32.totalorder %s69_s23, %s4524_s27  ;;  %p4530_p8 = scmp.lt.s32.totalorder %s4524_s27, %s4524_s27 }
  0x34   :  { %p4531_p9 = por %p4530_p8, %p4529_p7 }
  0x36   :  { %p4532_p10 = pnand %p4531_p9, %p4525_p6 }
  0x38   :  { %4535 = shalt.err (!%p4532_p10)
}
  0x39   :  { %s4553_s0 = smov 32   ;;  %s4554_s28 = smov 2  }
  0x3a   :  { %74 = dma.hbm_to_vmem [thread:$0]  %s4718_s5, 96, %s69_s23, [#allocation9], %s4553_s0, %s4553_s0, %s4554_s28  }
  0x3b   :  { %4536 = dma.done.wait [#allocation4], 512  }
  0x3c   :  { %4537 = vsyncadd [#allocation4], 4294966784 }
  0x3d   :  { %4538 = dma.done.wait [#allocation6], 24768  }
  0x3e   :  { %4539 = vsyncadd [#allocation6], 4294942528 }
  0x3f   :  { %4540 = dma.done.wait [#allocation9], 24672  }
  0x40   :  { %4541 = vsyncadd [#allocation9], 4294942624  ;;  %v3836_v0 = vld [vmem:[#allocation5 + $0x2a4] ss:$48 sps:$4 sm:$0xff]   ;;  %v3838_v1 = vld [vmem:[#allocation5 + $0x2ac] ss:$48 sps:$4 sm:$0xff]  }
  0x41   :  { %1302 = vmatprep.subr.bf16.mxu0 %v3836_v0  ;;  %v3840_v2 = vld [vmem:[#allocation5 + $0x2a0] ss:$48 sps:$4 sm:$0xff]   ;;  %v3841_v3 = vld [vmem:[#allocation5 + $0x2a8] ss:$48 sps:$4 sm:$0xff]   ;;  %1345 = vmatprep.subr.bf16.mxu1 %v3838_v1  ;;  %v3842_v4 = vld [vmem:[#allocation5 + $0x244] ss:$48 sps:$4 sm:$0xff]  }
  0x42   :  { %1303 = vmatpush1.bf16.msra.mxu0 %v3840_v2  ;;  %1346 = vmatpush1.bf16.msra.mxu1 %v3841_v3  ;;  %v3844_v5 = vld [vmem:[#allocation5 + $0x24c] ss:$48 sps:$4 sm:$0xff]   ;;  %v3846_v6 = vld [vmem:[#allocation5 + $0x240] ss:$48 sps:$4 sm:$0xff]   ;;  %v3847_v7 = vld [vmem:[#allocation5 + $0x248] ss:$48 sps:$4 sm:$0xff]  }
  0x43   :  { %1304 = vmatprep.subr.bf16.mxu0 %v3842_v4  ;;  %1347 = vmatprep.subr.bf16.mxu1 %v3844_v5  ;;  %v3848_v8 = vld [vmem:[#allocation5 + $0x1e4] ss:$48 sps:$4 sm:$0xff]   ;;  %v3850_v9 = vld [vmem:[#allocation5 + $0x1ec] ss:$48 sps:$4 sm:$0xff]   ;;  %v3852_v10 = vld [vmem:[#allocation5 + $0x1e0] ss:$48 sps:$4 sm:$0xff]  }
  0x44   :  { %v3853_v11 = vld [vmem:[#allocation5 + $0x1e8] ss:$48 sps:$4 sm:$0xff]   ;;  %v3854_v12 = vld [vmem:[#allocation5 + $0x184] ss:$48 sps:$4 sm:$0xff]   ;;  %v3856_v13 = vld [vmem:[#allocation5 + $0x18c] ss:$48 sps:$4 sm:$0xff]  }
  0x45   :  { %v3858_v14 = vld [vmem:[#allocation5 + $0x180] ss:$48 sps:$4 sm:$0xff]   ;;  %v3859_v15 = vld [vmem:[#allocation5 + $0x188] ss:$48 sps:$4 sm:$0xff]   ;;  %v3860_v16 = vld [vmem:[#allocation5 + $0x124] ss:$48 sps:$4 sm:$0xff]  }
  0x46   :  { %1305 = vmatpush1.bf16.msra.mxu0 %v3846_v6  ;;  %1348 = vmatpush1.bf16.msra.mxu1 %v3847_v7  ;;  %v3862_v17 = vld [vmem:[#allocation5 + $0x12c] ss:$48 sps:$4 sm:$0xff]   ;;  %v3864_v18 = vld [vmem:[#allocation5 + $0x120] ss:$48 sps:$4 sm:$0xff]   ;;  %v3865_v19 = vld [vmem:[#allocation5 + $0x128] ss:$48 sps:$4 sm:$0xff]  }
  0x47   :  { %1306 = vmatprep.subr.bf16.mxu0 %v3848_v8  ;;  %1349 = vmatprep.subr.bf16.mxu1 %v3850_v9  ;;  %v3866_v20 = vld [vmem:[#allocation5 + $0xc4] ss:$48 sps:$4 sm:$0xff]   ;;  %v3868_v21 = vld [vmem:[#allocation5 + $0xcc] ss:$48 sps:$4 sm:$0xff]   ;;  %v3870_v22 = vld [vmem:[#allocation5 + $0xc0] ss:$48 sps:$4 sm:$0xff]  }
  0x48   :  { %v3871_v23 = vld [vmem:[#allocation5 + $0xc8] ss:$48 sps:$4 sm:$0xff]   ;;  %v3872_v24 = vld [vmem:[#allocation5 + $0x64] ss:$48 sps:$4 sm:$0xff]   ;;  %v3874_v25 = vld [vmem:[#allocation5 + $0x6c] ss:$48 sps:$4 sm:$0xff]  }
  0x49   :  { %v3876_v26 = vld [vmem:[#allocation5 + $0x60] ss:$48 sps:$4 sm:$0xff]   ;;  %v3877_v27 = vld [vmem:[#allocation5 + $0x68] ss:$48 sps:$4 sm:$0xff]   ;;  %v3878_v28 = vld [vmem:[#allocation5 + $0x4] ss:$48 sps:$4 sm:$0xff]  }
  0x4a   :  { %1307 = vmatpush1.bf16.msra.mxu0 %v3852_v10  ;;  %1350 = vmatpush1.bf16.msra.mxu1 %v3853_v11  ;;  %v3880_v29 = vld [vmem:[#allocation5 + $0xc] ss:$48 sps:$4 sm:$0xff]   ;;  %v3882_v30 = vld [vmem:[#allocation5] ss:$48 sps:$4 sm:$0xff]   ;;  %v3883_v31 = vld [vmem:[#allocation5 + $0x8] ss:$48 sps:$4 sm:$0xff]  }
  0x4b   :  { %1308 = vmatprep.subr.bf16.mxu0 %v3854_v12  ;;  %1351 = vmatprep.subr.bf16.mxu1 %v3856_v13  ;;  %v3884_v32 = vld [vmem:[#allocation5 + $0x5a4] ss:$48 sps:$4 sm:$0xff]   ;;  %v3886_v33 = vld [vmem:[#allocation5 + $0x5ac] ss:$48 sps:$4 sm:$0xff]   ;;  %v3888_v34 = vld [vmem:[#allocation5 + $0x5a0] ss:$48 sps:$4 sm:$0xff]  }
  0x4c   :  { %v3889_v35 = vld [vmem:[#allocation5 + $0x5a8] ss:$48 sps:$4 sm:$0xff]   ;;  %v3890_v36 = vld [vmem:[#allocation5 + $0x544] ss:$48 sps:$4 sm:$0xff]   ;;  %v3892_v37 = vld [vmem:[#allocation5 + $0x54c] ss:$48 sps:$4 sm:$0xff]  }
  0x4d   :  { %v3894_v38 = vld [vmem:[#allocation5 + $0x540] ss:$48 sps:$4 sm:$0xff]   ;;  %v3895_v39 = vld [vmem:[#allocation5 + $0x548] ss:$48 sps:$4 sm:$0xff]   ;;  %v3896_v40 = vld [vmem:[#allocation5 + $0x4e4] ss:$48 sps:$4 sm:$0xff]  }
  0x4e   :  { %1309 = vmatpush1.bf16.msra.mxu0 %v3858_v14  ;;  %1352 = vmatpush1.bf16.msra.mxu1 %v3859_v15  ;;  %v3898_v41 = vld [vmem:[#allocation5 + $0x4ec] ss:$48 sps:$4 sm:$0xff]   ;;  %v3900_v42 = vld [vmem:[#allocation5 + $0x4e0] ss:$48 sps:$4 sm:$0xff]   ;;  %v3901_v43 = vld [vmem:[#allocation5 + $0x4e8] ss:$48 sps:$4 sm:$0xff]  }
  0x4f   :  { %1310 = vmatprep.subr.bf16.mxu0 %v3860_v16  ;;  %1353 = vmatprep.subr.bf16.mxu1 %v3862_v17  ;;  %v3902_v44 = vld [vmem:[#allocation5 + $0x484] ss:$48 sps:$4 sm:$0xff]   ;;  %v3904_v45 = vld [vmem:[#allocation5 + $0x48c] ss:$48 sps:$4 sm:$0xff]   ;;  %v3906_v47 = vld [vmem:[#allocation5 + $0x480] ss:$48 sps:$4 sm:$0xff]  }
  0x50   :  { %v145_v46 = vld [vmem:[#allocation3 + $0x8] sm:$0xff]  ;;  %v147_v49 = vld [vmem:[#allocation3 + $0x18] sm:$0xff]  ;;  %v3908_v50 = vld [vmem:[#allocation5 + $0x424] ss:$48 sps:$4 sm:$0xff]  }
  0x51   :  { %v3907_v48 = vld [vmem:[#allocation5 + $0x488] ss:$48 sps:$4 sm:$0xff]   ;;  %v4610_v51 = vpack.c.bf16 %v147_v49, %v145_v46  ;;  %v3910_v52 = vld [vmem:[#allocation5 + $0x42c] ss:$48 sps:$4 sm:$0xff]   ;;  %v3912_v53 = vld [vmem:[#allocation5 + $0x420] ss:$48 sps:$4 sm:$0xff]  }
  0x52   :  { %1311 = vmatpush1.bf16.msra.mxu0 %v3864_v18  ;;  %1354 = vmatpush1.bf16.msra.mxu1 %v3865_v19  ;;  %v3913_v54 = vld [vmem:[#allocation5 + $0x428] ss:$48 sps:$4 sm:$0xff]   ;;  %v3914_v55 = vld [vmem:[#allocation5 + $0x3c4] ss:$48 sps:$4 sm:$0xff]   ;;  %v3916_v56 = vld [vmem:[#allocation5 + $0x3cc] ss:$48 sps:$4 sm:$0xff]  }
  0x53   :  { %1312 = vmatprep.subr.bf16.mxu0 %v3866_v20  ;;  %1355 = vmatprep.subr.bf16.mxu1 %v3868_v21  ;;  %v3918_v57 = vld [vmem:[#allocation5 + $0x3c0] ss:$48 sps:$4 sm:$0xff]   ;;  %v3919_v58 = vld [vmem:[#allocation5 + $0x3c8] ss:$48 sps:$4 sm:$0xff]   ;;  %v3920_v59 = vld [vmem:[#allocation5 + $0x364] ss:$48 sps:$4 sm:$0xff]  }
  0x54   :  { %1334 = vmatprep.mubr.bf16.mxu0 %v4610_v51  ;;  %1377 = vmatprep.mubr.bf16.mxu1 %v4610_v51  ;;  %v3922_v60 = vld [vmem:[#allocation5 + $0x36c] ss:$48 sps:$4 sm:$0xff]   ;;  %v3924_v61 = vld [vmem:[#allocation5 + $0x360] ss:$48 sps:$4 sm:$0xff]   ;;  %v3925_v62 = vld [vmem:[#allocation5 + $0x368] ss:$48 sps:$4 sm:$0xff]  }
  0x55   :  { %v3926_v63 = vld [vmem:[#allocation5 + $0x304] ss:$48 sps:$4 sm:$0xff]   ;;  %v3928_v0 = vld [vmem:[#allocation5 + $0x30c] ss:$48 sps:$4 sm:$0xff]   ;;  %v3930_v1 = vld [vmem:[#allocation5 + $0x300] ss:$48 sps:$4 sm:$0xff]  }
  0x56   :  { %1313 = vmatpush1.bf16.msra.mxu0 %v3870_v22  ;;  %1356 = vmatpush1.bf16.msra.mxu1 %v3871_v23  ;;  %v3931_v2 = vld [vmem:[#allocation5 + $0x308] ss:$48 sps:$4 sm:$0xff]   ;;  %v144_v3 = vld [vmem:[#allocation3] sm:$0xff]  ;;  %v146_v4 = vld [vmem:[#allocation3 + $0x10] sm:$0xff] }
  0x57   :  { %1314 = vmatprep.subr.bf16.mxu0 %v3872_v24  ;;  %1357 = vmatprep.subr.bf16.mxu1 %v3874_v25  ;;  %v3934_v5 = vld [vmem:[#allocation5 + $0x2b4] ss:$48 sps:$4 sm:$0xff]   ;;  %v3937_v6 = vld [vmem:[#allocation5 + $0x2bc] ss:$48 sps:$4 sm:$0xff]   ;;  %v4614_v7 = vpack.c.bf16 %v146_v4, %v144_v3  ;;  %v3932_v8 = vld [vmem:[#allocation5 + $0x2b0] ss:$48 sps:$4 sm:$0xff]  }
  0x58   :  { %v3935_v9 = vld [vmem:[#allocation5 + $0x2b8] ss:$48 sps:$4 sm:$0xff]   ;;  %v3940_v10 = vld [vmem:[#allocation5 + $0x254] ss:$48 sps:$4 sm:$0xff]   ;;  %v3943_v11 = vld [vmem:[#allocation5 + $0x25c] ss:$48 sps:$4 sm:$0xff]  }
  0x59   :  { %v3938_v12 = vld [vmem:[#allocation5 + $0x250] ss:$48 sps:$4 sm:$0xff]   ;;  %v3941_v13 = vld [vmem:[#allocation5 + $0x258] ss:$48 sps:$4 sm:$0xff]   ;;  %v3946_v14 = vld [vmem:[#allocation5 + $0x1f4] ss:$48 sps:$4 sm:$0xff]  }
  0x5a   :  { %1315 = vmatpush1.bf16.msra.mxu0 %v3876_v26  ;;  %1358 = vmatpush1.bf16.msra.mxu1 %v3877_v27  ;;  %v3949_v15 = vld [vmem:[#allocation5 + $0x1fc] ss:$48 sps:$4 sm:$0xff]   ;;  %v3944_v16 = vld [vmem:[#allocation5 + $0x1f0] ss:$48 sps:$4 sm:$0xff]   ;;  %v3947_v17 = vld [vmem:[#allocation5 + $0x1f8] ss:$48 sps:$4 sm:$0xff]  }
  0x5b   :  { %1316 = vmatprep.subr.bf16.mxu0 %v3878_v28  ;;  %1359 = vmatprep.subr.bf16.mxu1 %v3880_v29  ;;  %v3952_v18 = vld [vmem:[#allocation5 + $0x194] ss:$48 sps:$4 sm:$0xff]   ;;  %v3955_v19 = vld [vmem:[#allocation5 + $0x19c] ss:$48 sps:$4 sm:$0xff]   ;;  %v3950_v20 = vld [vmem:[#allocation5 + $0x190] ss:$48 sps:$4 sm:$0xff]  }
  0x5c   :  { %v3953_v21 = vld [vmem:[#allocation5 + $0x198] ss:$48 sps:$4 sm:$0xff]   ;;  %v3958_v22 = vld [vmem:[#allocation5 + $0x134] ss:$48 sps:$4 sm:$0xff]   ;;  %v3961_v23 = vld [vmem:[#allocation5 + $0x13c] ss:$48 sps:$4 sm:$0xff]  }
  0x5d   :  { %v3956_v24 = vld [vmem:[#allocation5 + $0x130] ss:$48 sps:$4 sm:$0xff]   ;;  %v3959_v25 = vld [vmem:[#allocation5 + $0x138] ss:$48 sps:$4 sm:$0xff]   ;;  %v3964_v26 = vld [vmem:[#allocation5 + $0xd4] ss:$48 sps:$4 sm:$0xff]  }
  0x5e   :  { %1317 = vmatpush1.bf16.msra.mxu0 %v3882_v30  ;;  %1360 = vmatpush1.bf16.msra.mxu1 %v3883_v31  ;;  %v3967_v27 = vld [vmem:[#allocation5 + $0xdc] ss:$48 sps:$4 sm:$0xff]   ;;  %v3962_v28 = vld [vmem:[#allocation5 + $0xd0] ss:$48 sps:$4 sm:$0xff]   ;;  %v3965_v29 = vld [vmem:[#allocation5 + $0xd8] ss:$48 sps:$4 sm:$0xff]  }
  0x5f   :  { %1318 = vmatprep.subr.bf16.mxu0 %v3884_v32  ;;  %1361 = vmatprep.subr.bf16.mxu1 %v3886_v33  ;;  %v3970_v30 = vld [vmem:[#allocation5 + $0x74] ss:$48 sps:$4 sm:$0xff]   ;;  %v3973_v31 = vld [vmem:[#allocation5 + $0x7c] ss:$48 sps:$4 sm:$0xff]   ;;  %v3968_v32 = vld [vmem:[#allocation5 + $0x70] ss:$48 sps:$4 sm:$0xff]  }
  0x60   :  { %v3971_v33 = vld [vmem:[#allocation5 + $0x78] ss:$48 sps:$4 sm:$0xff]   ;;  %v3994_v46 = vld [vmem:[#allocation5 + $0x4f4] ss:$48 sps:$4 sm:$0xff]   ;;  %v4027_v4 = vld [vmem:[#allocation5 + $0x31c] ss:$48 sps:$4 sm:$0xff]  }
  0x61   :  { %v3995_v49 = vld [vmem:[#allocation5 + $0x4f8] ss:$48 sps:$4 sm:$0xff]   ;;  %v4024_v3 = vld [vmem:[#allocation5 + $0x314] ss:$48 sps:$4 sm:$0xff]  }
  0x62   :  { %1319 = vmatpush2.bf16.msra.mxu0 %v3888_v34  ;;  %1362 = vmatpush2.bf16.msra.mxu1 %v3889_v35  ;;  %v3976_v34 = vld [vmem:[#allocation5 + $0x14] ss:$48 sps:$4 sm:$0xff]   ;;  %v3979_v35 = vld [vmem:[#allocation5 + $0x1c] ss:$48 sps:$4 sm:$0xff]  }
  0x63   :  { %1320 = vmatprep.subr.bf16.mxu0 %v3890_v36  ;;  %1363 = vmatprep.subr.bf16.mxu1 %v3892_v37  ;;  %v3974_v36 = vld [vmem:[#allocation5 + $0x10] ss:$48 sps:$4 sm:$0xff]   ;;  %v3977_v37 = vld [vmem:[#allocation5 + $0x18] ss:$48 sps:$4 sm:$0xff]  }
  0x66   :  { %1321 = vmatpush2.bf16.msra.mxu0 %v3894_v38  ;;  %1364 = vmatpush2.bf16.msra.mxu1 %v3895_v39  ;;  %v3982_v38 = vld [vmem:[#allocation5 + $0x5b4] ss:$48 sps:$4 sm:$0xff]   ;;  %v3985_v39 = vld [vmem:[#allocation5 + $0x5bc] ss:$48 sps:$4 sm:$0xff]  }
  0x67   :  { %1322 = vmatprep.subr.bf16.mxu0 %v3896_v40  ;;  %1365 = vmatprep.subr.bf16.mxu1 %v3898_v41  ;;  %v3980_v40 = vld [vmem:[#allocation5 + $0x5b0] ss:$48 sps:$4 sm:$0xff]   ;;  %v3983_v41 = vld [vmem:[#allocation5 + $0x5b8] ss:$48 sps:$4 sm:$0xff]  }
  0x6a   :  { %1323 = vmatpush2.bf16.msra.mxu0 %v3900_v42  ;;  %1366 = vmatpush2.bf16.msra.mxu1 %v3901_v43  ;;  %v3988_v42 = vld [vmem:[#allocation5 + $0x554] ss:$48 sps:$4 sm:$0xff]   ;;  %v3991_v43 = vld [vmem:[#allocation5 + $0x55c] ss:$48 sps:$4 sm:$0xff]  }
  0x6b   :  { %1324 = vmatprep.subr.bf16.mxu0 %v3902_v44  ;;  %1367 = vmatprep.subr.bf16.mxu1 %v3904_v45  ;;  %v3986_v44 = vld [vmem:[#allocation5 + $0x550] ss:$48 sps:$4 sm:$0xff]   ;;  %v3989_v45 = vld [vmem:[#allocation5 + $0x558] ss:$48 sps:$4 sm:$0xff]  }
  0x6e   :  { %1325 = vmatpush2.bf16.msra.mxu0 %v3906_v47  ;;  %1368 = vmatpush2.bf16.msra.mxu1 %v3907_v48  ;;  %v3997_v47 = vld [vmem:[#allocation5 + $0x4fc] ss:$48 sps:$4 sm:$0xff]   ;;  %v3992_v48 = vld [vmem:[#allocation5 + $0x4f0] ss:$48 sps:$4 sm:$0xff]  }
  0x6f   :  { %1326 = vmatprep.subr.bf16.mxu0 %v3908_v50  ;;  %1369 = vmatprep.subr.bf16.mxu1 %v3910_v52  ;;  %v4000_v50 = vld [vmem:[#allocation5 + $0x494] ss:$48 sps:$4 sm:$0xff]   ;;  %v4003_v52 = vld [vmem:[#allocation5 + $0x49c] ss:$48 sps:$4 sm:$0xff]  }
  0x72   :  { %1327 = vmatpush2.bf16.msra.mxu0 %v3912_v53  ;;  %1370 = vmatpush2.bf16.msra.mxu1 %v3913_v54  ;;  %v3998_v53 = vld [vmem:[#allocation5 + $0x490] ss:$48 sps:$4 sm:$0xff]   ;;  %v4001_v54 = vld [vmem:[#allocation5 + $0x498] ss:$48 sps:$4 sm:$0xff]  }
  0x73   :  { %1328 = vmatprep.subr.bf16.mxu0 %v3914_v55  ;;  %1371 = vmatprep.subr.bf16.mxu1 %v3916_v56  ;;  %v4006_v55 = vld [vmem:[#allocation5 + $0x434] ss:$48 sps:$4 sm:$0xff]   ;;  %v4009_v56 = vld [vmem:[#allocation5 + $0x43c] ss:$48 sps:$4 sm:$0xff]  }
  0x76   :  { %1329 = vmatpush2.bf16.msra.mxu0 %v3918_v57  ;;  %1372 = vmatpush2.bf16.msra.mxu1 %v3919_v58  ;;  %v4004_v57 = vld [vmem:[#allocation5 + $0x430] ss:$48 sps:$4 sm:$0xff]   ;;  %v4007_v58 = vld [vmem:[#allocation5 + $0x438] ss:$48 sps:$4 sm:$0xff]  }
  0x77   :  { %1330 = vmatprep.subr.bf16.mxu0 %v3920_v59  ;;  %1373 = vmatprep.subr.bf16.mxu1 %v3922_v60  ;;  %v4012_v59 = vld [vmem:[#allocation5 + $0x3d4] ss:$48 sps:$4 sm:$0xff]   ;;  %v4015_v60 = vld [vmem:[#allocation5 + $0x3dc] ss:$48 sps:$4 sm:$0xff]  }
  0x7a   :  { %1331 = vmatpush2.bf16.msra.mxu0 %v3924_v61  ;;  %1374 = vmatpush2.bf16.msra.mxu1 %v3925_v62  ;;  %v4010_v61 = vld [vmem:[#allocation5 + $0x3d0] ss:$48 sps:$4 sm:$0xff]   ;;  %v4013_v62 = vld [vmem:[#allocation5 + $0x3d8] ss:$48 sps:$4 sm:$0xff]  }
  0x7b   :  { %1332 = vmatprep.subr.bf16.mxu0 %v3926_v63  ;;  %1375 = vmatprep.subr.bf16.mxu1 %v3928_v0  ;;  %v4018_v63 = vld [vmem:[#allocation5 + $0x374] ss:$48 sps:$4 sm:$0xff]   ;;  %v4021_v0 = vld [vmem:[#allocation5 + $0x37c] ss:$48 sps:$4 sm:$0xff]  }
  0x7e   :  { %1333 = vmatpush2.bf16.msra.mxu0 %v3930_v1  ;;  %1376 = vmatpush2.bf16.msra.mxu1 %v3931_v2  ;;  %v4016_v1 = vld [vmem:[#allocation5 + $0x370] ss:$48 sps:$4 sm:$0xff]   ;;  %v4019_v2 = vld [vmem:[#allocation5 + $0x378] ss:$48 sps:$4 sm:$0xff]  }
  0x7f   :  { %1388 = vmatprep.subr.bf16.mxu0 %v3934_v5  ;;  %1431 = vmatprep.subr.bf16.mxu1 %v3937_v6  ;;  %v4022_v5 = vld [vmem:[#allocation5 + $0x310] ss:$48 sps:$4 sm:$0xff]   ;;  %v4025_v6 = vld [vmem:[#allocation5 + $0x318] ss:$48 sps:$4 sm:$0xff]  }
  0x81   :  { %1335 = vmatmul.mubr.bf16.vlgmr.msra.gmra.mxu0 %v4614_v7  ;;  %1378 = vmatmul.mubr.bf16.vlgmr.msra.gmra.mxu1 %v4614_v7 }
  0x82   :  { %1389 = vmatpush1.bf16.msra.mxu0 %v3932_v8  ;;  %1432 = vmatpush1.bf16.msra.mxu1 %v3935_v9  ;;  %v4030_v8 = vld [vmem:[#allocation5 + $0x2c4] ss:$48 sps:$4 sm:$0xff]   ;;  %v4033_v9 = vld [vmem:[#allocation5 + $0x2cc] ss:$48 sps:$4 sm:$0xff]  }
  0x83   :  { %1390 = vmatprep.subr.bf16.mxu0 %v3940_v10  ;;  %1433 = vmatprep.subr.bf16.mxu1 %v3943_v11  ;;  %v4028_v10 = vld [vmem:[#allocation5 + $0x2c0] ss:$48 sps:$4 sm:$0xff]   ;;  %v4031_v11 = vld [vmem:[#allocation5 + $0x2c8] ss:$48 sps:$4 sm:$0xff]  }
  0x84   :  { %1420 = vmatprep.mubr.bf16.mxu0 %v4610_v51  ;;  %1463 = vmatprep.mubr.bf16.mxu1 %v4610_v51 }
  0x86   :  { %1391 = vmatpush1.bf16.msra.mxu0 %v3938_v12  ;;  %1434 = vmatpush1.bf16.msra.mxu1 %v3941_v13  ;;  %v4036_v12 = vld [vmem:[#allocation5 + $0x264] ss:$48 sps:$4 sm:$0xff]   ;;  %v4039_v13 = vld [vmem:[#allocation5 + $0x26c] ss:$48 sps:$4 sm:$0xff]  }
  0x87   :  { %1392 = vmatprep.subr.bf16.mxu0 %v3946_v14  ;;  %1435 = vmatprep.subr.bf16.mxu1 %v3949_v15  ;;  %v4034_v14 = vld [vmem:[#allocation5 + $0x260] ss:$48 sps:$4 sm:$0xff]   ;;  %v4037_v15 = vld [vmem:[#allocation5 + $0x268] ss:$48 sps:$4 sm:$0xff]  }
  0x8a   :  { %1393 = vmatpush1.bf16.msra.mxu0 %v3944_v16  ;;  %1436 = vmatpush1.bf16.msra.mxu1 %v3947_v17  ;;  %v4042_v16 = vld [vmem:[#allocation5 + $0x204] ss:$48 sps:$4 sm:$0xff]   ;;  %v4045_v17 = vld [vmem:[#allocation5 + $0x20c] ss:$48 sps:$4 sm:$0xff]  }
  0x8b   :  { %1394 = vmatprep.subr.bf16.mxu0 %v3952_v18  ;;  %1437 = vmatprep.subr.bf16.mxu1 %v3955_v19  ;;  %v4040_v18 = vld [vmem:[#allocation5 + $0x200] ss:$48 sps:$4 sm:$0xff]   ;;  %v4043_v19 = vld [vmem:[#allocation5 + $0x208] ss:$48 sps:$4 sm:$0xff]  }
  0x8e   :  { %1395 = vmatpush1.bf16.msra.mxu0 %v3950_v20  ;;  %1438 = vmatpush1.bf16.msra.mxu1 %v3953_v21  ;;  %v4048_v20 = vld [vmem:[#allocation5 + $0x1a4] ss:$48 sps:$4 sm:$0xff]   ;;  %v4051_v21 = vld [vmem:[#allocation5 + $0x1ac] ss:$48 sps:$4 sm:$0xff]  }
  0x8f   :  { %1396 = vmatprep.subr.bf16.mxu0 %v3958_v22  ;;  %1439 = vmatprep.subr.bf16.mxu1 %v3961_v23  ;;  %v4046_v22 = vld [vmem:[#allocation5 + $0x1a0] ss:$48 sps:$4 sm:$0xff]   ;;  %v4049_v23 = vld [vmem:[#allocation5 + $0x1a8] ss:$48 sps:$4 sm:$0xff]  }
  0x92   :  { %1397 = vmatpush1.bf16.msra.mxu0 %v3956_v24  ;;  %1440 = vmatpush1.bf16.msra.mxu1 %v3959_v25  ;;  %v4054_v24 = vld [vmem:[#allocation5 + $0x144] ss:$48 sps:$4 sm:$0xff]   ;;  %v4057_v25 = vld [vmem:[#allocation5 + $0x14c] ss:$48 sps:$4 sm:$0xff]  }
  0x93   :  { %1398 = vmatprep.subr.bf16.mxu0 %v3964_v26  ;;  %1441 = vmatprep.subr.bf16.mxu1 %v3967_v27  ;;  %v4052_v26 = vld [vmem:[#allocation5 + $0x140] ss:$48 sps:$4 sm:$0xff]   ;;  %v4055_v27 = vld [vmem:[#allocation5 + $0x148] ss:$48 sps:$4 sm:$0xff]  }
  0x96   :  { %1399 = vmatpush1.bf16.msra.mxu0 %v3962_v28  ;;  %1442 = vmatpush1.bf16.msra.mxu1 %v3965_v29  ;;  %v4063_v28 = vld [vmem:[#allocation5 + $0xec] ss:$48 sps:$4 sm:$0xff]   ;;  %v4058_v29 = vld [vmem:[#allocation5 + $0xe0] ss:$48 sps:$4 sm:$0xff]  }
  0x97   :  { %1400 = vmatprep.subr.bf16.mxu0 %v3970_v30  ;;  %1443 = vmatprep.subr.bf16.mxu1 %v3973_v31  ;;  %v4061_v30 = vld [vmem:[#allocation5 + $0xe8] ss:$48 sps:$4 sm:$0xff]   ;;  %v4066_v31 = vld [vmem:[#allocation5 + $0x84] ss:$48 sps:$4 sm:$0xff]  }
  0x9a   :  { %1401 = vmatpush1.bf16.msra.mxu0 %v3968_v32  ;;  %1444 = vmatpush1.bf16.msra.mxu1 %v3971_v33  ;;  %v4069_v32 = vld [vmem:[#allocation5 + $0x8c] ss:$48 sps:$4 sm:$0xff]   ;;  %v4064_v33 = vld [vmem:[#allocation5 + $0x80] ss:$48 sps:$4 sm:$0xff]  }
  0x9b   :  { %1402 = vmatprep.subr.bf16.mxu0 %v3976_v34  ;;  %1445 = vmatprep.subr.bf16.mxu1 %v3979_v35  ;;  %v4067_v34 = vld [vmem:[#allocation5 + $0x88] ss:$48 sps:$4 sm:$0xff]   ;;  %v4072_v35 = vld [vmem:[#allocation5 + $0x24] ss:$48 sps:$4 sm:$0xff]  }
  0x9e   :  { %1403 = vmatpush1.bf16.msra.mxu0 %v3974_v36  ;;  %1446 = vmatpush1.bf16.msra.mxu1 %v3977_v37  ;;  %v4075_v36 = vld [vmem:[#allocation5 + $0x2c] ss:$48 sps:$4 sm:$0xff]   ;;  %v4070_v37 = vld [vmem:[#allocation5 + $0x20] ss:$48 sps:$4 sm:$0xff]  }
  0x9f   :  { %1404 = vmatprep.subr.bf16.mxu0 %v3982_v38  ;;  %1447 = vmatprep.subr.bf16.mxu1 %v3985_v39  ;;  %v4073_v38 = vld [vmem:[#allocation5 + $0x28] ss:$48 sps:$4 sm:$0xff]   ;;  %v4078_v39 = vld [vmem:[#allocation5 + $0x5c4] ss:$48 sps:$4 sm:$0xff]  }
  0xa2   :  { %1405 = vmatpush2.bf16.msra.mxu0 %v3980_v40  ;;  %1448 = vmatpush2.bf16.msra.mxu1 %v3983_v41  ;;  %v4081_v40 = vld [vmem:[#allocation5 + $0x5cc] ss:$48 sps:$4 sm:$0xff]   ;;  %v4076_v41 = vld [vmem:[#allocation5 + $0x5c0] ss:$48 sps:$4 sm:$0xff]  }
  0xa3   :  { %1406 = vmatprep.subr.bf16.mxu0 %v3988_v42  ;;  %1449 = vmatprep.subr.bf16.mxu1 %v3991_v43  ;;  %v4079_v42 = vld [vmem:[#allocation5 + $0x5c8] ss:$48 sps:$4 sm:$0xff]   ;;  %v4084_v43 = vld [vmem:[#allocation5 + $0x564] ss:$48 sps:$4 sm:$0xff]  }
  0xa6   :  { %1407 = vmatpush2.bf16.msra.mxu0 %v3986_v44  ;;  %1450 = vmatpush2.bf16.msra.mxu1 %v3989_v45  ;;  %v4087_v44 = vld [vmem:[#allocation5 + $0x56c] ss:$48 sps:$4 sm:$0xff]   ;;  %v4082_v45 = vld [vmem:[#allocation5 + $0x560] ss:$48 sps:$4 sm:$0xff]  }
  0xa7   :  { %1408 = vmatprep.subr.bf16.mxu0 %v3994_v46  ;;  %1451 = vmatprep.subr.bf16.mxu1 %v3997_v47  ;;  %v4085_v46 = vld [vmem:[#allocation5 + $0x568] ss:$48 sps:$4 sm:$0xff]   ;;  %v4090_v47 = vld [vmem:[#allocation5 + $0x504] ss:$48 sps:$4 sm:$0xff]  }
  0xaa   :  { %1409 = vmatpush2.bf16.msra.mxu0 %v3992_v48  ;;  %1452 = vmatpush2.bf16.msra.mxu1 %v3995_v49  ;;  %v4093_v48 = vld [vmem:[#allocation5 + $0x50c] ss:$48 sps:$4 sm:$0xff]   ;;  %v4088_v49 = vld [vmem:[#allocation5 + $0x500] ss:$48 sps:$4 sm:$0xff]  }
  0xab   :  { %1410 = vmatprep.subr.bf16.mxu0 %v4000_v50  ;;  %1453 = vmatprep.subr.bf16.mxu1 %v4003_v52  ;;  %v4091_v50 = vld [vmem:[#allocation5 + $0x508] ss:$48 sps:$4 sm:$0xff]   ;;  %v4096_v52 = vld [vmem:[#allocation5 + $0x4a4] ss:$48 sps:$4 sm:$0xff]  }
  0xae   :  { %1411 = vmatpush2.bf16.msra.mxu0 %v3998_v53  ;;  %1454 = vmatpush2.bf16.msra.mxu1 %v4001_v54  ;;  %v4099_v53 = vld [vmem:[#allocation5 + $0x4ac] ss:$48 sps:$4 sm:$0xff]   ;;  %v4094_v54 = vld [vmem:[#allocation5 + $0x4a0] ss:$48 sps:$4 sm:$0xff]  }
  0xaf   :  { %1412 = vmatprep.subr.bf16.mxu0 %v4006_v55  ;;  %1455 = vmatprep.subr.bf16.mxu1 %v4009_v56  ;;  %v4097_v55 = vld [vmem:[#allocation5 + $0x4a8] ss:$48 sps:$4 sm:$0xff]   ;;  %v4102_v56 = vld [vmem:[#allocation5 + $0x444] ss:$48 sps:$4 sm:$0xff]  }
  0xb2   :  { %1413 = vmatpush2.bf16.msra.mxu0 %v4004_v57  ;;  %1456 = vmatpush2.bf16.msra.mxu1 %v4007_v58  ;;  %v4105_v57 = vld [vmem:[#allocation5 + $0x44c] ss:$48 sps:$4 sm:$0xff]   ;;  %v4100_v58 = vld [vmem:[#allocation5 + $0x440] ss:$48 sps:$4 sm:$0xff]  }
  0xb3   :  { %1414 = vmatprep.subr.bf16.mxu0 %v4012_v59  ;;  %1457 = vmatprep.subr.bf16.mxu1 %v4015_v60  ;;  %v4103_v59 = vld [vmem:[#allocation5 + $0x448] ss:$48 sps:$4 sm:$0xff]   ;;  %v4108_v60 = vld [vmem:[#allocation5 + $0x3e4] ss:$48 sps:$4 sm:$0xff]  }
  0xb6   :  { %1415 = vmatpush2.bf16.msra.mxu0 %v4010_v61  ;;  %1458 = vmatpush2.bf16.msra.mxu1 %v4013_v62  ;;  %v4111_v61 = vld [vmem:[#allocation5 + $0x3ec] ss:$48 sps:$4 sm:$0xff]   ;;  %v4106_v62 = vld [vmem:[#allocation5 + $0x3e0] ss:$48 sps:$4 sm:$0xff]  }
  0xb7   :  { %1416 = vmatprep.subr.bf16.mxu0 %v4018_v63  ;;  %1459 = vmatprep.subr.bf16.mxu1 %v4021_v0  ;;  %v4109_v63 = vld [vmem:[#allocation5 + $0x3e8] ss:$48 sps:$4 sm:$0xff]   ;;  %v4114_v0 = vld [vmem:[#allocation5 + $0x384] ss:$48 sps:$4 sm:$0xff]  }
  0xba   :  { %1417 = vmatpush2.bf16.msra.mxu0 %v4016_v1  ;;  %1460 = vmatpush2.bf16.msra.mxu1 %v4019_v2  ;;  %v4117_v1 = vld [vmem:[#allocation5 + $0x38c] ss:$48 sps:$4 sm:$0xff]   ;;  %v4112_v2 = vld [vmem:[#allocation5 + $0x380] ss:$48 sps:$4 sm:$0xff]  }
  0xbb   :  { %1418 = vmatprep.subr.bf16.mxu0 %v4024_v3  ;;  %1461 = vmatprep.subr.bf16.mxu1 %v4027_v4  ;;  %v4115_v3 = vld [vmem:[#allocation5 + $0x388] ss:$48 sps:$4 sm:$0xff]   ;;  %v4120_v4 = vld [vmem:[#allocation5 + $0x324] ss:$48 sps:$4 sm:$0xff]  }
  0xbe   :  { %1419 = vmatpush2.bf16.msra.mxu0 %v4022_v5  ;;  %1462 = vmatpush2.bf16.msra.mxu1 %v4025_v6  ;;  %v4123_v5 = vld [vmem:[#allocation5 + $0x32c] ss:$48 sps:$4 sm:$0xff]   ;;  %v4118_v6 = vld [vmem:[#allocation5 + $0x320] ss:$48 sps:$4 sm:$0xff]  }
  0xbf   :  { %1474 = vmatprep.subr.bf16.mxu0 %v4030_v8  ;;  %1517 = vmatprep.subr.bf16.mxu1 %v4033_v9  ;;  %v4121_v8 = vld [vmem:[#allocation5 + $0x328] ss:$48 sps:$4 sm:$0xff]  }
  0xc0   :  { %v4126_v9 = vld [vmem:[#allocation8 + $0x74] ss:$8 sps:$4 sm:$0xff]  }
  0xc1   :  { %1421 = vmatmul.mubr.bf16.vlgmr.msra.gmra.mxu0 %v4614_v7  ;;  %1464 = vmatmul.mubr.bf16.vlgmr.msra.gmra.mxu1 %v4614_v7 }
  0xc2   :  { %1475 = vmatpush1.bf16.msra.mxu0 %v4028_v10  ;;  %1518 = vmatpush1.bf16.msra.mxu1 %v4031_v11  ;;  %v4129_v10 = vld [vmem:[#allocation8 + $0x174] ss:$8 sps:$4 sm:$0xff]   ;;  %v4124_v11 = vld [vmem:[#allocation8 + $0x70] ss:$8 sps:$4 sm:$0xff]  }
  0xc3   :  { %1476 = vmatprep.subr.bf16.mxu0 %v4036_v12  ;;  %1519 = vmatprep.subr.bf16.mxu1 %v4039_v13  ;;  %v4127_v12 = vld [vmem:[#allocation8 + $0x170] ss:$8 sps:$4 sm:$0xff]   ;;  %v4132_v13 = vld [vmem:[#allocation8 + $0x64] ss:$8 sps:$4 sm:$0xff]  }
  0xc4   :  { %1506 = vmatprep.mubr.bf16.mxu0 %v4610_v51  ;;  %1549 = vmatprep.mubr.bf16.mxu1 %v4610_v51  ;;  %v4060_v51 = vld [vmem:[#allocation5 + $0xe4] ss:$48 sps:$4 sm:$0xff]  }
  0xc6   :  { %1477 = vmatpush1.bf16.msra.mxu0 %v4034_v14  ;;  %1520 = vmatpush1.bf16.msra.mxu1 %v4037_v15  ;;  %v4135_v14 = vld [vmem:[#allocation8 + $0x164] ss:$8 sps:$4 sm:$0xff]   ;;  %v4130_v15 = vld [vmem:[#allocation8 + $0x60] ss:$8 sps:$4 sm:$0xff]  }
  0xc7   :  { %1478 = vmatprep.subr.bf16.mxu0 %v4042_v16  ;;  %1521 = vmatprep.subr.bf16.mxu1 %v4045_v17  ;;  %v4133_v16 = vld [vmem:[#allocation8 + $0x160] ss:$8 sps:$4 sm:$0xff]   ;;  %v4138_v17 = vld [vmem:[#allocation8 + $0x54] ss:$8 sps:$4 sm:$0xff]  }
  0xca   :  { %1479 = vmatpush1.bf16.msra.mxu0 %v4040_v18  ;;  %1522 = vmatpush1.bf16.msra.mxu1 %v4043_v19  ;;  %v4141_v18 = vld [vmem:[#allocation8 + $0x154] ss:$8 sps:$4 sm:$0xff]   ;;  %v4136_v19 = vld [vmem:[#allocation8 + $0x50] ss:$8 sps:$4 sm:$0xff]  }
  0xcb   :  { %1480 = vmatprep.subr.bf16.mxu0 %v4048_v20  ;;  %1523 = vmatprep.subr.bf16.mxu1 %v4051_v21  ;;  %v4139_v20 = vld [vmem:[#allocation8 + $0x150] ss:$8 sps:$4 sm:$0xff]   ;;  %v4144_v21 = vld [vmem:[#allocation8 + $0x44] ss:$8 sps:$4 sm:$0xff]  }
  0xce   :  { %1481 = vmatpush1.bf16.msra.mxu0 %v4046_v22  ;;  %1524 = vmatpush1.bf16.msra.mxu1 %v4049_v23  ;;  %v4147_v22 = vld [vmem:[#allocation8 + $0x144] ss:$8 sps:$4 sm:$0xff]   ;;  %v4142_v23 = vld [vmem:[#allocation8 + $0x40] ss:$8 sps:$4 sm:$0xff]  }
  0xcf   :  { %1482 = vmatprep.subr.bf16.mxu0 %v4054_v24  ;;  %1525 = vmatprep.subr.bf16.mxu1 %v4057_v25  ;;  %v4150_v24 = vld [vmem:[#allocation8 + $0x34] ss:$8 sps:$4 sm:$0xff]  }
  0xd0   :  { %v4153_v25 = vld [vmem:[#allocation8 + $0x134] ss:$8 sps:$4 sm:$0xff]  }
  0xd2   :  { %1483 = vmatpush1.bf16.msra.mxu0 %v4052_v26  ;;  %1526 = vmatpush1.bf16.msra.mxu1 %v4055_v27  ;;  %v4148_v26 = vld [vmem:[#allocation8 + $0x30] ss:$8 sps:$4 sm:$0xff]  }
  0xd3   :  { %1484 = vmatprep.subr.bf16.mxu0 %v4060_v51  ;;  %1527 = vmatprep.subr.bf16.mxu1 %v4063_v28  ;;  %v4151_v27 = vld [vmem:[#allocation8 + $0x130] ss:$8 sps:$4 sm:$0xff]   ;;  %v4156_v51 = vld [vmem:[#allocation8 + $0x24] ss:$8 sps:$4 sm:$0xff]  }
  0xd4   :  { %v4159_v28 = vld [vmem:[#allocation8 + $0x124] ss:$8 sps:$4 sm:$0xff]  }
  0xd6   :  { %1485 = vmatpush1.bf16.msra.mxu0 %v4058_v29  ;;  %1528 = vmatpush1.bf16.msra.mxu1 %v4061_v30  ;;  %v4154_v29 = vld [vmem:[#allocation8 + $0x20] ss:$8 sps:$4 sm:$0xff]  }
  0xd7   :  { %1486 = vmatprep.subr.bf16.mxu0 %v4066_v31  ;;  %1529 = vmatprep.subr.bf16.mxu1 %v4069_v32  ;;  %v4157_v30 = vld [vmem:[#allocation8 + $0x120] ss:$8 sps:$4 sm:$0xff]   ;;  %v4162_v31 = vld [vmem:[#allocation8 + $0x14] ss:$8 sps:$4 sm:$0xff]  }
  0xd8   :  { %v4165_v32 = vld [vmem:[#allocation8 + $0x114] ss:$8 sps:$4 sm:$0xff]  }
  0xda   :  { %1487 = vmatpush1.bf16.msra.mxu0 %v4064_v33  ;;  %1530 = vmatpush1.bf16.msra.mxu1 %v4067_v34  ;;  %v4160_v33 = vld [vmem:[#allocation8 + $0x10] ss:$8 sps:$4 sm:$0xff]  }
  0xdb   :  { %1488 = vmatprep.subr.bf16.mxu0 %v4072_v35  ;;  %1531 = vmatprep.subr.bf16.mxu1 %v4075_v36  ;;  %v4163_v34 = vld [vmem:[#allocation8 + $0x110] ss:$8 sps:$4 sm:$0xff]   ;;  %v4168_v35 = vld [vmem:[#allocation8 + $0x4] ss:$8 sps:$4 sm:$0xff]  }
  0xdc   :  { %v4171_v36 = vld [vmem:[#allocation8 + $0x104] ss:$8 sps:$4 sm:$0xff]  }
  0xde   :  { %1489 = vmatpush1.bf16.msra.mxu0 %v4070_v37  ;;  %1532 = vmatpush1.bf16.msra.mxu1 %v4073_v38  ;;  %v4166_v37 = vld [vmem:[#allocation8] ss:$8 sps:$4 sm:$0xff]  }
  0xdf   :  { %1490 = vmatprep.subr.bf16.mxu0 %v4078_v39  ;;  %1533 = vmatprep.subr.bf16.mxu1 %v4081_v40  ;;  %v4169_v38 = vld [vmem:[#allocation8 + $0x100] ss:$8 sps:$4 sm:$0xff]   ;;  %v4174_v39 = vld [vmem:[#allocation8 + $0xf4] ss:$8 sps:$4 sm:$0xff]  }
  0xe0   :  { %v4177_v40 = vld [vmem:[#allocation8 + $0x1f4] ss:$8 sps:$4 sm:$0xff]  }
  0xe2   :  { %1491 = vmatpush2.bf16.msra.mxu0 %v4076_v41  ;;  %1534 = vmatpush2.bf16.msra.mxu1 %v4079_v42  ;;  %v4172_v41 = vld [vmem:[#allocation8 + $0xf0] ss:$8 sps:$4 sm:$0xff]  }
  0xe3   :  { %1492 = vmatprep.subr.bf16.mxu0 %v4084_v43  ;;  %1535 = vmatprep.subr.bf16.mxu1 %v4087_v44  ;;  %v4175_v42 = vld [vmem:[#allocation8 + $0x1f0] ss:$8 sps:$4 sm:$0xff]   ;;  %v4180_v43 = vld [vmem:[#allocation8 + $0xe4] ss:$8 sps:$4 sm:$0xff]  }
  0xe4   :  { %v4183_v44 = vld [vmem:[#allocation8 + $0x1e4] ss:$8 sps:$4 sm:$0xff]  }
  0xe6   :  { %1493 = vmatpush2.bf16.msra.mxu0 %v4082_v45  ;;  %1536 = vmatpush2.bf16.msra.mxu1 %v4085_v46  ;;  %v4178_v45 = vld [vmem:[#allocation8 + $0xe0] ss:$8 sps:$4 sm:$0xff]  }
  0xe7   :  { %1494 = vmatprep.subr.bf16.mxu0 %v4090_v47  ;;  %1537 = vmatprep.subr.bf16.mxu1 %v4093_v48  ;;  %v4181_v46 = vld [vmem:[#allocation8 + $0x1e0] ss:$8 sps:$4 sm:$0xff]   ;;  %v4186_v47 = vld [vmem:[#allocation8 + $0xd4] ss:$8 sps:$4 sm:$0xff]  }
  0xe8   :  { %v4189_v48 = vld [vmem:[#allocation8 + $0x1d4] ss:$8 sps:$4 sm:$0xff]  }
  0xea   :  { %1495 = vmatpush2.bf16.msra.mxu0 %v4088_v49  ;;  %1538 = vmatpush2.bf16.msra.mxu1 %v4091_v50  ;;  %v4184_v49 = vld [vmem:[#allocation8 + $0xd0] ss:$8 sps:$4 sm:$0xff]  }
  0xeb   :  { %1496 = vmatprep.subr.bf16.mxu0 %v4096_v52  ;;  %1539 = vmatprep.subr.bf16.mxu1 %v4099_v53  ;;  %v4187_v50 = vld [vmem:[#allocation8 + $0x1d0] ss:$8 sps:$4 sm:$0xff]   ;;  %v4192_v52 = vld [vmem:[#allocation8 + $0xc4] ss:$8 sps:$4 sm:$0xff]  }
  0xec   :  { %v4195_v53 = vld [vmem:[#allocation8 + $0x1c4] ss:$8 sps:$4 sm:$0xff]  }
  0xee   :  { %1497 = vmatpush2.bf16.msra.mxu0 %v4094_v54  ;;  %1540 = vmatpush2.bf16.msra.mxu1 %v4097_v55  ;;  %v4190_v54 = vld [vmem:[#allocation8 + $0xc0] ss:$8 sps:$4 sm:$0xff]  }
  0xef   :  { %1498 = vmatprep.subr.bf16.mxu0 %v4102_v56  ;;  %1541 = vmatprep.subr.bf16.mxu1 %v4105_v57  ;;  %v4193_v55 = vld [vmem:[#allocation8 + $0x1c0] ss:$8 sps:$4 sm:$0xff]   ;;  %v4198_v56 = vld [vmem:[#allocation8 + $0xb4] ss:$8 sps:$4 sm:$0xff]  }
  0xf0   :  { %v4201_v57 = vld [vmem:[#allocation8 + $0x1b4] ss:$8 sps:$4 sm:$0xff]  }
  0xf2   :  { %1499 = vmatpush2.bf16.msra.mxu0 %v4100_v58  ;;  %1542 = vmatpush2.bf16.msra.mxu1 %v4103_v59  ;;  %v4196_v58 = vld [vmem:[#allocation8 + $0xb0] ss:$8 sps:$4 sm:$0xff]  }
  0xf3   :  { %1500 = vmatprep.subr.bf16.mxu0 %v4108_v60  ;;  %1543 = vmatprep.subr.bf16.mxu1 %v4111_v61  ;;  %v4199_v59 = vld [vmem:[#allocation8 + $0x1b0] ss:$8 sps:$4 sm:$0xff]   ;;  %v4204_v60 = vld [vmem:[#allocation8 + $0xa4] ss:$8 sps:$4 sm:$0xff]  }
  0xf4   :  { %v4207_v61 = vld [vmem:[#allocation8 + $0x1a4] ss:$8 sps:$4 sm:$0xff]  }
  0xf6   :  { %1501 = vmatpush2.bf16.msra.mxu0 %v4106_v62  ;;  %1544 = vmatpush2.bf16.msra.mxu1 %v4109_v63  ;;  %v4202_v62 = vld [vmem:[#allocation8 + $0xa0] ss:$8 sps:$4 sm:$0xff]  }
  0xf7   :  { %1502 = vmatprep.subr.bf16.mxu0 %v4114_v0  ;;  %1545 = vmatprep.subr.bf16.mxu1 %v4117_v1  ;;  %v4205_v63 = vld [vmem:[#allocation8 + $0x1a0] ss:$8 sps:$4 sm:$0xff]   ;;  %v4210_v0 = vld [vmem:[#allocation8 + $0x94] ss:$8 sps:$4 sm:$0xff]  }
  0xf8   :  { %v4213_v1 = vld [vmem:[#allocation8 + $0x194] ss:$8 sps:$4 sm:$0xff]  }
  0xfa   :  { %1503 = vmatpush2.bf16.msra.mxu0 %v4112_v2  ;;  %1546 = vmatpush2.bf16.msra.mxu1 %v4115_v3  ;;  %v1639_v2 = vlaneseq  ;;  %v4208_v3 = vld [vmem:[#allocation8 + $0x90] ss:$8 sps:$4 sm:$0xff]  }
  0xfb   :  { %1504 = vmatprep.subr.bf16.mxu0 %v4120_v4  ;;  %1547 = vmatprep.subr.bf16.mxu1 %v4123_v5  ;;  %v4211_v4 = vld [vmem:[#allocation8 + $0x190] ss:$8 sps:$4 sm:$0xff]   ;;  %v4216_v5 = vld [vmem:[#allocation8 + $0x84] ss:$8 sps:$4 sm:$0xff]  }
  0xfe   :  { %1505 = vmatpush2.bf16.msra.mxu0 %v4118_v6  ;;  %1548 = vmatpush2.bf16.msra.mxu1 %v4121_v8  ;;  %v4219_v6 = vld [vmem:[#allocation8 + $0x184] ss:$8 sps:$4 sm:$0xff]   ;;  %v4626_v8 = vshrl.u32 %v1639_v2, 7  ;;  %v4235_v2 = vld [vmem:[#allocation8 + $0x350] ss:$8 sps:$4 sm:$0xff]  }
  0xff   :  { %2195 = vmatprep.subr.bf16.mxu0 %v4126_v9  ;;  %2238 = vmatprep.subr.bf16.mxu1 %v4129_v10  ;;  %v4214_v9 = vld [vmem:[#allocation8 + $0x80] ss:$8 sps:$4 sm:$0xff]  }
 0x100   :  { %v4217_v10 = vld [vmem:[#allocation8 + $0x180] ss:$8 sps:$4 sm:$0xff]  }
 0x101   :  { %1507 = vmatmul.mubr.bf16.vlgmr.msra.gmra.mxu0 %v4614_v7  ;;  %1550 = vmatmul.mubr.bf16.vlgmr.msra.gmra.mxu1 %v4614_v7  ;;  %v4145_v7 = vld [vmem:[#allocation8 + $0x140] ss:$8 sps:$4 sm:$0xff]  }
 0x102   :  { %2196 = vmatpush1.bf16.msra.mxu0 %v4124_v11  ;;  %2239 = vmatpush1.bf16.msra.mxu1 %v4127_v12  ;;  %v4222_v11 = vld [vmem:[#allocation8 + $0x274] ss:$8 sps:$4 sm:$0xff]  }
 0x103   :  { %2197 = vmatprep.subr.bf16.mxu0 %v4132_v13  ;;  %2240 = vmatprep.subr.bf16.mxu1 %v4135_v14  ;;  %v4225_v12 = vld [vmem:[#allocation8 + $0x374] ss:$8 sps:$4 sm:$0xff]   ;;  %v4629_v13 = vsub.s32 0, %v4626_v8 }
 0x104   :  { %v4631_v14 = vld [vmem:[#allocation7] sm:$0xff] }
 0x106   :  { %2198 = vmatpush1.bf16.msra.mxu0 %v4130_v15  ;;  %2241 = vmatpush1.bf16.msra.mxu1 %v4133_v16  ;;  %v4634_v15 = vsub.s32 1, %v4626_v8  ;;  %v1653_v16 = vsub.s32 3, %v4626_v8 }
 0x107   :  { %2199 = vmatprep.subr.bf16.mxu0 %v4138_v17  ;;  %2242 = vmatprep.subr.bf16.mxu1 %v4141_v18  ;;  %v1649_v17 = vsub.s32 2, %v4626_v8  ;;  %v1642_v18 = vrot.slane %v4631_v14, %v4629_v13 }
 0x10a   :  { %2200 = vmatpush1.bf16.msra.mxu0 %v4136_v19  ;;  %2243 = vmatpush1.bf16.msra.mxu1 %v4139_v20 }
 0x10b   :  { %2201 = vmatprep.subr.bf16.mxu0 %v4144_v21  ;;  %2244 = vmatprep.subr.bf16.mxu1 %v4147_v22  ;;  %v1646_v21 = vrot.slane %v4631_v14, %v4634_v15  ;;  %v1654_v22 = vrot.slane %v4631_v14, %v1653_v16 }
 0x10e   :  { %2202 = vmatpush1.bf16.msra.mxu0 %v4142_v23  ;;  %2245 = vmatpush1.bf16.msra.mxu1 %v4145_v7  ;;  %v1650_v23 = vrot.slane %v4631_v14, %v1649_v17 }
 0x10f   :  { %2203 = vmatprep.subr.bf16.mxu0 %v4150_v24  ;;  %2246 = vmatprep.subr.bf16.mxu1 %v4153_v25 }
 0x112   :  { %2204 = vmatpush1.bf16.msra.mxu0 %v4148_v26  ;;  %2247 = vmatpush1.bf16.msra.mxu1 %v4151_v27 }
 0x113   :  { %2205 = vmatprep.subr.bf16.mxu0 %v4156_v51  ;;  %2248 = vmatprep.subr.bf16.mxu1 %v4159_v28 }
 0x116   :  { %2206 = vmatpush1.bf16.msra.mxu0 %v4154_v29  ;;  %2249 = vmatpush1.bf16.msra.mxu1 %v4157_v30 }
 0x117   :  { %2207 = vmatprep.subr.bf16.mxu0 %v4162_v31  ;;  %2250 = vmatprep.subr.bf16.mxu1 %v4165_v32 }
 0x11a   :  { %2208 = vmatpush1.bf16.msra.mxu0 %v4160_v33  ;;  %2251 = vmatpush1.bf16.msra.mxu1 %v4163_v34 }
 0x11b   :  { %2209 = vmatprep.subr.bf16.mxu0 %v4168_v35  ;;  %2252 = vmatprep.subr.bf16.mxu1 %v4171_v36 }
 0x11e   :  { %2210 = vmatpush1.bf16.msra.mxu0 %v4166_v37  ;;  %2253 = vmatpush1.bf16.msra.mxu1 %v4169_v38 }
 0x11f   :  { %2211 = vmatprep.subr.bf16.mxu0 %v4174_v39  ;;  %2254 = vmatprep.subr.bf16.mxu1 %v4177_v40 }
 0x122   :  { %2212 = vmatpush2.bf16.msra.mxu0 %v4172_v41  ;;  %2255 = vmatpush2.bf16.msra.mxu1 %v4175_v42 }
 0x123   :  { %2213 = vmatprep.subr.bf16.mxu0 %v4180_v43  ;;  %2256 = vmatprep.subr.bf16.mxu1 %v4183_v44 }
 0x126   :  { %2214 = vmatpush2.bf16.msra.mxu0 %v4178_v45  ;;  %2257 = vmatpush2.bf16.msra.mxu1 %v4181_v46 }
 0x127   :  { %2215 = vmatprep.subr.bf16.mxu0 %v4186_v47  ;;  %2258 = vmatprep.subr.bf16.mxu1 %v4189_v48 }
 0x12a   :  { %2216 = vmatpush2.bf16.msra.mxu0 %v4184_v49  ;;  %2259 = vmatpush2.bf16.msra.mxu1 %v4187_v50 }
 0x12b   :  { %2217 = vmatprep.subr.bf16.mxu0 %v4192_v52  ;;  %2260 = vmatprep.subr.bf16.mxu1 %v4195_v53  ;;  %v4220_v53 = vld [vmem:[#allocation8 + $0x270] ss:$8 sps:$4 sm:$0xff]  }
 0x12e   :  { %2218 = vmatpush2.bf16.msra.mxu0 %v4190_v54  ;;  %2261 = vmatpush2.bf16.msra.mxu1 %v4193_v55 }
 0x12f   :  { %2219 = vmatprep.subr.bf16.mxu0 %v4198_v56  ;;  %2262 = vmatprep.subr.bf16.mxu1 %v4201_v57  ;;  %v4223_v57 = vld [vmem:[#allocation8 + $0x370] ss:$8 sps:$4 sm:$0xff]  }
 0x132   :  { %2220 = vmatpush2.bf16.msra.mxu0 %v4196_v58  ;;  %2263 = vmatpush2.bf16.msra.mxu1 %v4199_v59  ;;  %v4228_v58 = vld [vmem:[#allocation8 + $0x264] ss:$8 sps:$4 sm:$0xff]  }
 0x133   :  { %2221 = vmatprep.subr.bf16.mxu0 %v4204_v60  ;;  %2264 = vmatprep.subr.bf16.mxu1 %v4207_v61  ;;  %v4231_v60 = vld [vmem:[#allocation8 + $0x364] ss:$8 sps:$4 sm:$0xff]   ;;  %v4226_v61 = vld [vmem:[#allocation8 + $0x260] ss:$8 sps:$4 sm:$0xff]  }
 0x136   :  { %2222 = vmatpush2.bf16.msra.mxu0 %v4202_v62  ;;  %2265 = vmatpush2.bf16.msra.mxu1 %v4205_v63  ;;  %v4229_v62 = vld [vmem:[#allocation8 + $0x360] ss:$8 sps:$4 sm:$0xff]   ;;  %v4234_v63 = vld [vmem:[#allocation8 + $0x254] ss:$8 sps:$4 sm:$0xff]  }
 0x137   :  { %2223 = vmatprep.subr.bf16.mxu0 %v4210_v0  ;;  %2266 = vmatprep.subr.bf16.mxu1 %v4213_v1  ;;  %v4237_v0 = vld [vmem:[#allocation8 + $0x354] ss:$8 sps:$4 sm:$0xff]   ;;  %v4232_v1 = vld [vmem:[#allocation8 + $0x250] ss:$8 sps:$4 sm:$0xff]  }
 0x13a   :  { %2224 = vmatpush2.bf16.msra.mxu0 %v4208_v3  ;;  %2267 = vmatpush2.bf16.msra.mxu1 %v4211_v4  ;;  %v4240_v3 = vld [vmem:[#allocation8 + $0x244] ss:$8 sps:$4 sm:$0xff]  }
 0x13b   :  { %2225 = vmatprep.subr.bf16.mxu0 %v4216_v5  ;;  %2268 = vmatprep.subr.bf16.mxu1 %v4219_v6  ;;  %v4243_v4 = vld [vmem:[#allocation8 + $0x344] ss:$8 sps:$4 sm:$0xff]   ;;  %v4238_v5 = vld [vmem:[#allocation8 + $0x240] ss:$8 sps:$4 sm:$0xff]  }
 0x13c   :  { %v4241_v6 = vld [vmem:[#allocation8 + $0x340] ss:$8 sps:$4 sm:$0xff]  }
 0x13e   :  { %2226 = vmatpush2.bf16.msra.mxu0 %v4214_v9  ;;  %2269 = vmatpush2.bf16.msra.mxu1 %v4217_v10  ;;  %v4246_v9 = vld [vmem:[#allocation8 + $0x234] ss:$8 sps:$4 sm:$0xff]  }
 0x13f   :  { %2739 = vmatprep.subr.bf16.mxu0 %v4222_v11  ;;  %2782 = vmatprep.subr.bf16.mxu1 %v4225_v12  ;;  %v4249_v10 = vld [vmem:[#allocation8 + $0x334] ss:$8 sps:$4 sm:$0xff]   ;;  %v4244_v11 = vld [vmem:[#allocation8 + $0x230] ss:$8 sps:$4 sm:$0xff]  }
 0x140   :  { %v4247_v12 = vld [vmem:[#allocation8 + $0x330] ss:$8 sps:$4 sm:$0xff]  }
 0x141   :  { %v1336_v19 = vpop.f32.mrf.mxu0  ;;  %v1379_v20 = vpop.f32.mrf.mxu1 }
 0x142   :  { %v1699_v25 = vadd.f32 %v1642_v18, %v1336_v19  ;;  %v1701_v31 = vadd.f32 %v1650_v23, %v1379_v20  ;;  %v4255_v19 = vld [vmem:[#allocation8 + $0x324] ss:$8 sps:$4 sm:$0xff]   ;;  %v4250_v20 = vld [vmem:[#allocation8 + $0x220] ss:$8 sps:$4 sm:$0xff]  }
 0x143   :  { %v1338_v7 = vpop.f32.mrf.mxu0  ;;  %v1381_v24 = vpop.f32.mrf.mxu1 }
 0x144   :  { %v1700_v26 = vadd.f32 %v1646_v21, %v1338_v7  ;;  %v1702_v28 = vadd.f32 %v1654_v22, %v1381_v24  ;;  %vm1723_vm0 = vcmp.gt.f32.partialorder %v1699_v25, 0.0  ;;  %v1747_v39 = vmul.f32 0.2, %v1699_v25  ;;  %v4256_v7 = vld [vmem:[#allocation8 + $0x210] ss:$8 sps:$4 sm:$0xff]  }
 0x145   :  { %v1340_v27 = vpop.f32.mrf.mxu0  ;;  %v1383_v51 = vpop.f32.mrf.mxu1  ;;  %v1749_v41 = vmul.f32 0.2, %v1701_v31  ;;  %vm1725_vm6 = vcmp.gt.f32.partialorder %v1701_v31, 0.0  ;;  %v4259_v24 = vld [vmem:[#allocation8 + $0x310] ss:$8 sps:$4 sm:$0xff]  }
 0x146   :  { %v1711_v29 = vadd.f32 %v1642_v18, %v1340_v27  ;;  %v1713_v30 = vadd.f32 %v1650_v23, %v1383_v51  ;;  %v1748_v34 = vmul.f32 0.2, %v1700_v26  ;;  %vm1724_vm2 = vcmp.gt.f32.partialorder %v1700_v26, 0.0  ;;  %v4252_v18 = vld [vmem:[#allocation8 + $0x224] ss:$8 sps:$4 sm:$0xff]  }
 0x147   :  { %v1342_v32 = vpop.f32.mrf.mxu0  ;;  %v1385_v33 = vpop.f32.mrf.mxu1  ;;  %v1750_v40 = vmul.f32 0.2, %v1702_v28  ;;  %vm1726_vm4 = vcmp.gt.f32.partialorder %v1702_v28, 0.0  ;;  %v1771_v48 = vsel %vm1723_vm0, %v1699_v25, %v1747_v39  ;;  %v1773_v54 = vsel %vm1725_vm6, %v1701_v31, %v1749_v41  ;;  %v4261_v23 = vld [vmem:[#allocation8 + $0x314] ss:$8 sps:$4 sm:$0xff]  }
 0x148   :  { %v1759_v35 = vmul.f32 0.2, %v1711_v29  ;;  %vm1735_vm1 = vcmp.gt.f32.partialorder %v1711_v29, 0.0  ;;  %v1761_v36 = vmul.f32 0.2, %v1713_v30  ;;  %v1712_v37 = vadd.f32 %v1646_v21, %v1342_v32 }
 0x149   :  { %v1714_v38 = vadd.f32 %v1654_v22, %v1385_v33  ;;  %vm1737_vm3 = vcmp.gt.f32.partialorder %v1713_v30, 0.0  ;;  %v1772_v46 = vsel %vm1724_vm2, %v1700_v26, %v1748_v34  ;;  %v1774_v50 = vsel %vm1726_vm4, %v1702_v28, %v1750_v40  ;;  %v4253_v21 = vld [vmem:[#allocation8 + $0x320] ss:$8 sps:$4 sm:$0xff]   ;;  %v4258_v22 = vld [vmem:[#allocation8 + $0x214] ss:$8 sps:$4 sm:$0xff]  }
 0x14a   :  { %vm1736_vm5 = vcmp.gt.f32.partialorder %v1712_v37, 0.0  ;;  %v1760_v42 = vmul.f32 0.2, %v1712_v37  ;;  %v1783_v43 = vsel %vm1735_vm1, %v1711_v29, %v1759_v35  ;;  %v1785_v45 = vsel %vm1737_vm3, %v1713_v30, %v1761_v36  ;;  %v4264_v25 = vld [vmem:[#allocation8 + $0x204] ss:$8 sps:$4 sm:$0xff]  }
 0x14b   :  { %vm1738_vm7 = vcmp.gt.f32.partialorder %v1714_v38, 0.0  ;;  %v1762_v44 = vmul.f32 0.2, %v1714_v38  ;;  %v1795_v55 = vpack.c.bf16 %v1783_v43, %v1771_v48  ;;  %v1797_v59 = vpack.c.bf16 %v1785_v45, %v1773_v54  ;;  %v4267_v26 = vld [vmem:[#allocation8 + $0x304] ss:$8 sps:$4 sm:$0xff]  }
 0x14c   :  { %v1784_v47 = vsel %vm1736_vm5, %v1712_v37, %v1760_v42  ;;  %v4262_v27 = vld [vmem:[#allocation8 + $0x200] ss:$8 sps:$4 sm:$0xff]   ;;  %v4270_v28 = vld [vmem:[#allocation8 + $0x2f4] ss:$8 sps:$4 sm:$0xff]   ;;  %v4268_v30 = vld [vmem:[#allocation8 + $0x2f0] ss:$8 sps:$4 sm:$0xff]  }
 0x14d   :  { %v1796_v49 = vpack.c.bf16 %v1784_v47, %v1772_v46  ;;  %v1786_v52 = vsel %vm1738_vm7, %v1714_v38, %v1762_v44  ;;  %v4265_v51 = vld [vmem:[#allocation8 + $0x300] ss:$8 sps:$4 sm:$0xff]   ;;  %v4273_v29 = vld [vmem:[#allocation8 + $0x3f4] ss:$8 sps:$4 sm:$0xff]   ;;  %v4271_v31 = vld [vmem:[#allocation8 + $0x3f0] ss:$8 sps:$4 sm:$0xff]  }
 0x14e   :  { %v1798_v56 = vpack.c.bf16 %v1786_v52, %v1774_v50  ;;  %v4276_v32 = vld [vmem:[#allocation8 + $0x2e4] ss:$8 sps:$4 sm:$0xff]   ;;  %v4274_v34 = vld [vmem:[#allocation8 + $0x2e0] ss:$8 sps:$4 sm:$0xff]   ;;  %v4282_v36 = vld [vmem:[#allocation8 + $0x2d4] ss:$8 sps:$4 sm:$0xff]  }
 0x14f   :  { %2227 = vmatprep.mubr.bf16.mxu0 %v1796_v49  ;;  %v4279_v33 = vld [vmem:[#allocation8 + $0x3e4] ss:$8 sps:$4 sm:$0xff]   ;;  %v4277_v35 = vld [vmem:[#allocation8 + $0x3e0] ss:$8 sps:$4 sm:$0xff]   ;;  %v4285_v37 = vld [vmem:[#allocation8 + $0x3d4] ss:$8 sps:$4 sm:$0xff]  }
 0x150   :  { %2270 = vmatprep.mubr.bf16.mxu1 %v1798_v56  ;;  %2228 = vmatmul.mubr.bf16.vlgmr.msra.gmra.mxu0 %v1795_v55  ;;  %v4280_v38 = vld [vmem:[#allocation8 + $0x2d0] ss:$8 sps:$4 sm:$0xff]   ;;  %v4288_v40 = vld [vmem:[#allocation8 + $0x2c4] ss:$8 sps:$4 sm:$0xff]   ;;  %v4286_v42 = vld [vmem:[#allocation8 + $0x2c0] ss:$8 sps:$4 sm:$0xff]  }
 0x151   :  { %2271 = vmatmul.mubr.bf16.vlgmr.msra.gmra.mxu1 %v1797_v59  ;;  %2740 = vmatpush1.bf16.msra.mxu0 %v4220_v53  ;;  %v4283_v39 = vld [vmem:[#allocation8 + $0x3d0] ss:$8 sps:$4 sm:$0xff]   ;;  %v4291_v41 = vld [vmem:[#allocation8 + $0x3c4] ss:$8 sps:$4 sm:$0xff]   ;;  %v4289_v43 = vld [vmem:[#allocation8 + $0x3c0] ss:$8 sps:$4 sm:$0xff]  }
 0x152   :  { %2783 = vmatpush1.bf16.msra.mxu1 %v4223_v57  ;;  %2741 = vmatprep.subr.bf16.mxu0 %v4228_v58  ;;  %v4294_v44 = vld [vmem:[#allocation8 + $0x2b4] ss:$8 sps:$4 sm:$0xff]   ;;  %v1657_v46 = vsub.s32 4, %v4626_v8  ;;  %v1661_v47 = vsub.s32 5, %v4626_v8  ;;  %v4292_v48 = vld [vmem:[#allocation8 + $0x2b0] ss:$8 sps:$4 sm:$0xff]  }
 0x153   :  { %2784 = vmatprep.subr.bf16.mxu1 %v4231_v60  ;;  %v4297_v45 = vld [vmem:[#allocation8 + $0x3b4] ss:$8 sps:$4 sm:$0xff]   ;;  %v1669_v49 = vsub.s32 7, %v4626_v8  ;;  %v4295_v50 = vld [vmem:[#allocation8 + $0x3b0] ss:$8 sps:$4 sm:$0xff]   ;;  %v1665_v52 = vsub.s32 6, %v4626_v8 }
 0x154   :  { %v4300_v53 = vld [vmem:[#allocation8 + $0x2a4] ss:$8 sps:$4 sm:$0xff]   ;;  %v1658_v54 = vrot.slane %v4631_v14, %v1657_v46  ;;  %v1662_v58 = vrot.slane %v4631_v14, %v1661_v47  ;;  %v4298_v60 = vld [vmem:[#allocation8 + $0x2a0] ss:$8 sps:$4 sm:$0xff]   ;;  %v4319_v47 = vld [vmem:[#allocation8 + $0x570] ss:$8 sps:$4 sm:$0xff]  }
 0x155   :  { %2742 = vmatpush1.bf16.msra.mxu0 %v4226_v61  ;;  %v4303_v55 = vld [vmem:[#allocation8 + $0x3a4] ss:$8 sps:$4 sm:$0xff]   ;;  %v1670_v59 = vrot.slane %v4631_v14, %v1669_v49  ;;  %v1666_v61 = vrot.slane %v4631_v14, %v1665_v52  ;;  %v4322_v52 = vld [vmem:[#allocation8 + $0x460] ss:$8 sps:$4 sm:$0xff]  }
 0x156   :  { %2785 = vmatpush1.bf16.msra.mxu1 %v4229_v62  ;;  %2743 = vmatprep.subr.bf16.mxu0 %v4234_v63 }
 0x157   :  { %2786 = vmatprep.subr.bf16.mxu1 %v4237_v0  ;;  %v4301_v0 = vld [vmem:[#allocation8 + $0x3a0] ss:$8 sps:$4 sm:$0xff]  }
 0x159   :  { %2744 = vmatpush1.bf16.msra.mxu0 %v4232_v1  ;;  %v4306_v1 = vld [vmem:[#allocation8 + $0x294] ss:$8 sps:$4 sm:$0xff]  }
 0x15a   :  { %2787 = vmatpush1.bf16.msra.mxu1 %v4235_v2  ;;  %2745 = vmatprep.subr.bf16.mxu0 %v4240_v3  ;;  %v4309_v3 = vld [vmem:[#allocation8 + $0x394] ss:$8 sps:$4 sm:$0xff]  }
 0x15b   :  { %2788 = vmatprep.subr.bf16.mxu1 %v4243_v4 }
 0x15d   :  { %2746 = vmatpush1.bf16.msra.mxu0 %v4238_v5 }
 0x15e   :  { %2789 = vmatpush1.bf16.msra.mxu1 %v4241_v6  ;;  %2747 = vmatprep.subr.bf16.mxu0 %v4246_v9 }
 0x15f   :  { %2790 = vmatprep.subr.bf16.mxu1 %v4249_v10 }
 0x161   :  { %2748 = vmatpush1.bf16.msra.mxu0 %v4244_v11 }
 0x162   :  { %2791 = vmatpush1.bf16.msra.mxu1 %v4247_v12  ;;  %2749 = vmatprep.subr.bf16.mxu0 %v4252_v18  ;;  %v4304_v12 = vld [vmem:[#allocation8 + $0x290] ss:$8 sps:$4 sm:$0xff]  }
 0x163   :  { %2792 = vmatprep.subr.bf16.mxu1 %v4255_v19 }
 0x165   :  { %2750 = vmatpush1.bf16.msra.mxu0 %v4250_v20  ;;  %v4307_v20 = vld [vmem:[#allocation8 + $0x390] ss:$8 sps:$4 sm:$0xff]  }
 0x166   :  { %2793 = vmatpush1.bf16.msra.mxu1 %v4253_v21  ;;  %2751 = vmatprep.subr.bf16.mxu0 %v4258_v22  ;;  %v4312_v21 = vld [vmem:[#allocation8 + $0x284] ss:$8 sps:$4 sm:$0xff]  }
 0x167   :  { %2794 = vmatprep.subr.bf16.mxu1 %v4261_v23  ;;  %v4315_v22 = vld [vmem:[#allocation8 + $0x384] ss:$8 sps:$4 sm:$0xff]  }
 0x169   :  { %2752 = vmatpush1.bf16.msra.mxu0 %v4256_v7 }
 0x16a   :  { %2795 = vmatpush1.bf16.msra.mxu1 %v4259_v24  ;;  %2753 = vmatprep.subr.bf16.mxu0 %v4264_v25  ;;  %v4310_v24 = vld [vmem:[#allocation8 + $0x280] ss:$8 sps:$4 sm:$0xff]  }
 0x16b   :  { %2796 = vmatprep.subr.bf16.mxu1 %v4267_v26 }
 0x16d   :  { %2754 = vmatpush1.bf16.msra.mxu0 %v4262_v27 }
 0x16e   :  { %2797 = vmatpush1.bf16.msra.mxu1 %v4265_v51  ;;  %2755 = vmatprep.subr.bf16.mxu0 %v4270_v28  ;;  %v4313_v51 = vld [vmem:[#allocation8 + $0x380] ss:$8 sps:$4 sm:$0xff]   ;;  %v4318_v28 = vld [vmem:[#allocation8 + $0x474] ss:$8 sps:$4 sm:$0xff]  }
 0x16f   :  { %2798 = vmatprep.subr.bf16.mxu1 %v4273_v29 }
 0x171   :  { %2756 = vmatpush2.bf16.msra.mxu0 %v4268_v30 }
 0x172   :  { %2799 = vmatpush2.bf16.msra.mxu1 %v4271_v31  ;;  %2757 = vmatprep.subr.bf16.mxu0 %v4276_v32 }
 0x173   :  { %2800 = vmatprep.subr.bf16.mxu1 %v4279_v33 }
 0x175   :  { %2758 = vmatpush2.bf16.msra.mxu0 %v4274_v34 }
 0x176   :  { %2801 = vmatpush2.bf16.msra.mxu1 %v4277_v35  ;;  %2759 = vmatprep.subr.bf16.mxu0 %v4282_v36  ;;  %v4321_v35 = vld [vmem:[#allocation8 + $0x574] ss:$8 sps:$4 sm:$0xff]  }
 0x177   :  { %2802 = vmatprep.subr.bf16.mxu1 %v4285_v37 }
 0x179   :  { %2760 = vmatpush2.bf16.msra.mxu0 %v4280_v38 }
 0x17a   :  { %2803 = vmatpush2.bf16.msra.mxu1 %v4283_v39  ;;  %2761 = vmatprep.subr.bf16.mxu0 %v4288_v40 }
 0x17b   :  { %2804 = vmatprep.subr.bf16.mxu1 %v4291_v41 }
 0x17d   :  { %2762 = vmatpush2.bf16.msra.mxu0 %v4286_v42 }
 0x17e   :  { %2805 = vmatpush2.bf16.msra.mxu1 %v4289_v43  ;;  %2763 = vmatprep.subr.bf16.mxu0 %v4294_v44  ;;  %v4316_v43 = vld [vmem:[#allocation8 + $0x470] ss:$8 sps:$4 sm:$0xff]  }
 0x17f   :  { %2806 = vmatprep.subr.bf16.mxu1 %v4297_v45 }
 0x181   :  { %v1422_v56 = vpop.f32.mrf.mxu0  ;;  %v1465_v57 = vpop.f32.mrf.mxu1  ;;  %2764 = vmatpush2.bf16.msra.mxu0 %v4292_v48  ;;  %v4324_v48 = vld [vmem:[#allocation8 + $0x464] ss:$8 sps:$4 sm:$0xff]  }
 0x182   :  { %2807 = vmatpush2.bf16.msra.mxu1 %v4295_v50  ;;  %2765 = vmatprep.subr.bf16.mxu0 %v4300_v53  ;;  %v1703_v2 = vadd.f32 %v1658_v54, %v1422_v56  ;;  %v1705_v18 = vadd.f32 %v1666_v61, %v1465_v57  ;;  %v4327_v50 = vld [vmem:[#allocation8 + $0x564] ss:$8 sps:$4 sm:$0xff]   ;;  %v4325_v53 = vld [vmem:[#allocation8 + $0x560] ss:$8 sps:$4 sm:$0xff]   ;;  %v4328_v56 = vld [vmem:[#allocation8 + $0x450] ss:$8 sps:$4 sm:$0xff]  }
 0x183   :  { %v1424_v62 = vpop.f32.mrf.mxu0  ;;  %v1467_v63 = vpop.f32.mrf.mxu1  ;;  %2808 = vmatprep.subr.bf16.mxu1 %v4303_v55  ;;  %v4333_v55 = vld [vmem:[#allocation8 + $0x554] ss:$8 sps:$4 sm:$0xff]   ;;  %v4331_v57 = vld [vmem:[#allocation8 + $0x550] ss:$8 sps:$4 sm:$0xff]  }
 0x184   :  { %v1704_v4 = vadd.f32 %v1662_v58, %v1424_v62  ;;  %v1706_v9 = vadd.f32 %v1670_v59, %v1467_v63  ;;  %vm1727_vm8 = vcmp.gt.f32.partialorder %v1703_v2, 0.0  ;;  %v1751_v29 = vmul.f32 0.2, %v1703_v2  ;;  %v4342_v62 = vld [vmem:[#allocation8 + $0x434] ss:$8 sps:$4 sm:$0xff]  }
 0x185   :  { %v1426_v5 = vpop.f32.mrf.mxu0  ;;  %v1469_v6 = vpop.f32.mrf.mxu1  ;;  %2766 = vmatpush2.bf16.msra.mxu0 %v4298_v60  ;;  %v1753_v31 = vmul.f32 0.2, %v1705_v18  ;;  %vm1729_vm14 = vcmp.gt.f32.partialorder %v1705_v18, 0.0  ;;  %v4334_v60 = vld [vmem:[#allocation8 + $0x440] ss:$8 sps:$4 sm:$0xff]  }
 0x186   :  { %v1715_v10 = vadd.f32 %v1658_v54, %v1426_v5  ;;  %v1717_v11 = vadd.f32 %v1666_v61, %v1469_v6  ;;  %2809 = vmatpush2.bf16.msra.mxu1 %v4301_v0  ;;  %2767 = vmatprep.subr.bf16.mxu0 %v4306_v1  ;;  %v1752_v23 = vmul.f32 0.2, %v1704_v4  ;;  %vm1728_vm10 = vcmp.gt.f32.partialorder %v1704_v4, 0.0  ;;  %v4330_v54 = vld [vmem:[#allocation8 + $0x454] ss:$8 sps:$4 sm:$0xff]  }
 0x187   :  { %v1428_v14 = vpop.f32.mrf.mxu0  ;;  %v1471_v19 = vpop.f32.mrf.mxu1  ;;  %2810 = vmatprep.subr.bf16.mxu1 %v4309_v3  ;;  %v1754_v30 = vmul.f32 0.2, %v1706_v9  ;;  %vm1730_vm12 = vcmp.gt.f32.partialorder %v1706_v9, 0.0  ;;  %v1775_v39 = vsel %vm1727_vm8, %v1703_v2, %v1751_v29  ;;  %v1777_v44 = vsel %vm1729_vm14, %v1705_v18, %v1753_v31  ;;  %v4337_v61 = vld [vmem:[#allocation8 + $0x540] ss:$8 sps:$4 sm:$0xff]  }
 0x188   :  { %v1763_v7 = vmul.f32 0.2, %v1715_v10  ;;  %vm1739_vm9 = vcmp.gt.f32.partialorder %v1715_v10, 0.0  ;;  %v1765_v25 = vmul.f32 0.2, %v1717_v11  ;;  %v1716_v26 = vadd.f32 %v1662_v58, %v1428_v14 }
 0x189   :  { %v1718_v27 = vadd.f32 %v1670_v59, %v1471_v19  ;;  %vm1741_vm11 = vcmp.gt.f32.partialorder %v1717_v11, 0.0  ;;  %2768 = vmatpush2.bf16.msra.mxu0 %v4304_v12  ;;  %v1776_v37 = vsel %vm1728_vm10, %v1704_v4, %v1752_v23  ;;  %v1778_v41 = vsel %vm1730_vm12, %v1706_v9, %v1754_v30  ;;  %v4336_v58 = vld [vmem:[#allocation8 + $0x444] ss:$8 sps:$4 sm:$0xff]   ;;  %v4345_v63 = vld [vmem:[#allocation8 + $0x534] ss:$8 sps:$4 sm:$0xff]  }
 0x18a   :  { %vm1740_vm13 = vcmp.gt.f32.partialorder %v1716_v26, 0.0  ;;  %v1764_v32 = vmul.f32 0.2, %v1716_v26  ;;  %2811 = vmatpush2.bf16.msra.mxu1 %v4307_v20  ;;  %2769 = vmatprep.subr.bf16.mxu0 %v4312_v21  ;;  %v1787_v33 = vsel %vm1739_vm9, %v1715_v10, %v1763_v7  ;;  %v1789_v36 = vsel %vm1741_vm11, %v1717_v11, %v1765_v25  ;;  %v4339_v59 = vld [vmem:[#allocation8 + $0x544] ss:$8 sps:$4 sm:$0xff]  }
 0x18b   :  { %vm1742_vm15 = vcmp.gt.f32.partialorder %v1718_v27, 0.0  ;;  %v1766_v34 = vmul.f32 0.2, %v1718_v27  ;;  %2812 = vmatprep.subr.bf16.mxu1 %v4315_v22  ;;  %v2337_v45 = vpack.c.bf16 %v1787_v33, %v1775_v39  ;;  %v2339_v49 = vpack.c.bf16 %v1789_v36, %v1777_v44  ;;  %v4340_v0 = vld [vmem:[#allocation8 + $0x430] ss:$8 sps:$4 sm:$0xff]  }
 0x18c   :  { %v1788_v38 = vsel %vm1740_vm13, %v1716_v26, %v1764_v32  ;;  %v4343_v1 = vld [vmem:[#allocation8 + $0x530] ss:$8 sps:$4 sm:$0xff]   ;;  %v4348_v2 = vld [vmem:[#allocation8 + $0x424] ss:$8 sps:$4 sm:$0xff]   ;;  %v4346_v4 = vld [vmem:[#allocation8 + $0x420] ss:$8 sps:$4 sm:$0xff]  }
 0x18d   :  { %2770 = vmatpush2.bf16.msra.mxu0 %v4310_v24  ;;  %v2338_v40 = vpack.c.bf16 %v1788_v38, %v1776_v37  ;;  %v1790_v42 = vsel %vm1742_vm15, %v1718_v27, %v1766_v34  ;;  %v4351_v3 = vld [vmem:[#allocation8 + $0x524] ss:$8 sps:$4 sm:$0xff]   ;;  %v4349_v5 = vld [vmem:[#allocation8 + $0x520] ss:$8 sps:$4 sm:$0xff]   ;;  %v4354_v6 = vld [vmem:[#allocation8 + $0x414] ss:$8 sps:$4 sm:$0xff]  }
 0x18e   :  { %2813 = vmatpush2.bf16.msra.mxu1 %v4313_v51  ;;  %v2340_v46 = vpack.c.bf16 %v1790_v42, %v1778_v41  ;;  %3284 = vmatprep.subr.bf16.mxu0 %v4318_v28  ;;  %v4357_v9 = vld [vmem:[#allocation8 + $0x514] ss:$8 sps:$4 sm:$0xff]   ;;  %v4352_v10 = vld [vmem:[#allocation8 + $0x410] ss:$8 sps:$4 sm:$0xff]   ;;  %v4360_v12 = vld [vmem:[#allocation8 + $0x404] ss:$8 sps:$4 sm:$0xff]  }
 0x18f   :  { %2771 = vmatprep.mubr.bf16.mxu0 %v2338_v40  ;;  %3327 = vmatprep.subr.bf16.mxu1 %v4321_v35  ;;  %v4355_v11 = vld [vmem:[#allocation8 + $0x510] ss:$8 sps:$4 sm:$0xff]   ;;  %v4363_v18 = vld [vmem:[#allocation8 + $0x504] ss:$8 sps:$4 sm:$0xff]   ;;  %v4358_v14 = vld [vmem:[#allocation8 + $0x400] ss:$8 sps:$4 sm:$0xff]  }
 0x190   :  { %2814 = vmatprep.mubr.bf16.mxu1 %v2340_v46  ;;  %2772 = vmatmul.mubr.bf16.vlgmr.msra.gmra.mxu0 %v2337_v45  ;;  %v4361_v19 = vld [vmem:[#allocation8 + $0x500] ss:$8 sps:$4 sm:$0xff]   ;;  %v4366_v20 = vld [vmem:[#allocation8 + $0x4f4] ss:$8 sps:$4 sm:$0xff]   ;;  %v4364_v22 = vld [vmem:[#allocation8 + $0x4f0] ss:$8 sps:$4 sm:$0xff]  }
 0x191   :  { %2815 = vmatmul.mubr.bf16.vlgmr.msra.gmra.mxu1 %v2339_v49  ;;  %3285 = vmatpush1.bf16.msra.mxu0 %v4316_v43  ;;  %v4369_v21 = vld [vmem:[#allocation8 + $0x5f4] ss:$8 sps:$4 sm:$0xff]   ;;  %v4367_v23 = vld [vmem:[#allocation8 + $0x5f0] ss:$8 sps:$4 sm:$0xff]   ;;  %v4372_v7 = vld [vmem:[#allocation8 + $0x4e4] ss:$8 sps:$4 sm:$0xff]  }
 0x192   :  { %3328 = vmatpush1.bf16.msra.mxu1 %v4319_v47  ;;  %3286 = vmatprep.subr.bf16.mxu0 %v4324_v48  ;;  %v4375_v24 = vld [vmem:[#allocation8 + $0x5e4] ss:$8 sps:$4 sm:$0xff]   ;;  %v4370_v25 = vld [vmem:[#allocation8 + $0x4e0] ss:$8 sps:$4 sm:$0xff]   ;;  %v4378_v27 = vld [vmem:[#allocation8 + $0x4d4] ss:$8 sps:$4 sm:$0xff]  }
 0x193   :  { %3329 = vmatprep.subr.bf16.mxu1 %v4327_v50  ;;  %v4373_v26 = vld [vmem:[#allocation8 + $0x5e0] ss:$8 sps:$4 sm:$0xff]   ;;  %v4381_v51 = vld [vmem:[#allocation8 + $0x5d4] ss:$8 sps:$4 sm:$0xff]   ;;  %v4376_v28 = vld [vmem:[#allocation8 + $0x4d0] ss:$8 sps:$4 sm:$0xff]  }
 0x194   :  { %v4379_v29 = vld [vmem:[#allocation8 + $0x5d0] ss:$8 sps:$4 sm:$0xff]   ;;  %v4384_v30 = vld [vmem:[#allocation8 + $0x4c4] ss:$8 sps:$4 sm:$0xff]   ;;  %v4382_v32 = vld [vmem:[#allocation8 + $0x4c0] ss:$8 sps:$4 sm:$0xff]  }
 0x195   :  { %3287 = vmatpush1.bf16.msra.mxu0 %v4322_v52  ;;  %v4387_v31 = vld [vmem:[#allocation8 + $0x5c4] ss:$8 sps:$4 sm:$0xff]   ;;  %v4385_v33 = vld [vmem:[#allocation8 + $0x5c0] ss:$8 sps:$4 sm:$0xff]   ;;  %v4390_v34 = vld [vmem:[#allocation8 + $0x4b4] ss:$8 sps:$4 sm:$0xff]  }
 0x196   :  { %3330 = vmatpush1.bf16.msra.mxu1 %v4325_v53  ;;  %3288 = vmatprep.subr.bf16.mxu0 %v4330_v54  ;;  %v4393_v35 = vld [vmem:[#allocation8 + $0x5b4] ss:$8 sps:$4 sm:$0xff]   ;;  %v4388_v37 = vld [vmem:[#allocation8 + $0x4b0] ss:$8 sps:$4 sm:$0xff]   ;;  %v4396_v39 = vld [vmem:[#allocation8 + $0x4a4] ss:$8 sps:$4 sm:$0xff]  }
 0x197   :  { %3331 = vmatprep.subr.bf16.mxu1 %v4333_v55  ;;  %v1636_v36 = vld [vmem:[#allocation7 + $0x8] sm:$0xf]  ;;  %v4391_v38 = vld [vmem:[#allocation8 + $0x5b0] ss:$8 sps:$4 sm:$0xff]   ;;  %v4399_v41 = vld [vmem:[#allocation8 + $0x5a4] ss:$8 sps:$4 sm:$0xff]  }
 0x198   :  { %v1674_v40 = vrot.slane %v1636_v36, %v4629_v13  ;;  %v1678_v44 = vrot.slane %v1636_v36, %v4634_v15  ;;  %v1686_v45 = vrot.slane %v1636_v36, %v1653_v16  ;;  %v4394_v46 = vld [vmem:[#allocation8 + $0x4a0] ss:$8 sps:$4 sm:$0xff]   ;;  %v1682_v47 = vrot.slane %v1636_v36, %v1649_v17  ;;  %v4402_v52 = vld [vmem:[#allocation8 + $0x494] ss:$8 sps:$4 sm:$0xff]   ;;  %v4400_v16 = vld [vmem:[#allocation8 + $0x490] ss:$8 sps:$4 sm:$0xff]  }
 0x199   :  { %3289 = vmatpush1.bf16.msra.mxu0 %v4328_v56  ;;  %v4397_v50 = vld [vmem:[#allocation8 + $0x5a0] ss:$8 sps:$4 sm:$0xff]   ;;  %v4405_v54 = vld [vmem:[#allocation8 + $0x594] ss:$8 sps:$4 sm:$0xff]  }
 0x19a   :  { %3332 = vmatpush1.bf16.msra.mxu1 %v4331_v57  ;;  %3290 = vmatprep.subr.bf16.mxu0 %v4336_v58 }
 0x19b   :  { %3333 = vmatprep.subr.bf16.mxu1 %v4339_v59 }
 0x19d   :  { %3291 = vmatpush1.bf16.msra.mxu0 %v4334_v60 }
 0x19e   :  { %3334 = vmatpush1.bf16.msra.mxu1 %v4337_v61  ;;  %3292 = vmatprep.subr.bf16.mxu0 %v4342_v62  ;;  %v4403_v62 = vld [vmem:[#allocation8 + $0x590] ss:$8 sps:$4 sm:$0xff]  }
 0x19f   :  { %3335 = vmatprep.subr.bf16.mxu1 %v4345_v63  ;;  %v4408_v63 = vld [vmem:[#allocation8 + $0x484] ss:$8 sps:$4 sm:$0xff]  }
 0x1a1   :  { %3293 = vmatpush1.bf16.msra.mxu0 %v4340_v0  ;;  %v4411_v0 = vld [vmem:[#allocation8 + $0x584] ss:$8 sps:$4 sm:$0xff]  }
 0x1a2   :  { %3336 = vmatpush1.bf16.msra.mxu1 %v4343_v1  ;;  %3294 = vmatprep.subr.bf16.mxu0 %v4348_v2 }
 0x1a3   :  { %3337 = vmatprep.subr.bf16.mxu1 %v4351_v3  ;;  %v4406_v3 = vld [vmem:[#allocation8 + $0x480] ss:$8 sps:$4 sm:$0xff]  }
 0x1a5   :  { %3295 = vmatpush1.bf16.msra.mxu0 %v4346_v4 }
 0x1a6   :  { %3338 = vmatpush1.bf16.msra.mxu1 %v4349_v5  ;;  %3296 = vmatprep.subr.bf16.mxu0 %v4354_v6 }
 0x1a7   :  { %3339 = vmatprep.subr.bf16.mxu1 %v4357_v9  ;;  %v4409_v9 = vld [vmem:[#allocation8 + $0x580] ss:$8 sps:$4 sm:$0xff]  }
 0x1a9   :  { %3297 = vmatpush1.bf16.msra.mxu0 %v4352_v10 }
 0x1aa   :  { %3340 = vmatpush1.bf16.msra.mxu1 %v4355_v11  ;;  %3298 = vmatprep.subr.bf16.mxu0 %v4360_v12 }
 0x1ab   :  { %3341 = vmatprep.subr.bf16.mxu1 %v4363_v18 }
 0x1ad   :  { %3299 = vmatpush1.bf16.msra.mxu0 %v4358_v14 }
 0x1ae   :  { %3342 = vmatpush1.bf16.msra.mxu1 %v4361_v19  ;;  %3300 = vmatprep.subr.bf16.mxu0 %v4366_v20 }
 0x1af   :  { %3343 = vmatprep.subr.bf16.mxu1 %v4369_v21 }
 0x1b1   :  { %3301 = vmatpush2.bf16.msra.mxu0 %v4364_v22 }
 0x1b2   :  { %3344 = vmatpush2.bf16.msra.mxu1 %v4367_v23  ;;  %3302 = vmatprep.subr.bf16.mxu0 %v4372_v7 }
 0x1b3   :  { %3345 = vmatprep.subr.bf16.mxu1 %v4375_v24 }
 0x1b5   :  { %3303 = vmatpush2.bf16.msra.mxu0 %v4370_v25 }
 0x1b6   :  { %3346 = vmatpush2.bf16.msra.mxu1 %v4373_v26  ;;  %3304 = vmatprep.subr.bf16.mxu0 %v4378_v27 }
 0x1b7   :  { %3347 = vmatprep.subr.bf16.mxu1 %v4381_v51 }
 0x1b9   :  { %3305 = vmatpush2.bf16.msra.mxu0 %v4376_v28 }
 0x1ba   :  { %3348 = vmatpush2.bf16.msra.mxu1 %v4379_v29  ;;  %3306 = vmatprep.subr.bf16.mxu0 %v4384_v30  ;;  %v1863_v29 = vld [vmem:[%s4717_s4] sm:$0x3] }
 0x1bb   :  { %3349 = vmatprep.subr.bf16.mxu1 %v4387_v31  ;;  %v1868_v30 = vrot.slane %v1863_v29, %v4629_v13  ;;  %v1872_v31 = vrot.slane %v1863_v29, %v4634_v15 }
 0x1bd   :  { %3307 = vmatpush2.bf16.msra.mxu0 %v4382_v32 }
 0x1be   :  { %3350 = vmatpush2.bf16.msra.mxu1 %v4385_v33  ;;  %3308 = vmatprep.subr.bf16.mxu0 %v4390_v34 }
 0x1bf   :  { %3351 = vmatprep.subr.bf16.mxu1 %v4393_v35 }
 0x1c1   :  { %v1508_v42 = vpop.f32.mrf.mxu0  ;;  %v1551_v43 = vpop.f32.mrf.mxu1  ;;  %3309 = vmatpush2.bf16.msra.mxu0 %v4388_v37 }
 0x1c2   :  { %3352 = vmatpush2.bf16.msra.mxu1 %v4391_v38  ;;  %3310 = vmatprep.subr.bf16.mxu0 %v4396_v39  ;;  %v1707_v53 = vadd.f32 %v1674_v40, %v1508_v42  ;;  %v1709_v61 = vadd.f32 %v1682_v47, %v1551_v43  ;;  %v2293_v39 = vld [vmem:[#allocation10] sm:$0x3] }
 0x1c3   :  { %v1510_v48 = vpop.f32.mrf.mxu0  ;;  %v1553_v49 = vpop.f32.mrf.mxu1  ;;  %3353 = vmatprep.subr.bf16.mxu1 %v4399_v41 }
 0x1c4   :  { %v1708_v55 = vadd.f32 %v1678_v44, %v1510_v48  ;;  %v1710_v58 = vadd.f32 %v1686_v45, %v1553_v49  ;;  %vm1731_vm0 = vcmp.gt.f32.partialorder %v1707_v53, 0.0  ;;  %v1755_v10 = vmul.f32 0.2, %v1707_v53 }
 0x1c5   :  { %v1512_v56 = vpop.f32.mrf.mxu0  ;;  %v1555_v57 = vpop.f32.mrf.mxu1  ;;  %3311 = vmatpush2.bf16.msra.mxu0 %v4394_v46  ;;  %v1757_v12 = vmul.f32 0.2, %v1709_v61  ;;  %vm1733_vm6 = vcmp.gt.f32.partialorder %v1709_v61, 0.0  ;;  %v2298_v46 = vrot.slane %v2293_v39, %v4629_v13 }
 0x1c6   :  { %v1719_v59 = vadd.f32 %v1674_v40, %v1512_v56  ;;  %v1721_v60 = vadd.f32 %v1682_v47, %v1555_v57  ;;  %3354 = vmatpush2.bf16.msra.mxu1 %v4397_v50  ;;  %3312 = vmatprep.subr.bf16.mxu0 %v4402_v52  ;;  %v1756_v1 = vmul.f32 0.2, %v1708_v55  ;;  %vm1732_vm2 = vcmp.gt.f32.partialorder %v1708_v55, 0.0 }
 0x1c7   :  { %v1514_v8 = vpop.f32.mrf.mxu0  ;;  %v1557_v17 = vpop.f32.mrf.mxu1  ;;  %3355 = vmatprep.subr.bf16.mxu1 %v4405_v54  ;;  %v1758_v11 = vmul.f32 0.2, %v1710_v58  ;;  %vm1734_vm4 = vcmp.gt.f32.partialorder %v1710_v58, 0.0  ;;  %v1779_v23 = vsel %vm1731_vm0, %v1707_v53, %v1755_v10  ;;  %v1781_v26 = vsel %vm1733_vm6, %v1709_v61, %v1757_v12 }
 0x1c8   :  { %v1767_v2 = vmul.f32 0.2, %v1719_v59  ;;  %vm1743_vm1 = vcmp.gt.f32.partialorder %v1719_v59, 0.0  ;;  %v1769_v4 = vmul.f32 0.2, %v1721_v60  ;;  %v1720_v5 = vadd.f32 %v1678_v44, %v1514_v8 }
 0x1c9   :  { %v1722_v6 = vadd.f32 %v1686_v45, %v1557_v17  ;;  %vm1745_vm3 = vcmp.gt.f32.partialorder %v1721_v60, 0.0  ;;  %3313 = vmatpush2.bf16.msra.mxu0 %v4400_v16  ;;  %v1780_v21 = vsel %vm1732_vm2, %v1708_v55, %v1756_v1  ;;  %v1782_v24 = vsel %vm1734_vm4, %v1710_v58, %v1758_v11  ;;  %v2838_v11 = vld [vmem:[#allocation10 + $0x2] sm:$0x3] }
 0x1ca   :  { %vm1744_vm5 = vcmp.gt.f32.partialorder %v1720_v5, 0.0  ;;  %v1768_v18 = vmul.f32 0.2, %v1720_v5  ;;  %3356 = vmatpush2.bf16.msra.mxu1 %v4403_v62  ;;  %3314 = vmatprep.subr.bf16.mxu0 %v4408_v63  ;;  %v1791_v14 = vsel %vm1743_vm1, %v1719_v59, %v1767_v2  ;;  %v1793_v20 = vsel %vm1745_vm3, %v1721_v60, %v1769_v4  ;;  %v3691_v63 = vld [vmem:[%s4717_s4 + $0x2] sm:$0x3] }
 0x1cb   :  { %vm1746_vm7 = vcmp.gt.f32.partialorder %v1722_v6, 0.0  ;;  %v1770_v19 = vmul.f32 0.2, %v1722_v6  ;;  %3357 = vmatprep.subr.bf16.mxu1 %v4411_v0  ;;  %v2882_v27 = vpack.c.bf16 %v1791_v14, %v1779_v23  ;;  %v2884_v28 = vpack.c.bf16 %v1793_v20, %v1781_v26 }
 0x1cc   :  { %v1792_v22 = vsel %vm1744_vm5, %v1720_v5, %v1768_v18  ;;  %v2302_v47 = vrot.slane %v2293_v39, %v4634_v15  ;;  %v2412_v0 = vrot.slane %v3691_v63, %v4629_v13  ;;  %v2416_v1 = vrot.slane %v3691_v63, %v4634_v15  ;;  %v3757_v39 = vld [vmem:[%s4717_s4 + $0x4] sm:$0x3] }
 0x1cd   :  { %3315 = vmatpush2.bf16.msra.mxu0 %v4406_v3  ;;  %v2883_v7 = vpack.c.bf16 %v1792_v22, %v1780_v21  ;;  %v1794_v25 = vsel %vm1746_vm7, %v1722_v6, %v1770_v19  ;;  %v2843_v22 = vrot.slane %v2838_v11, %v4629_v13  ;;  %v2847_v23 = vrot.slane %v2838_v11, %v4634_v15 }
 0x1ce   :  { %3358 = vmatpush2.bf16.msra.mxu1 %v4409_v9  ;;  %v2885_v51 = vpack.c.bf16 %v1794_v25, %v1782_v24  ;;  %vm2334_vm4 = vcmask 7168   ;;  %vm2879_vm5 = vcmask 15368   ;;  %vm3424_vm6 = vcmask 23568  }
 0x1cf   :  { %3316 = vmatprep.mubr.bf16.mxu0 %v2883_v7 }
 0x1d0   :  { %3359 = vmatprep.mubr.bf16.mxu1 %v2885_v51  ;;  %3317 = vmatmul.mubr.bf16.vlgmr.msra.gmra.mxu0 %v2882_v27 }
 0x1d1   :  { %3360 = vmatmul.mubr.bf16.vlgmr.msra.gmra.mxu1 %v2884_v28 }
 0x210   :  { %v2229_v32 = vpop.f32.mrf.mxu0 }
 0x211   :  { %v2230_v33 = vadd.f32 %v2229_v32, %v1868_v30  ;;  %v2272_v34 = vpop.f32.mrf.mxu1 }
 0x212   :  { %v2231_v35 = vpop.f32.mrf.mxu0 }
 0x213   :  { %v2273_v36 = vadd.f32 %v2272_v34, %v2230_v33  ;;  %v2232_v37 = vadd.f32 %v2231_v35, %v1872_v31  ;;  %v2274_v38 = vpop.f32.mrf.mxu1 }
 0x214   :  { %v2233_v40 = vpop.f32.mrf.mxu0 }
 0x215   :  { %vm2281_vm8 = vcmp.gt.f32.partialorder %v2273_v36, 0.0  ;;  %v2285_v41 = vmul.f32 0.2, %v2273_v36  ;;  %v2275_v42 = vadd.f32 %v2274_v38, %v2232_v37  ;;  %v2234_v43 = vadd.f32 %v2233_v40, %v1868_v30  ;;  %v2276_v44 = vpop.f32.mrf.mxu1 }
 0x216   :  { %v2235_v45 = vpop.f32.mrf.mxu0  ;;  %v2957_v40 = vrot.slane %v3757_v39, %v4629_v13 }
 0x217   :  { %vm2282_vm9 = vcmp.gt.f32.partialorder %v2275_v42, 0.0  ;;  %v2286_v48 = vmul.f32 0.2, %v2275_v42  ;;  %v2277_v49 = vadd.f32 %v2276_v44, %v2234_v43  ;;  %v2236_v50 = vadd.f32 %v2235_v45, %v1872_v31  ;;  %v2278_v52 = vpop.f32.mrf.mxu1 }
 0x218   :  { %v2289_v53 = vsel %vm2281_vm8, %v2273_v36, %v2285_v41  ;;  %v2961_v41 = vrot.slane %v3757_v39, %v4634_v15 }
 0x219   :  { %vm2283_vm10 = vcmp.gt.f32.partialorder %v2277_v49, 0.0  ;;  %v2287_v54 = vmul.f32 0.2, %v2277_v49  ;;  %v2279_v55 = vadd.f32 %v2278_v52, %v2236_v50  ;;  %v2290_v56 = vsel %vm2282_vm9, %v2275_v42, %v2286_v48 }
 0x21a   :  { %v2305_v57 = vmul.f32 %v2298_v46, %v2289_v53  ;;  %v2306_v58 = vmul.f32 %v2302_v47, %v2290_v56 }
 0x21b   :  { %vm2284_vm11 = vcmp.gt.f32.partialorder %v2279_v55, 0.0  ;;  %v2288_v59 = vmul.f32 0.2, %v2279_v55  ;;  %v2291_v60 = vsel %vm2283_vm10, %v2277_v49, %v2287_v54  ;;  %v3383_v49 = vld [vmem:[#allocation10 + $0x4] sm:$0x3] }
 0x21c   :  { %v2309_v16 = vadd.f32 %v2306_v58, %v2305_v57  ;;  %v2307_v8 = vmul.f32 %v2298_v46, %v2291_v60  ;;  %v3388_v57 = vrot.slane %v3383_v49, %v4629_v13  ;;  %v3392_v58 = vrot.slane %v3383_v49, %v4634_v15 }
 0x21d   :  { %v2292_v61 = vsel %vm2284_vm11, %v2279_v55, %v2288_v59 }
 0x21e   :  { %2310 = vadd.xlane.f32.xlu0 %v2309_v16  ;;  %v2308_v17 = vmul.f32 %v2302_v47, %v2292_v61 }
 0x220   :  { %v2312_v62 = vadd.f32 %v2308_v17, %v2307_v8 }
 0x222   :  { %2313 = vadd.xlane.f32.xlu0 %v2312_v62 }
 0x250   :  { %v2773_v2 = vpop.f32.mrf.mxu0 }
 0x251   :  { %v2774_v3 = vadd.f32 %v2773_v2, %v2412_v0  ;;  %v2816_v4 = vpop.f32.mrf.mxu1 }
 0x252   :  { %v2775_v5 = vpop.f32.mrf.mxu0 }
 0x253   :  { %v2817_v6 = vadd.f32 %v2816_v4, %v2774_v3  ;;  %v2776_v9 = vadd.f32 %v2775_v5, %v2416_v1  ;;  %v2818_v10 = vpop.f32.mrf.mxu1 }
 0x254   :  { %v2777_v12 = vpop.f32.mrf.mxu0 }
 0x255   :  { %vm2825_vm12 = vcmp.gt.f32.partialorder %v2817_v6, 0.0  ;;  %v2829_v18 = vmul.f32 0.2, %v2817_v6  ;;  %v2819_v14 = vadd.f32 %v2818_v10, %v2776_v9  ;;  %v2778_v19 = vadd.f32 %v2777_v12, %v2412_v0  ;;  %v2820_v20 = vpop.f32.mrf.mxu1  ;;  %v3690_v9 = vld [vmem:[%s4719_s6] ss:$0 sm:$0xff] }
 0x256   :  { %v2779_v21 = vpop.f32.mrf.mxu0 }
 0x257   :  { %vm2826_vm13 = vcmp.gt.f32.partialorder %v2819_v14, 0.0  ;;  %v2830_v7 = vmul.f32 0.2, %v2819_v14  ;;  %v2821_v24 = vadd.f32 %v2820_v20, %v2778_v19  ;;  %v2780_v25 = vadd.f32 %v2779_v21, %v2416_v1  ;;  %v2822_v26 = vpop.f32.mrf.mxu1 }
 0x258   :  { %v2833_v27 = vsel %vm2825_vm12, %v2817_v6, %v2829_v18 }
 0x259   :  { %vm2827_vm14 = vcmp.gt.f32.partialorder %v2821_v24, 0.0  ;;  %v2831_v51 = vmul.f32 0.2, %v2821_v24  ;;  %v2823_v28 = vadd.f32 %v2822_v26, %v2780_v25  ;;  %v2834_v29 = vsel %vm2826_vm13, %v2819_v14, %v2830_v7 }
 0x25a   :  { %v2850_v30 = vmul.f32 %v2843_v22, %v2833_v27  ;;  %v2851_v31 = vmul.f32 %v2847_v23, %v2834_v29 }
 0x25b   :  { %vm2828_vm15 = vcmp.gt.f32.partialorder %v2823_v28, 0.0  ;;  %v2832_v32 = vmul.f32 0.2, %v2823_v28  ;;  %v2835_v33 = vsel %vm2827_vm14, %v2821_v24, %v2831_v51 }
 0x25c   :  { %v2854_v34 = vadd.f32 %v2851_v31, %v2850_v30  ;;  %v2852_v36 = vmul.f32 %v2843_v22, %v2835_v33 }
 0x25d   :  { %v2836_v35 = vsel %vm2828_vm15, %v2823_v28, %v2832_v32 }
 0x25e   :  { %2855 = vadd.xlane.f32.xlu1 %v2854_v34  ;;  %v2853_v37 = vmul.f32 %v2847_v23, %v2836_v35 }
 0x260   :  { %v2857_v38 = vadd.f32 %v2853_v37, %v2852_v36 }
 0x262   :  { %2858 = vadd.xlane.f32.xlu1 %v2857_v38 }
 0x290   :  { %v3318_v42 = vpop.f32.mrf.mxu0 }
 0x291   :  { %v3319_v43 = vadd.f32 %v3318_v42, %v2957_v40  ;;  %v3361_v44 = vpop.f32.mrf.mxu1 }
 0x292   :  { %v3320_v45 = vpop.f32.mrf.mxu0 }
 0x293   :  { %v3362_v46 = vadd.f32 %v3361_v44, %v3319_v43  ;;  %v3321_v47 = vadd.f32 %v3320_v45, %v2961_v41  ;;  %v3363_v48 = vpop.f32.mrf.mxu1 }
 0x294   :  { %v3322_v50 = vpop.f32.mrf.mxu0 }
 0x295   :  { %vm3370_vm0 = vcmp.gt.f32.partialorder %v3362_v46, 0.0  ;;  %v3374_v52 = vmul.f32 0.2, %v3362_v46  ;;  %v3364_v53 = vadd.f32 %v3363_v48, %v3321_v47  ;;  %v3323_v54 = vadd.f32 %v3322_v50, %v2957_v40  ;;  %v3365_v55 = vpop.f32.mrf.mxu1 }
 0x296   :  { %v3324_v56 = vpop.f32.mrf.mxu0 }
 0x297   :  { %vm3371_vm1 = vcmp.gt.f32.partialorder %v3364_v53, 0.0  ;;  %v3375_v59 = vmul.f32 0.2, %v3364_v53  ;;  %v3366_v60 = vadd.f32 %v3365_v55, %v3323_v54  ;;  %v3325_v16 = vadd.f32 %v3324_v56, %v2961_v41  ;;  %v3367_v61 = vpop.f32.mrf.mxu1 }
 0x298   :  { %v3378_v8 = vsel %vm3370_vm0, %v3362_v46, %v3374_v52 }
 0x299   :  { %vm3372_vm2 = vcmp.gt.f32.partialorder %v3366_v60, 0.0  ;;  %v3376_v17 = vmul.f32 0.2, %v3366_v60  ;;  %v3368_v62 = vadd.f32 %v3367_v61, %v3325_v16  ;;  %v3379_v63 = vsel %vm3371_vm1, %v3364_v53, %v3375_v59 }
 0x29a   :  { %v3395_v0 = vmul.f32 %v3388_v57, %v3378_v8  ;;  %v3396_v1 = vmul.f32 %v3392_v58, %v3379_v63 }
 0x29b   :  { %vm3373_vm3 = vcmp.gt.f32.partialorder %v3368_v62, 0.0  ;;  %v3377_v2 = vmul.f32 0.2, %v3368_v62  ;;  %v3380_v3 = vsel %vm3372_vm2, %v3366_v60, %v3376_v17 }
 0x29c   :  { %v3399_v4 = vadd.f32 %v3396_v1, %v3395_v0  ;;  %v3397_v13 = vmul.f32 %v3388_v57, %v3380_v3 }
 0x29d   :  { %v3381_v5 = vsel %vm3373_vm3, %v3368_v62, %v3377_v2 }
 0x29e   :  { %3400 = vadd.xlane.f32.xlu0 %v3399_v4  ;;  %v3398_v15 = vmul.f32 %v3392_v58, %v3381_v5 }
 0x2a0   :  { %v3402_v6 = vadd.f32 %v3398_v15, %v3397_v13 }
 0x2a2   :  { %3403 = vadd.xlane.f32.xlu1 %v3402_v6 }
 0x2a7   :  { %v2311_v10 = vpop.xlane.xlu0 %2310 }
 0x2a8   :  { %v2322_v11 = vadd.f32 %v3690_v9, %v2311_v10 }
 0x2aa   :  { %v2324_v12 = vsub.f32 0.0, %v2322_v11 }
 0x2ab   :  { %v2314_v18 = vpop.xlane.xlu0 %2313 }
 0x2ac   :  { %v2326_v14 = vmul.f32 1.442695, %v2324_v12  ;;  %v2323_v19 = vadd.f32 %v3690_v9, %v2314_v18 }
 0x2ae   :  { %4412 = vpow2.f32 %v2326_v14  ;;  %v2325_v20 = vsub.f32 0.0, %v2323_v19 }
 0x2b0   :  { %v2328_v21 = vmul.f32 1.442695, %v2325_v20 }
 0x2b2   :  { %4414 = vpow2.f32 %v2328_v21 }
 0x2bb   :  { %v4413_v22 = vpop.eup %4412 }
 0x2bc   :  { %v2330_v23 = vadd.f32 1.0, %v4413_v22 }
 0x2be   :  { %4416 = vrcp.f32 %v2330_v23 }
 0x2bf   :  { %v4415_v7 = vpop.eup %4414 }
 0x2c0   :  { %v2331_v24 = vadd.f32 1.0, %v4415_v7 }
 0x2c2   :  { %4418 = vrcp.f32 %v2331_v24 }
 0x2cb   :  { %v4417_v25 = vpop.eup %4416 }
 0x2cc   :  { %2335 = vst.msk [vmem:[%s4720_s7] sm:$0xff] %vm2334_vm4, %v4417_v25 }
 0x2cf   :  { %v4419_v26 = vpop.eup %4418 }
 0x2d0   :  { %2336 = vst.msk [vmem:[%s4720_s7 + $0x8] sm:$0xff] %vm2334_vm4, %v4419_v26 }
 0x2e7   :  { %v2856_v27 = vpop.xlane.xlu1 %2855 }
 0x2e8   :  { %v2867_v51 = vadd.f32 %v3690_v9, %v2856_v27 }
 0x2ea   :  { %v2869_v28 = vsub.f32 0.0, %v2867_v51 }
 0x2eb   :  { %v2859_v29 = vpop.xlane.xlu1 %2858 }
 0x2ec   :  { %v2871_v30 = vmul.f32 1.442695, %v2869_v28  ;;  %v2868_v31 = vadd.f32 %v3690_v9, %v2859_v29 }
 0x2ee   :  { %4420 = vpow2.f32 %v2871_v30  ;;  %v2870_v32 = vsub.f32 0.0, %v2868_v31 }
 0x2f0   :  { %v2873_v33 = vmul.f32 1.442695, %v2870_v32 }
 0x2f2   :  { %4422 = vpow2.f32 %v2873_v33 }
 0x2fb   :  { %v4421_v34 = vpop.eup %4420 }
 0x2fc   :  { %v2875_v35 = vadd.f32 1.0, %v4421_v34 }
 0x2fe   :  { %4424 = vrcp.f32 %v2875_v35 }
 0x2ff   :  { %v4423_v36 = vpop.eup %4422 }
 0x300   :  { %v2876_v37 = vadd.f32 1.0, %v4423_v36 }
 0x302   :  { %4426 = vrcp.f32 %v2876_v37 }
 0x30b   :  { %v4425_v38 = vpop.eup %4424 }
 0x30c   :  { %2880 = vst.msk [vmem:[%s4720_s7] sm:$0xff] %vm2879_vm5, %v4425_v38 }
 0x30f   :  { %v4427_v39 = vpop.eup %4426 }
 0x310   :  { %2881 = vst.msk [vmem:[%s4720_s7 + $0x8] sm:$0xff] %vm2879_vm5, %v4427_v39 }
 0x327   :  { %v3401_v40 = vpop.xlane.xlu0 %3400 }
 0x328   :  { %v3412_v41 = vadd.f32 %v3690_v9, %v3401_v40 }
 0x32a   :  { %v3414_v42 = vsub.f32 0.0, %v3412_v41 }
 0x32b   :  { %v3404_v43 = vpop.xlane.xlu1 %3403 }
 0x32c   :  { %v3416_v44 = vmul.f32 1.442695, %v3414_v42  ;;  %v3413_v45 = vadd.f32 %v3690_v9, %v3404_v43 }
 0x32e   :  { %4428 = vpow2.f32 %v3416_v44  ;;  %v3415_v46 = vsub.f32 0.0, %v3413_v45 }
 0x330   :  { %v3418_v47 = vmul.f32 1.442695, %v3415_v46 }
 0x332   :  { %4430 = vpow2.f32 %v3418_v47 }
 0x33b   :  { %v4429_v48 = vpop.eup %4428 }
 0x33c   :  { %v3420_v49 = vadd.f32 1.0, %v4429_v48 }
 0x33e   :  { %4432 = vrcp.f32 %v3420_v49 }
 0x33f   :  { %v4431_v50 = vpop.eup %4430 }
 0x340   :  { %v3421_v52 = vadd.f32 1.0, %v4431_v50 }
 0x342   :  { %4434 = vrcp.f32 %v3421_v52 }
 0x34b   :  { %v4433_v53 = vpop.eup %4432 }
 0x34c   :  { %3425 = vst.msk [vmem:[%s4720_s7] sm:$0xff] %vm3424_vm6, %v4433_v53 }
 0x34f   :  { %v4435_v54 = vpop.eup %4434 }
 0x350   :  { %3426 = vst.msk [vmem:[%s4720_s7 + $0x8] sm:$0xff] %vm3424_vm6, %v4435_v54 }
 0x351   :  { %3431 = vsyncpa [#allocation4], 1 }
 0x352   :  { %3432 = vsyncpa [#allocation6], 1 }
 0x353   :  { %3433 = vsyncpa [#allocation9], 1 }

</bundles_post_ra>
